<compile_context>
chip_gen: v7x
topology: tpu7x:2x2x1
jax: 0.10.0
libtpu: 0.0.40
codegen_flags: <defaults>
</compile_context>

<pallas_src>
import jax
import jax.numpy as jnp
from jax.experimental import pallas as pl
from jax.experimental.pallas import tpu as pltpu


# ----------------------------------------------------------------------------- #
# Model constants (small stand-in sizes; mirror the PyTorch module's arithmetic)
# ----------------------------------------------------------------------------- #
C_IMG, C_FEAT, IMG_HW = 3, 4, 16
FEAT_HW = IMG_HW // 2                  # stand-in backbone output spatial size (8)
DIMS = 2 * C_FEAT                      # self.dims = output_size[1] * 2
CONV_FACTOR = FEAT_HW - 5              # self.conv_factor (= 3)
RANK_IN = C_FEAT * FEAT_HW * FEAT_HW   # cnn_size[1]*cnn_size[2]*cnn_size[3] = 256
RANK_HIDDEN = 4096
BB_K = 3                               # backbone stand-in kernel size

RANK_TN = 512                          # rank-head hidden-dim tile
RANK_SPLIT = 2                         # leading 'parallel' grid axis (v7x megacore)


# ----------------------------------------------------------------------------- #
# Pallas kernels
# ----------------------------------------------------------------------------- #
def _backbone_kernel(x_ref, w_ref, b_ref, o_ref):
    """Stand-in backbone: 3x3 'valid' conv on a pre-padded NHWC image + bias + ReLU.

    One image per grid step; the conv is a sum of 9 per-tap matmuls on slices of
    the VMEM-resident padded image (no host-side im2col, no in-kernel concat)."""
    x = x_ref[0]                                   # (HP, WP, Cin)
    w = w_ref[...]                                 # (BB_K*BB_K*Cin, Cout)
    hp, wp, cin = x.shape
    oh, ow = hp - BB_K + 1, wp - BB_K + 1
    acc = None
    for kh in range(BB_K):
        for kw in range(BB_K):
            patch = x[kh:kh + oh, kw:kw + ow, :].reshape(oh * ow, cin)
            tap = w[(kh * BB_K + kw) * cin:(kh * BB_K + kw + 1) * cin, :]
            t = jnp.dot(patch, tap, preferred_element_type=jnp.float32)
            acc = t if acc is None else acc + t
    y = jnp.maximum(acc + b_ref[...], 0.0)
    o_ref[...] = y.astype(o_ref.dtype)             # (oh*ow, Cout), NHWC row order


def _tap_conv(operands, k, valid_h, valid_w, nb):
    """'valid' conv in the flattened-rows layout (row = h*FEAT_HW + w, one image
    every FEAT_HW**2 rows).  `operands` is a list of (x_2d, weight_mat, cin)
    whose contributions are summed (used to split fuse_conv_1 across the left /
    right input-channel halves so the channel concat is never materialized).
    Rows whose w-index exceeds the valid output width hold junk values that
    later valid rows never read."""
    s_img = FEAT_HW * FEAT_HW
    span = s_img * (nb - 1) + (valid_h - k) * FEAT_HW + (valid_w - k + 1)
    acc = None
    for kh in range(k):
        for kw in range(k):
            off = kh * FEAT_HW + kw
            for x, w, cin in operands:
                tap = w[(kh * k + kw) * cin:(kh * k + kw + 1) * cin, :]
                t = jnp.dot(x[off:off + span, :], tap,
                            preferred_element_type=jnp.float32)
                acc = t if acc is None else acc + t
    return acc


def _fuse_head_kernel(l_ref, r_ref, w1l_ref, w1r_ref, b1_ref, w2_ref, b2_ref,
                      w3_ref, b3_ref, wf_ref, bf_ref, o_ref):
    """fuse_conv_1 -> fuse_conv_2 -> fuse_conv_3 -> fuse_fc -> LogSoftmax,
    fully fused and VMEM-resident (conv_drop is identity at inference)."""
    s_img = FEAT_HW * FEAT_HW
    lft = l_ref[...]                               # (B*64, C_FEAT)
    rgt = r_ref[...]                               # (B*64, C_FEAT)
    nb = lft.shape[0] // s_img
    cf = lft.shape[1]
    dims = b1_ref.shape[1]

    h1 = _tap_conv([(lft, w1l_ref[...], cf), (rgt, w1r_ref[...], cf)],
                   3, FEAT_HW, FEAT_HW, nb) + b1_ref[...]
    h2 = _tap_conv([(h1, w2_ref[...], dims)],
                   3, FEAT_HW - 2, FEAT_HW - 2, nb) + b2_ref[...]
    c3 = _tap_conv([(h2, w3_ref[...], dims)],
                   2, FEAT_HW - 4, FEAT_HW - 4, nb) + b3_ref[...]

    wf = wf_ref[...]                               # (CONV_FACTOR**2 * dims, 2)
    bf = bf_ref[...]                               # (1, 2)
    for b in range(nb):
        logits = bf
        for s in range(CONV_FACTOR * CONV_FACTOR):
            oh, ow = divmod(s, CONV_FACTOR)
            row = b * s_img + oh * FEAT_HW + ow
            logits = logits + jnp.dot(c3[row:row + 1, :],
                                      wf[s * dims:(s + 1) * dims, :],
                                      preferred_element_type=jnp.float32)
        m = jnp.max(logits, axis=-1, keepdims=True)
        lse = m + jnp.log(jnp.sum(jnp.exp(logits - m), axis=-1, keepdims=True))
        o_ref[b:b + 1, :] = (logits - lse).astype(o_ref.dtype)


def _rank_head_kernel(x_ref, w1_ref, b1_ref, w2_ref, o_ref, acc_ref):
    """rank_fc_1 (bf16 weights, f32 accumulation) -> ReLU -> rank_fc_out,
    column-tiled over the 4096 hidden dim so the weight DMA pipelines with MXU
    work.  The N=1 second matmul is a VPU multiply + lane reduction.  The
    Dropout(0.3) between them is identity at inference."""
    j = pl.program_id(1)

    @pl.when(j == 0)
    def _():
        acc_ref[...] = jnp.zeros_like(acc_ref)

    h = jnp.dot(x_ref[...].astype(jnp.bfloat16), w1_ref[...],
                preferred_element_type=jnp.float32)            # (2B, TN)
    h = jnp.maximum(h + b1_ref[...], 0.0)
    acc_ref[...] += jnp.sum(h * w2_ref[...], axis=-1, keepdims=True)

    @pl.when(j == pl.num_programs(1) - 1)
    def _():
        o_ref[...] = acc_ref[...][None].astype(o_ref.dtype)    # (1, 2B, 1)


# ----------------------------------------------------------------------------- #
# Pallas wrappers
# ----------------------------------------------------------------------------- #
def pallas_backbone(x_pad, wmat, b2d):
    n, hp, wp, cin = x_pad.shape
    oh, ow = hp - BB_K + 1, wp - BB_K + 1
    cout = wmat.shape[1]
    return pl.pallas_call(
        _backbone_kernel,
        out_shape=jax.ShapeDtypeStruct((n * oh * ow, cout), jnp.float32),
        grid=(n,),
        in_specs=[pl.BlockSpec((1, hp, wp, cin), lambda i: (i, 0, 0, 0)),
                  pl.BlockSpec((BB_K * BB_K * cin, cout), lambda i: (0, 0)),
                  pl.BlockSpec((1, cout), lambda i: (0, 0))],
        out_specs=pl.BlockSpec((oh * ow, cout), lambda i: (i, 0)),
        compiler_params=pltpu.CompilerParams(
            dimension_semantics=("parallel",)),
    )(x_pad, wmat, b2d)


def pallas_fuse_head(left2d, right2d, w1l, w1r, b1, w2, b2, w3, b3, wf, bf, batch):
    args = (left2d, right2d, w1l, w1r, b1, w2, b2, w3, b3, wf, bf)
    return pl.pallas_call(
        _fuse_head_kernel,
        out_shape=jax.ShapeDtypeStruct((batch, 2), jnp.float32),
        grid=(1,),
        in_specs=[pl.BlockSpec(a.shape, lambda i: (0, 0)) for a in args],
        out_specs=pl.BlockSpec((batch, 2), lambda i: (0, 0)),
    )(*args)


def pallas_rank_head(x, w1_kn_bf16, b1_row, w2_row):
    m, kdim = x.shape                      # (2B, 256)
    hidden = w1_kn_bf16.shape[1]           # 4096
    n_j = hidden // (RANK_SPLIT * RANK_TN)

    def wmap(i, j, _n=n_j):
        return (0, i * _n + j)

    return pl.pallas_call(
        _rank_head_kernel,
        out_shape=jax.ShapeDtypeStruct((RANK_SPLIT, m, 1), jnp.float32),
        grid=(RANK_SPLIT, n_j),
        in_specs=[pl.BlockSpec((m, kdim), lambda i, j: (0, 0)),
                  pl.BlockSpec((kdim, RANK_TN), wmap),
                  pl.BlockSpec((1, RANK_TN), wmap),
                  pl.BlockSpec((1, RANK_TN), wmap)],
        out_specs=pl.BlockSpec((1, m, 1), lambda i, j: (i, 0, 0)),
        scratch_shapes=[pltpu.VMEM((m, 1), jnp.float32)],
        compiler_params=pltpu.CompilerParams(
            dimension_semantics=("parallel", "arbitrary"),
            vmem_limit_bytes=32 * 1024 * 1024),
    )(x, w1_kn_bf16, b1_row, w2_row)


# ----------------------------------------------------------------------------- #
# Parameters (deterministic, created in PyTorch layouts, then packed once)
# ----------------------------------------------------------------------------- #
def init_params(key):
    def dense(k, shape, fan_in):
        return jax.random.normal(k, shape, jnp.float32) / jnp.sqrt(float(fan_in))

    ks = jax.random.split(key, 13)
    p = {}
    p["bb_w"] = dense(ks[0], (C_FEAT, C_IMG, 3, 3), C_IMG * 9)        # backbone stand-in
    p["bb_b"] = jnp.zeros((C_FEAT,), jnp.float32)
    p["fc1_w"] = dense(ks[1], (DIMS, DIMS, 3, 3), DIMS * 9)           # fuse_conv_1
    p["fc1_b"] = dense(ks[2], (DIMS,), DIMS * 9)
    p["fc2_w"] = dense(ks[3], (DIMS, DIMS, 3, 3), DIMS * 9)           # fuse_conv_2
    p["fc2_b"] = dense(ks[4], (DIMS,), DIMS * 9)
    p["fc3_w"] = dense(ks[5], (DIMS, DIMS, 2, 2), DIMS * 4)           # fuse_conv_3
    p["fc3_b"] = dense(ks[6], (DIMS,), DIMS * 4)
    fuse_in = DIMS * CONV_FACTOR ** 2
    p["fuse_fc_w"] = dense(ks[7], (2, fuse_in), fuse_in)              # nn.Linear(fuse_in, 2)
    p["fuse_fc_b"] = dense(ks[8], (2,), fuse_in)
    p["rank_w1"] = dense(ks[9], (RANK_HIDDEN, RANK_IN), RANK_IN)      # nn.Linear(RANK_IN, 4096)
    p["rank_b1"] = dense(ks[10], (RANK_HIDDEN,), RANK_IN)
    p["rank_w2"] = dense(ks[11], (1, RANK_HIDDEN), RANK_HIDDEN)       # nn.Linear(4096, 1)
    p["rank_b2"] = dense(ks[12], (1,), RANK_HIDDEN)
    return p


def prepare_params(raw):
    """One-time (outside the traced forward) packing of PyTorch-layout weights
    into kernel-ready layouts."""
    def conv_mat(w):   # (Cout,Cin,KH,KW) -> (KH*KW*Cin, Cout); row order (kh, kw, cin)
        cout, cin, kh, kw = w.shape
        return jnp.transpose(w, (2, 3, 1, 0)).reshape(kh * kw * cin, cout)

    p = {}
    p["bb_wmat"] = conv_mat(raw["bb_w"])
    p["bb_b"] = raw["bb_b"].reshape(1, C_FEAT)
    # fuse_conv_1 split into left / right input-channel halves (avoids the
    # in-kernel channel concat of torch.cat((left, right), 1)).
    p["fc1_wl"] = conv_mat(raw["fc1_w"][:, :C_FEAT])
    p["fc1_wr"] = conv_mat(raw["fc1_w"][:, C_FEAT:])
    p["fc1_b"] = raw["fc1_b"].reshape(1, DIMS)
    p["fc2_wmat"] = conv_mat(raw["fc2_w"])
    p["fc2_b"] = raw["fc2_b"].reshape(1, DIMS)
    p["fc3_wmat"] = conv_mat(raw["fc3_w"])
    p["fc3_b"] = raw["fc3_b"].reshape(1, DIMS)

    # fuse_fc: torch input index is c*S + s (NCHW flatten, S = conv_factor**2).
    # Re-order rows to s*DIMS + c so the kernel takes per-spatial-row blocks.
    s_sp = CONV_FACTOR ** 2
    wf = raw["fuse_fc_w"].reshape(2, DIMS, s_sp)                   # [n, c, s]
    p["fuse_fc_wmat"] = jnp.transpose(wf, (2, 1, 0)).reshape(s_sp * DIMS, 2)
    p["fuse_fc_b"] = raw["fuse_fc_b"].reshape(1, 2)

    # rank_fc_1: torch input index is c*HW + p (NCHW flatten).  Permute to the
    # HWC order (p*C + c) produced by the NHWC feature flatten, pre-transpose to
    # (K, N) and cast to bf16 (halves the dominant weight stream).
    hw = FEAT_HW * FEAT_HW
    rw1 = raw["rank_w1"].reshape(RANK_HIDDEN, C_FEAT, hw)          # [o, c, p]
    rw1 = jnp.transpose(rw1, (2, 1, 0)).reshape(RANK_IN, RANK_HIDDEN)
    p["rank_w1"] = rw1.astype(jnp.bfloat16)
    p["rank_b1"] = raw["rank_b1"].reshape(1, RANK_HIDDEN)
    p["rank_w2"] = raw["rank_w2"].reshape(1, RANK_HIDDEN)
    p["rank_b2"] = raw["rank_b2"]
    return p


# ----------------------------------------------------------------------------- #
# Forward pass (mirrors RSsCnn.forward, eval mode)
# ----------------------------------------------------------------------------- #
def rsscnn_forward(params, left_image, right_image):
    bsz = left_image.shape[0]
    n = 2 * bsz

    # ---- backbone stand-in (see TODO at top): conv3x3(pad 1)+ReLU kernel,
    #      2x2 maxpool as a tiny XLA fusion ----
    imgs = jnp.concatenate([left_image, right_image], axis=0)       # (2B,3,16,16)
    x = jnp.transpose(imgs, (0, 2, 3, 1))                           # NCHW -> NHWC
    x = jnp.pad(x, ((0, 0), (1, 1), (1, 1), (0, 0)))                # (2B,18,18,3)
    y = pallas_backbone(x, params["bb_wmat"], params["bb_b"])       # (2B*256, 4)
    y = y.reshape(n, IMG_HW, IMG_HW, C_FEAT)
    feats = y.reshape(n, FEAT_HW, 2, FEAT_HW, 2, C_FEAT).max(axis=(2, 4))  # (2B,8,8,4)

    # ---- fused fuse_conv_1/2/3 + fuse_fc + LogSoftmax (one kernel) ----
    left2d = feats[:bsz].reshape(bsz * FEAT_HW * FEAT_HW, C_FEAT)
    right2d = feats[bsz:].reshape(bsz * FEAT_HW * FEAT_HW, C_FEAT)
    x_clf = pallas_fuse_head(left2d, right2d,
                             params["fc1_wl"], params["fc1_wr"], params["fc1_b"],
                             params["fc2_wmat"], params["fc2_b"],
                             params["fc3_wmat"], params["fc3_b"],
                             params["fuse_fc_wmat"], params["fuse_fc_b"], bsz)

    # ---- rank head: both branches share one stacked call; the NHWC flatten
    #      matches the row-permuted rank_fc_1 weight prepared at init ----
    rank_in = feats.reshape(n, RANK_IN)                             # (2B, 256)
    partial = pallas_rank_head(rank_in, params["rank_w1"],
                               params["rank_b1"], params["rank_w2"])  # (2, 2B, 1)
    rank = partial.sum(axis=0) + params["rank_b2"]                  # (2B, 1)
    return x_clf, rank[:bsz], rank[bsz:]


# ----------------------------------------------------------------------------- #
if __name__ == "__main__":
    key = jax.random.PRNGKey(0)
    k_l, k_r, k_p = jax.random.split(key, 3)
    B = 2
    left_image = jax.random.normal(k_l, (B, C_IMG, IMG_HW, IMG_HW), jnp.float32)
    right_image = jax.random.normal(k_r, (B, C_IMG, IMG_HW, IMG_HW), jnp.float32)
    params = prepare_params(init_params(k_p))

    fwd = jax.jit(rsscnn_forward)
    x_clf, x_rank_left, x_rank_right = fwd(params, left_image, right_image)
    jax.block_until_ready((x_clf, x_rank_left, x_rank_right))

    assert x_clf.shape == (B, 2)
    assert x_rank_left.shape == (B, 1)
    assert x_rank_right.shape == (B, 1)
    # LogSoftmax rows must exp-sum to 1
    assert jnp.allclose(jnp.sum(jnp.exp(x_clf), axis=1), 1.0, atol=1e-5)
    assert bool(jnp.all(jnp.isfinite(x_rank_left))) and bool(jnp.all(jnp.isfinite(x_rank_right)))
    print("KERNEL_OK")
</pallas_src>

<mosaic_0001>
module attributes {stable_mosaic.version = 11 : i64} {
  func.func @_backbone_kernel(%arg0: i32, %arg1: memref<1x18x18x3xf32, #tpu.memory_space<vmem>>, %arg2: memref<27x4xf32, #tpu.memory_space<vmem>>, %arg3: memref<1x4xf32, #tpu.memory_space<vmem>>, %arg4: memref<256x4xf32, #tpu.memory_space<vmem>>) attributes {dimension_semantics = [#tpu.dimension_semantics<parallel>], iteration_bounds = array<i64: 4>, scalar_prefetch = 0 : i64, scratch_operands = 0 : i64, tpu.core_type = #tpu.core_type<tc>, window_params = [{transform_indices = @transform_0, window_bounds = array<i64: 1, 18, 18, 3>}, {pipeline_mode = #tpu.pipeline_mode<synchronous>, transform_indices = @transform_1, window_bounds = array<i64: 27, 4>}, {pipeline_mode = #tpu.pipeline_mode<synchronous>, transform_indices = @transform_2, window_bounds = array<i64: 1, 4>}, {transform_indices = @transform_3, window_bounds = array<i64: 256, 4>}]} {
    %c0 = arith.constant 0 : index
    %c0_0 = arith.constant 0 : index
    %c0_1 = arith.constant 0 : index
    %c0_2 = arith.constant 0 : index
    %0 = vector.load %arg1[%c0, %c0_0, %c0_1, %c0_2] : memref<1x18x18x3xf32, #tpu.memory_space<vmem>>, vector<1x18x18x3xf32>
    %1 = vector.shape_cast %0 : vector<1x18x18x3xf32> to vector<18x18x3xf32>
    %c0_3 = arith.constant 0 : index
    %c0_4 = arith.constant 0 : index
    %2 = vector.load %arg2[%c0_3, %c0_4] : memref<27x4xf32, #tpu.memory_space<vmem>>, vector<27x4xf32>
    %3 = vector.extract_strided_slice %1 {offsets = [0, 0, 0], sizes = [16, 16, 3], strides = [1, 1, 1]} : vector<18x18x3xf32> to vector<16x16x3xf32>
    %4 = vector.shape_cast %3 : vector<16x16x3xf32> to vector<256x3xf32>
    %5 = vector.extract_strided_slice %2 {offsets = [0, 0], sizes = [3, 4], strides = [1, 1]} : vector<27x4xf32> to vector<3x4xf32>
    %cst = arith.constant dense<0.000000e+00> : vector<256x4xf32>
    %6 = tpu.matmul %4, %5, %cst {dimension_numbers = #tpu.dot_dimension_numbers<[1], [0], [0], [1], [0, 0, 1, 1], [], []>} : vector<256x3xf32>, vector<3x4xf32>, vector<256x4xf32> -> vector<256x4xf32>
    %7 = vector.extract_strided_slice %1 {offsets = [0, 1, 0], sizes = [16, 16, 3], strides = [1, 1, 1]} : vector<18x18x3xf32> to vector<16x16x3xf32>
    %8 = vector.shape_cast %7 : vector<16x16x3xf32> to vector<256x3xf32>
    %9 = vector.extract_strided_slice %2 {offsets = [3, 0], sizes = [3, 4], strides = [1, 1]} : vector<27x4xf32> to vector<3x4xf32>
    %cst_5 = arith.constant dense<0.000000e+00> : vector<256x4xf32>
    %10 = tpu.matmul %8, %9, %cst_5 {dimension_numbers = #tpu.dot_dimension_numbers<[1], [0], [0], [1], [0, 0, 1, 1], [], []>} : vector<256x3xf32>, vector<3x4xf32>, vector<256x4xf32> -> vector<256x4xf32>
    %11 = arith.addf %6, %10 : vector<256x4xf32>
    %12 = vector.extract_strided_slice %1 {offsets = [0, 2, 0], sizes = [16, 16, 3], strides = [1, 1, 1]} : vector<18x18x3xf32> to vector<16x16x3xf32>
    %13 = vector.shape_cast %12 : vector<16x16x3xf32> to vector<256x3xf32>
    %14 = vector.extract_strided_slice %2 {offsets = [6, 0], sizes = [3, 4], strides = [1, 1]} : vector<27x4xf32> to vector<3x4xf32>
    %cst_6 = arith.constant dense<0.000000e+00> : vector<256x4xf32>
    %15 = tpu.matmul %13, %14, %cst_6 {dimension_numbers = #tpu.dot_dimension_numbers<[1], [0], [0], [1], [0, 0, 1, 1], [], []>} : vector<256x3xf32>, vector<3x4xf32>, vector<256x4xf32> -> vector<256x4xf32>
    %16 = arith.addf %11, %15 : vector<256x4xf32>
    %17 = vector.extract_strided_slice %1 {offsets = [1, 0, 0], sizes = [16, 16, 3], strides = [1, 1, 1]} : vector<18x18x3xf32> to vector<16x16x3xf32>
    %18 = vector.shape_cast %17 : vector<16x16x3xf32> to vector<256x3xf32>
    %19 = vector.extract_strided_slice %2 {offsets = [9, 0], sizes = [3, 4], strides = [1, 1]} : vector<27x4xf32> to vector<3x4xf32>
    %cst_7 = arith.constant dense<0.000000e+00> : vector<256x4xf32>
    %20 = tpu.matmul %18, %19, %cst_7 {dimension_numbers = #tpu.dot_dimension_numbers<[1], [0], [0], [1], [0, 0, 1, 1], [], []>} : vector<256x3xf32>, vector<3x4xf32>, vector<256x4xf32> -> vector<256x4xf32>
    %21 = arith.addf %16, %20 : vector<256x4xf32>
    %22 = vector.extract_strided_slice %1 {offsets = [1, 1, 0], sizes = [16, 16, 3], strides = [1, 1, 1]} : vector<18x18x3xf32> to vector<16x16x3xf32>
    %23 = vector.shape_cast %22 : vector<16x16x3xf32> to vector<256x3xf32>
    %24 = vector.extract_strided_slice %2 {offsets = [12, 0], sizes = [3, 4], strides = [1, 1]} : vector<27x4xf32> to vector<3x4xf32>
    %cst_8 = arith.constant dense<0.000000e+00> : vector<256x4xf32>
    %25 = tpu.matmul %23, %24, %cst_8 {dimension_numbers = #tpu.dot_dimension_numbers<[1], [0], [0], [1], [0, 0, 1, 1], [], []>} : vector<256x3xf32>, vector<3x4xf32>, vector<256x4xf32> -> vector<256x4xf32>
    %26 = arith.addf %21, %25 : vector<256x4xf32>
    %27 = vector.extract_strided_slice %1 {offsets = [1, 2, 0], sizes = [16, 16, 3], strides = [1, 1, 1]} : vector<18x18x3xf32> to vector<16x16x3xf32>
    %28 = vector.shape_cast %27 : vector<16x16x3xf32> to vector<256x3xf32>
    %29 = vector.extract_strided_slice %2 {offsets = [15, 0], sizes = [3, 4], strides = [1, 1]} : vector<27x4xf32> to vector<3x4xf32>
    %cst_9 = arith.constant dense<0.000000e+00> : vector<256x4xf32>
    %30 = tpu.matmul %28, %29, %cst_9 {dimension_numbers = #tpu.dot_dimension_numbers<[1], [0], [0], [1], [0, 0, 1, 1], [], []>} : vector<256x3xf32>, vector<3x4xf32>, vector<256x4xf32> -> vector<256x4xf32>
    %31 = arith.addf %26, %30 : vector<256x4xf32>
    %32 = vector.extract_strided_slice %1 {offsets = [2, 0, 0], sizes = [16, 16, 3], strides = [1, 1, 1]} : vector<18x18x3xf32> to vector<16x16x3xf32>
    %33 = vector.shape_cast %32 : vector<16x16x3xf32> to vector<256x3xf32>
    %34 = vector.extract_strided_slice %2 {offsets = [18, 0], sizes = [3, 4], strides = [1, 1]} : vector<27x4xf32> to vector<3x4xf32>
    %cst_10 = arith.constant dense<0.000000e+00> : vector<256x4xf32>
    %35 = tpu.matmul %33, %34, %cst_10 {dimension_numbers = #tpu.dot_dimension_numbers<[1], [0], [0], [1], [0, 0, 1, 1], [], []>} : vector<256x3xf32>, vector<3x4xf32>, vector<256x4xf32> -> vector<256x4xf32>
    %36 = arith.addf %31, %35 : vector<256x4xf32>
    %37 = vector.extract_strided_slice %1 {offsets = [2, 1, 0], sizes = [16, 16, 3], strides = [1, 1, 1]} : vector<18x18x3xf32> to vector<16x16x3xf32>
    %38 = vector.shape_cast %37 : vector<16x16x3xf32> to vector<256x3xf32>
    %39 = vector.extract_strided_slice %2 {offsets = [21, 0], sizes = [3, 4], strides = [1, 1]} : vector<27x4xf32> to vector<3x4xf32>
    %cst_11 = arith.constant dense<0.000000e+00> : vector<256x4xf32>
    %40 = tpu.matmul %38, %39, %cst_11 {dimension_numbers = #tpu.dot_dimension_numbers<[1], [0], [0], [1], [0, 0, 1, 1], [], []>} : vector<256x3xf32>, vector<3x4xf32>, vector<256x4xf32> -> vector<256x4xf32>
    %41 = arith.addf %36, %40 : vector<256x4xf32>
    %42 = vector.extract_strided_slice %1 {offsets = [2, 2, 0], sizes = [16, 16, 3], strides = [1, 1, 1]} : vector<18x18x3xf32> to vector<16x16x3xf32>
    %43 = vector.shape_cast %42 : vector<16x16x3xf32> to vector<256x3xf32>
    %44 = vector.extract_strided_slice %2 {offsets = [24, 0], sizes = [3, 4], strides = [1, 1]} : vector<27x4xf32> to vector<3x4xf32>
    %cst_12 = arith.constant dense<0.000000e+00> : vector<256x4xf32>
    %45 = tpu.matmul %43, %44, %cst_12 {dimension_numbers = #tpu.dot_dimension_numbers<[1], [0], [0], [1], [0, 0, 1, 1], [], []>} : vector<256x3xf32>, vector<3x4xf32>, vector<256x4xf32> -> vector<256x4xf32>
    %46 = arith.addf %41, %45 : vector<256x4xf32>
    %c0_13 = arith.constant 0 : index
    %c0_14 = arith.constant 0 : index
    %47 = vector.load %arg3[%c0_13, %c0_14] : memref<1x4xf32, #tpu.memory_space<vmem>>, vector<1x4xf32>
    %48 = vector.broadcast %47 : vector<1x4xf32> to vector<256x4xf32>
    %49 = arith.addf %46, %48 : vector<256x4xf32>
    %cst_15 = arith.constant 0.000000e+00 : f32
    %50 = vector.broadcast %cst_15 : f32 to vector<256x4xf32>
    %51 = arith.maximumf %49, %50 : vector<256x4xf32>
    %c0_16 = arith.constant 0 : index
    %c0_17 = arith.constant 0 : index
    %52 = vector.load %arg4[%c0_16, %c0_17] : memref<256x4xf32, #tpu.memory_space<vmem>>, vector<256x4xf32>
    tpu.vector_store %arg4[%c0_16, %c0_17], %51 {strides = array<i32>} : memref<256x4xf32, #tpu.memory_space<vmem>>, vector<256x4xf32>,
    return
  }
  func.func @transform_0(%arg0: i32) -> (i32, i32, i32, i32) {
    %c0_i32 = arith.constant 0 : i32
    %c0_i32_0 = arith.constant 0 : i32
    %c0_i32_1 = arith.constant 0 : i32
    %c0_i32_2 = arith.constant 0 : i32
    return %arg0, %c0_i32, %c0_i32_0, %c0_i32_1 : i32, i32, i32, i32
  }
  func.func @transform_1(%arg0: i32) -> (i32, i32) {
    %c0_i32 = arith.constant 0 : i32
    %c0_i32_0 = arith.constant 0 : i32
    %c0_i32_1 = arith.constant 0 : i32
    return %c0_i32, %c0_i32_0 : i32, i32
  }
  func.func @transform_2(%arg0: i32) -> (i32, i32) {
    %c0_i32 = arith.constant 0 : i32
    %c0_i32_0 = arith.constant 0 : i32
    %c0_i32_1 = arith.constant 0 : i32
    return %c0_i32, %c0_i32_0 : i32, i32
  }
  func.func @transform_3(%arg0: i32) -> (i32, i32) {
    %c0_i32 = arith.constant 0 : i32
    %c0_i32_0 = arith.constant 0 : i32
    return %arg0, %c0_i32 : i32, i32
  }
}

module attributes {stable_mosaic.version = 11 : i64} {
  func.func @_fuse_head_kernel(%arg0: i32, %arg1: memref<128x4xf32, #tpu.memory_space<vmem>>, %arg2: memref<128x4xf32, #tpu.memory_space<vmem>>, %arg3: memref<36x8xf32, #tpu.memory_space<vmem>>, %arg4: memref<36x8xf32, #tpu.memory_space<vmem>>, %arg5: memref<1x8xf32, #tpu.memory_space<vmem>>, %arg6: memref<72x8xf32, #tpu.memory_space<vmem>>, %arg7: memref<1x8xf32, #tpu.memory_space<vmem>>, %arg8: memref<32x8xf32, #tpu.memory_space<vmem>>, %arg9: memref<1x8xf32, #tpu.memory_space<vmem>>, %arg10: memref<72x2xf32, #tpu.memory_space<vmem>>, %arg11: memref<1x2xf32, #tpu.memory_space<vmem>>, %arg12: memref<2x2xf32, #tpu.memory_space<vmem>>) attributes {dimension_semantics = [#tpu.dimension_semantics<arbitrary>], iteration_bounds = array<i64: 1>, scalar_prefetch = 0 : i64, scratch_operands = 0 : i64, tpu.core_type = #tpu.core_type<tc>, window_params = [{pipeline_mode = #tpu.pipeline_mode<synchronous>, transform_indices = @transform_0, window_bounds = array<i64: 128, 4>}, {pipeline_mode = #tpu.pipeline_mode<synchronous>, transform_indices = @transform_1, window_bounds = array<i64: 128, 4>}, {pipeline_mode = #tpu.pipeline_mode<synchronous>, transform_indices = @transform_2, window_bounds = array<i64: 36, 8>}, {pipeline_mode = #tpu.pipeline_mode<synchronous>, transform_indices = @transform_3, window_bounds = array<i64: 36, 8>}, {pipeline_mode = #tpu.pipeline_mode<synchronous>, transform_indices = @transform_4, window_bounds = array<i64: 1, 8>}, {pipeline_mode = #tpu.pipeline_mode<synchronous>, transform_indices = @transform_5, window_bounds = array<i64: 72, 8>}, {pipeline_mode = #tpu.pipeline_mode<synchronous>, transform_indices = @transform_6, window_bounds = array<i64: 1, 8>}, {pipeline_mode = #tpu.pipeline_mode<synchronous>, transform_indices = @transform_7, window_bounds = array<i64: 32, 8>}, {pipeline_mode = #tpu.pipeline_mode<synchronous>, transform_indices = @transform_8, window_bounds = array<i64: 1, 8>}, {pipeline_mode = #tpu.pipeline_mode<synchronous>, transform_indices = @transform_9, window_bounds = array<i64: 72, 2>}, {pipeline_mode = #tpu.pipeline_mode<synchronous>, transform_indices = @transform_10, window_bounds = array<i64: 1, 2>}, {pipeline_mode = #tpu.pipeline_mode<synchronous>, transform_indices = @transform_11, window_bounds = array<i64: 2, 2>}]} {
    %c0 = arith.constant 0 : index
    %c0_0 = arith.constant 0 : index
    %0 = vector.load %arg1[%c0, %c0_0] : memref<128x4xf32, #tpu.memory_space<vmem>>, vector<128x4xf32>
    %c0_1 = arith.constant 0 : index
    %c0_2 = arith.constant 0 : index
    %1 = vector.load %arg2[%c0_1, %c0_2] : memref<128x4xf32, #tpu.memory_space<vmem>>, vector<128x4xf32>
    %c0_3 = arith.constant 0 : index
    %c0_4 = arith.constant 0 : index
    %2 = vector.load %arg3[%c0_3, %c0_4] : memref<36x8xf32, #tpu.memory_space<vmem>>, vector<36x8xf32>
    %c0_5 = arith.constant 0 : index
    %c0_6 = arith.constant 0 : index
    %3 = vector.load %arg4[%c0_5, %c0_6] : memref<36x8xf32, #tpu.memory_space<vmem>>, vector<36x8xf32>
    %4 = vector.extract_strided_slice %2 {offsets = [0, 0], sizes = [4, 8], strides = [1, 1]} : vector<36x8xf32> to vector<4x8xf32>
    %5 = vector.extract_strided_slice %0 {offsets = [0, 0], sizes = [110, 4], strides = [1, 1]} : vector<128x4xf32> to vector<110x4xf32>
    %cst = arith.constant dense<0.000000e+00> : vector<110x8xf32>
    %6 = tpu.matmul %5, %4, %cst {dimension_numbers = #tpu.dot_dimension_numbers<[1], [0], [0], [1], [0, 0, 1, 1], [], []>} : vector<110x4xf32>, vector<4x8xf32>, vector<110x8xf32> -> vector<110x8xf32>
    %7 = vector.extract_strided_slice %3 {offsets = [0, 0], sizes = [4, 8], strides = [1, 1]} : vector<36x8xf32> to vector<4x8xf32>
    %8 = vector.extract_strided_slice %1 {offsets = [0, 0], sizes = [110, 4], strides = [1, 1]} : vector<128x4xf32> to vector<110x4xf32>
    %cst_7 = arith.constant dense<0.000000e+00> : vector<110x8xf32>
    %9 = tpu.matmul %8, %7, %cst_7 {dimension_numbers = #tpu.dot_dimension_numbers<[1], [0], [0], [1], [0, 0, 1, 1], [], []>} : vector<110x4xf32>, vector<4x8xf32>, vector<110x8xf32> -> vector<110x8xf32>
    %10 = arith.addf %6, %9 : vector<110x8xf32>
    %11 = vector.extract_strided_slice %2 {offsets = [4, 0], sizes = [4, 8], strides = [1, 1]} : vector<36x8xf32> to vector<4x8xf32>
    %12 = vector.extract_strided_slice %0 {offsets = [1, 0], sizes = [110, 4], strides = [1, 1]} : vector<128x4xf32> to vector<110x4xf32>
    %cst_8 = arith.constant dense<0.000000e+00> : vector<110x8xf32>
    %13 = tpu.matmul %12, %11, %cst_8 {dimension_numbers = #tpu.dot_dimension_numbers<[1], [0], [0], [1], [0, 0, 1, 1], [], []>} : vector<110x4xf32>, vector<4x8xf32>, vector<110x8xf32> -> vector<110x8xf32>
    %14 = arith.addf %10, %13 : vector<110x8xf32>
    %15 = vector.extract_strided_slice %3 {offsets = [4, 0], sizes = [4, 8], strides = [1, 1]} : vector<36x8xf32> to vector<4x8xf32>
    %16 = vector.extract_strided_slice %1 {offsets = [1, 0], sizes = [110, 4], strides = [1, 1]} : vector<128x4xf32> to vector<110x4xf32>
    %cst_9 = arith.constant dense<0.000000e+00> : vector<110x8xf32>
    %17 = tpu.matmul %16, %15, %cst_9 {dimension_numbers = #tpu.dot_dimension_numbers<[1], [0], [0], [1], [0, 0, 1, 1], [], []>} : vector<110x4xf32>, vector<4x8xf32>, vector<110x8xf32> -> vector<110x8xf32>
    %18 = arith.addf %14, %17 : vector<110x8xf32>
    %19 = vector.extract_strided_slice %2 {offsets = [8, 0], sizes = [4, 8], strides = [1, 1]} : vector<36x8xf32> to vector<4x8xf32>
    %20 = vector.extract_strided_slice %0 {offsets = [2, 0], sizes = [110, 4], strides = [1, 1]} : vector<128x4xf32> to vector<110x4xf32>
    %cst_10 = arith.constant dense<0.000000e+00> : vector<110x8xf32>
    %21 = tpu.matmul %20, %19, %cst_10 {dimension_numbers = #tpu.dot_dimension_numbers<[1], [0], [0], [1], [0, 0, 1, 1], [], []>} : vector<110x4xf32>, vector<4x8xf32>, vector<110x8xf32> -> vector<110x8xf32>
    %22 = arith.addf %18, %21 : vector<110x8xf32>
    %23 = vector.extract_strided_slice %3 {offsets = [8, 0], sizes = [4, 8], strides = [1, 1]} : vector<36x8xf32> to vector<4x8xf32>
    %24 = vector.extract_strided_slice %1 {offsets = [2, 0], sizes = [110, 4], strides = [1, 1]} : vector<128x4xf32> to vector<110x4xf32>
    %cst_11 = arith.constant dense<0.000000e+00> : vector<110x8xf32>
    %25 = tpu.matmul %24, %23, %cst_11 {dimension_numbers = #tpu.dot_dimension_numbers<[1], [0], [0], [1], [0, 0, 1, 1], [], []>} : vector<110x4xf32>, vector<4x8xf32>, vector<110x8xf32> -> vector<110x8xf32>
    %26 = arith.addf %22, %25 : vector<110x8xf32>
    %27 = vector.extract_strided_slice %2 {offsets = [12, 0], sizes = [4, 8], strides = [1, 1]} : vector<36x8xf32> to vector<4x8xf32>
    %28 = vector.extract_strided_slice %0 {offsets = [8, 0], sizes = [110, 4], strides = [1, 1]} : vector<128x4xf32> to vector<110x4xf32>
    %cst_12 = arith.constant dense<0.000000e+00> : vector<110x8xf32>
    %29 = tpu.matmul %28, %27, %cst_12 {dimension_numbers = #tpu.dot_dimension_numbers<[1], [0], [0], [1], [0, 0, 1, 1], [], []>} : vector<110x4xf32>, vector<4x8xf32>, vector<110x8xf32> -> vector<110x8xf32>
    %30 = arith.addf %26, %29 : vector<110x8xf32>
    %31 = vector.extract_strided_slice %3 {offsets = [12, 0], sizes = [4, 8], strides = [1, 1]} : vector<36x8xf32> to vector<4x8xf32>
    %32 = vector.extract_strided_slice %1 {offsets = [8, 0], sizes = [110, 4], strides = [1, 1]} : vector<128x4xf32> to vector<110x4xf32>
    %cst_13 = arith.constant dense<0.000000e+00> : vector<110x8xf32>
    %33 = tpu.matmul %32, %31, %cst_13 {dimension_numbers = #tpu.dot_dimension_numbers<[1], [0], [0], [1], [0, 0, 1, 1], [], []>} : vector<110x4xf32>, vector<4x8xf32>, vector<110x8xf32> -> vector<110x8xf32>
    %34 = arith.addf %30, %33 : vector<110x8xf32>
    %35 = vector.extract_strided_slice %2 {offsets = [16, 0], sizes = [4, 8], strides = [1, 1]} : vector<36x8xf32> to vector<4x8xf32>
    %36 = vector.extract_strided_slice %0 {offsets = [9, 0], sizes = [110, 4], strides = [1, 1]} : vector<128x4xf32> to vector<110x4xf32>
    %cst_14 = arith.constant dense<0.000000e+00> : vector<110x8xf32>
    %37 = tpu.matmul %36, %35, %cst_14 {dimension_numbers = #tpu.dot_dimension_numbers<[1], [0], [0], [1], [0, 0, 1, 1], [], []>} : vector<110x4xf32>, vector<4x8xf32>, vector<110x8xf32> -> vector<110x8xf32>
    %38 = arith.addf %34, %37 : vector<110x8xf32>
    %39 = vector.extract_strided_slice %3 {offsets = [16, 0], sizes = [4, 8], strides = [1, 1]} : vector<36x8xf32> to vector<4x8xf32>
    %40 = vector.extract_strided_slice %1 {offsets = [9, 0], sizes = [110, 4], strides = [1, 1]} : vector<128x4xf32> to vector<110x4xf32>
    %cst_15 = arith.constant dense<0.000000e+00> : vector<110x8xf32>
    %41 = tpu.matmul %40, %39, %cst_15 {dimension_numbers = #tpu.dot_dimension_numbers<[1], [0], [0], [1], [0, 0, 1, 1], [], []>} : vector<110x4xf32>, vector<4x8xf32>, vector<110x8xf32> -> vector<110x8xf32>
    %42 = arith.addf %38, %41 : vector<110x8xf32>
    %43 = vector.extract_strided_slice %2 {offsets = [20, 0], sizes = [4, 8], strides = [1, 1]} : vector<36x8xf32> to vector<4x8xf32>
    %44 = vector.extract_strided_slice %0 {offsets = [10, 0], sizes = [110, 4], strides = [1, 1]} : vector<128x4xf32> to vector<110x4xf32>
    %cst_16 = arith.constant dense<0.000000e+00> : vector<110x8xf32>
    %45 = tpu.matmul %44, %43, %cst_16 {dimension_numbers = #tpu.dot_dimension_numbers<[1], [0], [0], [1], [0, 0, 1, 1], [], []>} : vector<110x4xf32>, vector<4x8xf32>, vector<110x8xf32> -> vector<110x8xf32>
    %46 = arith.addf %42, %45 : vector<110x8xf32>
    %47 = vector.extract_strided_slice %3 {offsets = [20, 0], sizes = [4, 8], strides = [1, 1]} : vector<36x8xf32> to vector<4x8xf32>
    %48 = vector.extract_strided_slice %1 {offsets = [10, 0], sizes = [110, 4], strides = [1, 1]} : vector<128x4xf32> to vector<110x4xf32>
    %cst_17 = arith.constant dense<0.000000e+00> : vector<110x8xf32>
    %49 = tpu.matmul %48, %47, %cst_17 {dimension_numbers = #tpu.dot_dimension_numbers<[1], [0], [0], [1], [0, 0, 1, 1], [], []>} : vector<110x4xf32>, vector<4x8xf32>, vector<110x8xf32> -> vector<110x8xf32>
    %50 = arith.addf %46, %49 : vector<110x8xf32>
    %51 = vector.extract_strided_slice %2 {offsets = [24, 0], sizes = [4, 8], strides = [1, 1]} : vector<36x8xf32> to vector<4x8xf32>
    %52 = vector.extract_strided_slice %0 {offsets = [16, 0], sizes = [110, 4], strides = [1, 1]} : vector<128x4xf32> to vector<110x4xf32>
    %cst_18 = arith.constant dense<0.000000e+00> : vector<110x8xf32>
    %53 = tpu.matmul %52, %51, %cst_18 {dimension_numbers = #tpu.dot_dimension_numbers<[1], [0], [0], [1], [0, 0, 1, 1], [], []>} : vector<110x4xf32>, vector<4x8xf32>, vector<110x8xf32> -> vector<110x8xf32>
    %54 = arith.addf %50, %53 : vector<110x8xf32>
    %55 = vector.extract_strided_slice %3 {offsets = [24, 0], sizes = [4, 8], strides = [1, 1]} : vector<36x8xf32> to vector<4x8xf32>
    %56 = vector.extract_strided_slice %1 {offsets = [16, 0], sizes = [110, 4], strides = [1, 1]} : vector<128x4xf32> to vector<110x4xf32>
    %cst_19 = arith.constant dense<0.000000e+00> : vector<110x8xf32>
    %57 = tpu.matmul %56, %55, %cst_19 {dimension_numbers = #tpu.dot_dimension_numbers<[1], [0], [0], [1], [0, 0, 1, 1], [], []>} : vector<110x4xf32>, vector<4x8xf32>, vector<110x8xf32> -> vector<110x8xf32>
    %58 = arith.addf %54, %57 : vector<110x8xf32>
    %59 = vector.extract_strided_slice %2 {offsets = [28, 0], sizes = [4, 8], strides = [1, 1]} : vector<36x8xf32> to vector<4x8xf32>
    %60 = vector.extract_strided_slice %0 {offsets = [17, 0], sizes = [110, 4], strides = [1, 1]} : vector<128x4xf32> to vector<110x4xf32>
    %cst_20 = arith.constant dense<0.000000e+00> : vector<110x8xf32>
    %61 = tpu.matmul %60, %59, %cst_20 {dimension_numbers = #tpu.dot_dimension_numbers<[1], [0], [0], [1], [0, 0, 1, 1], [], []>} : vector<110x4xf32>, vector<4x8xf32>, vector<110x8xf32> -> vector<110x8xf32>
    %62 = arith.addf %58, %61 : vector<110x8xf32>
    %63 = vector.extract_strided_slice %3 {offsets = [28, 0], sizes = [4, 8], strides = [1, 1]} : vector<36x8xf32> to vector<4x8xf32>
    %64 = vector.extract_strided_slice %1 {offsets = [17, 0], sizes = [110, 4], strides = [1, 1]} : vector<128x4xf32> to vector<110x4xf32>
    %cst_21 = arith.constant dense<0.000000e+00> : vector<110x8xf32>
    %65 = tpu.matmul %64, %63, %cst_21 {dimension_numbers = #tpu.dot_dimension_numbers<[1], [0], [0], [1], [0, 0, 1, 1], [], []>} : vector<110x4xf32>, vector<4x8xf32>, vector<110x8xf32> -> vector<110x8xf32>
    %66 = arith.addf %62, %65 : vector<110x8xf32>
    %67 = vector.extract_strided_slice %2 {offsets = [32, 0], sizes = [4, 8], strides = [1, 1]} : vector<36x8xf32> to vector<4x8xf32>
    %68 = vector.extract_strided_slice %0 {offsets = [18, 0], sizes = [110, 4], strides = [1, 1]} : vector<128x4xf32> to vector<110x4xf32>
    %cst_22 = arith.constant dense<0.000000e+00> : vector<110x8xf32>
    %69 = tpu.matmul %68, %67, %cst_22 {dimension_numbers = #tpu.dot_dimension_numbers<[1], [0], [0], [1], [0, 0, 1, 1], [], []>} : vector<110x4xf32>, vector<4x8xf32>, vector<110x8xf32> -> vector<110x8xf32>
    %70 = arith.addf %66, %69 : vector<110x8xf32>
    %71 = vector.extract_strided_slice %3 {offsets = [32, 0], sizes = [4, 8], strides = [1, 1]} : vector<36x8xf32> to vector<4x8xf32>
    %72 = vector.extract_strided_slice %1 {offsets = [18, 0], sizes = [110, 4], strides = [1, 1]} : vector<128x4xf32> to vector<110x4xf32>
    %cst_23 = arith.constant dense<0.000000e+00> : vector<110x8xf32>
    %73 = tpu.matmul %72, %71, %cst_23 {dimension_numbers = #tpu.dot_dimension_numbers<[1], [0], [0], [1], [0, 0, 1, 1], [], []>} : vector<110x4xf32>, vector<4x8xf32>, vector<110x8xf32> -> vector<110x8xf32>
    %74 = arith.addf %70, %73 : vector<110x8xf32>
    %c0_24 = arith.constant 0 : index
    %c0_25 = arith.constant 0 : index
    %75 = vector.load %arg5[%c0_24, %c0_25] : memref<1x8xf32, #tpu.memory_space<vmem>>, vector<1x8xf32>
    %76 = vector.broadcast %75 : vector<1x8xf32> to vector<110x8xf32>
    %77 = arith.addf %74, %76 : vector<110x8xf32>
    %c0_26 = arith.constant 0 : index
    %c0_27 = arith.constant 0 : index
    %78 = vector.load %arg6[%c0_26, %c0_27] : memref<72x8xf32, #tpu.memory_space<vmem>>, vector<72x8xf32>
    %79 = vector.extract_strided_slice %78 {offsets = [0, 0], sizes = [8, 8], strides = [1, 1]} : vector<72x8xf32> to vector<8x8xf32>
    %80 = vector.extract_strided_slice %77 {offsets = [0, 0], sizes = [92, 8], strides = [1, 1]} : vector<110x8xf32> to vector<92x8xf32>
    %cst_28 = arith.constant dense<0.000000e+00> : vector<92x8xf32>
    %81 = tpu.matmul %80, %79, %cst_28 {dimension_numbers = #tpu.dot_dimension_numbers<[1], [0], [0], [1], [0, 0, 1, 1], [], []>} : vector<92x8xf32>, vector<8x8xf32>, vector<92x8xf32> -> vector<92x8xf32>
    %82 = vector.extract_strided_slice %78 {offsets = [8, 0], sizes = [8, 8], strides = [1, 1]} : vector<72x8xf32> to vector<8x8xf32>
    %83 = vector.extract_strided_slice %77 {offsets = [1, 0], sizes = [92, 8], strides = [1, 1]} : vector<110x8xf32> to vector<92x8xf32>
    %cst_29 = arith.constant dense<0.000000e+00> : vector<92x8xf32>
    %84 = tpu.matmul %83, %82, %cst_29 {dimension_numbers = #tpu.dot_dimension_numbers<[1], [0], [0], [1], [0, 0, 1, 1], [], []>} : vector<92x8xf32>, vector<8x8xf32>, vector<92x8xf32> -> vector<92x8xf32>
    %85 = arith.addf %81, %84 : vector<92x8xf32>
    %86 = vector.extract_strided_slice %78 {offsets = [16, 0], sizes = [8, 8], strides = [1, 1]} : vector<72x8xf32> to vector<8x8xf32>
    %87 = vector.extract_strided_slice %77 {offsets = [2, 0], sizes = [92, 8], strides = [1, 1]} : vector<110x8xf32> to vector<92x8xf32>
    %cst_30 = arith.constant dense<0.000000e+00> : vector<92x8xf32>
    %88 = tpu.matmul %87, %86, %cst_30 {dimension_numbers = #tpu.dot_dimension_numbers<[1], [0], [0], [1], [0, 0, 1, 1], [], []>} : vector<92x8xf32>, vector<8x8xf32>, vector<92x8xf32> -> vector<92x8xf32>
    %89 = arith.addf %85, %88 : vector<92x8xf32>
    %90 = vector.extract_strided_slice %78 {offsets = [24, 0], sizes = [8, 8], strides = [1, 1]} : vector<72x8xf32> to vector<8x8xf32>
    %91 = vector.extract_strided_slice %77 {offsets = [8, 0], sizes = [92, 8], strides = [1, 1]} : vector<110x8xf32> to vector<92x8xf32>
    %cst_31 = arith.constant dense<0.000000e+00> : vector<92x8xf32>
    %92 = tpu.matmul %91, %90, %cst_31 {dimension_numbers = #tpu.dot_dimension_numbers<[1], [0], [0], [1], [0, 0, 1, 1], [], []>} : vector<92x8xf32>, vector<8x8xf32>, vector<92x8xf32> -> vector<92x8xf32>
    %93 = arith.addf %89, %92 : vector<92x8xf32>
    %94 = vector.extract_strided_slice %78 {offsets = [32, 0], sizes = [8, 8], strides = [1, 1]} : vector<72x8xf32> to vector<8x8xf32>
    %95 = vector.extract_strided_slice %77 {offsets = [9, 0], sizes = [92, 8], strides = [1, 1]} : vector<110x8xf32> to vector<92x8xf32>
    %cst_32 = arith.constant dense<0.000000e+00> : vector<92x8xf32>
    %96 = tpu.matmul %95, %94, %cst_32 {dimension_numbers = #tpu.dot_dimension_numbers<[1], [0], [0], [1], [0, 0, 1, 1], [], []>} : vector<92x8xf32>, vector<8x8xf32>, vector<92x8xf32> -> vector<92x8xf32>
    %97 = arith.addf %93, %96 : vector<92x8xf32>
    %98 = vector.extract_strided_slice %78 {offsets = [40, 0], sizes = [8, 8], strides = [1, 1]} : vector<72x8xf32> to vector<8x8xf32>
    %99 = vector.extract_strided_slice %77 {offsets = [10, 0], sizes = [92, 8], strides = [1, 1]} : vector<110x8xf32> to vector<92x8xf32>
    %cst_33 = arith.constant dense<0.000000e+00> : vector<92x8xf32>
    %100 = tpu.matmul %99, %98, %cst_33 {dimension_numbers = #tpu.dot_dimension_numbers<[1], [0], [0], [1], [0, 0, 1, 1], [], []>} : vector<92x8xf32>, vector<8x8xf32>, vector<92x8xf32> -> vector<92x8xf32>
    %101 = arith.addf %97, %100 : vector<92x8xf32>
    %102 = vector.extract_strided_slice %78 {offsets = [48, 0], sizes = [8, 8], strides = [1, 1]} : vector<72x8xf32> to vector<8x8xf32>
    %103 = vector.extract_strided_slice %77 {offsets = [16, 0], sizes = [92, 8], strides = [1, 1]} : vector<110x8xf32> to vector<92x8xf32>
    %cst_34 = arith.constant dense<0.000000e+00> : vector<92x8xf32>
    %104 = tpu.matmul %103, %102, %cst_34 {dimension_numbers = #tpu.dot_dimension_numbers<[1], [0], [0], [1], [0, 0, 1, 1], [], []>} : vector<92x8xf32>, vector<8x8xf32>, vector<92x8xf32> -> vector<92x8xf32>
    %105 = arith.addf %101, %104 : vector<92x8xf32>
    %106 = vector.extract_strided_slice %78 {offsets = [56, 0], sizes = [8, 8], strides = [1, 1]} : vector<72x8xf32> to vector<8x8xf32>
    %107 = vector.extract_strided_slice %77 {offsets = [17, 0], sizes = [92, 8], strides = [1, 1]} : vector<110x8xf32> to vector<92x8xf32>
    %cst_35 = arith.constant dense<0.000000e+00> : vector<92x8xf32>
    %108 = tpu.matmul %107, %106, %cst_35 {dimension_numbers = #tpu.dot_dimension_numbers<[1], [0], [0], [1], [0, 0, 1, 1], [], []>} : vector<92x8xf32>, vector<8x8xf32>, vector<92x8xf32> -> vector<92x8xf32>
    %109 = arith.addf %105, %108 : vector<92x8xf32>
    %110 = vector.extract_strided_slice %78 {offsets = [64, 0], sizes = [8, 8], strides = [1, 1]} : vector<72x8xf32> to vector<8x8xf32>
    %111 = vector.extract_strided_slice %77 {offsets = [18, 0], sizes = [92, 8], strides = [1, 1]} : vector<110x8xf32> to vector<92x8xf32>
    %cst_36 = arith.constant dense<0.000000e+00> : vector<92x8xf32>
    %112 = tpu.matmul %111, %110, %cst_36 {dimension_numbers = #tpu.dot_dimension_numbers<[1], [0], [0], [1], [0, 0, 1, 1], [], []>} : vector<92x8xf32>, vector<8x8xf32>, vector<92x8xf32> -> vector<92x8xf32>
    %113 = arith.addf %109, %112 : vector<92x8xf32>
    %c0_37 = arith.constant 0 : index
    %c0_38 = arith.constant 0 : index
    %114 = vector.load %arg7[%c0_37, %c0_38] : memref<1x8xf32, #tpu.memory_space<vmem>>, vector<1x8xf32>
    %115 = vector.broadcast %114 : vector<1x8xf32> to vector<92x8xf32>
    %116 = arith.addf %113, %115 : vector<92x8xf32>
    %c0_39 = arith.constant 0 : index
    %c0_40 = arith.constant 0 : index
    %117 = vector.load %arg8[%c0_39, %c0_40] : memref<32x8xf32, #tpu.memory_space<vmem>>, vector<32x8xf32>
    %118 = vector.extract_strided_slice %117 {offsets = [0, 0], sizes = [8, 8], strides = [1, 1]} : vector<32x8xf32> to vector<8x8xf32>
    %119 = vector.extract_strided_slice %116 {offsets = [0, 0], sizes = [83, 8], strides = [1, 1]} : vector<92x8xf32> to vector<83x8xf32>
    %cst_41 = arith.constant dense<0.000000e+00> : vector<83x8xf32>
    %120 = tpu.matmul %119, %118, %cst_41 {dimension_numbers = #tpu.dot_dimension_numbers<[1], [0], [0], [1], [0, 0, 1, 1], [], []>} : vector<83x8xf32>, vector<8x8xf32>, vector<83x8xf32> -> vector<83x8xf32>
    %121 = vector.extract_strided_slice %117 {offsets = [8, 0], sizes = [8, 8], strides = [1, 1]} : vector<32x8xf32> to vector<8x8xf32>
    %122 = vector.extract_strided_slice %116 {offsets = [1, 0], sizes = [83, 8], strides = [1, 1]} : vector<92x8xf32> to vector<83x8xf32>
    %cst_42 = arith.constant dense<0.000000e+00> : vector<83x8xf32>
    %123 = tpu.matmul %122, %121, %cst_42 {dimension_numbers = #tpu.dot_dimension_numbers<[1], [0], [0], [1], [0, 0, 1, 1], [], []>} : vector<83x8xf32>, vector<8x8xf32>, vector<83x8xf32> -> vector<83x8xf32>
    %124 = arith.addf %120, %123 : vector<83x8xf32>
    %125 = vector.extract_strided_slice %117 {offsets = [16, 0], sizes = [8, 8], strides = [1, 1]} : vector<32x8xf32> to vector<8x8xf32>
    %126 = vector.extract_strided_slice %116 {offsets = [8, 0], sizes = [83, 8], strides = [1, 1]} : vector<92x8xf32> to vector<83x8xf32>
    %cst_43 = arith.constant dense<0.000000e+00> : vector<83x8xf32>
    %127 = tpu.matmul %126, %125, %cst_43 {dimension_numbers = #tpu.dot_dimension_numbers<[1], [0], [0], [1], [0, 0, 1, 1], [], []>} : vector<83x8xf32>, vector<8x8xf32>, vector<83x8xf32> -> vector<83x8xf32>
    %128 = arith.addf %124, %127 : vector<83x8xf32>
    %129 = vector.extract_strided_slice %117 {offsets = [24, 0], sizes = [8, 8], strides = [1, 1]} : vector<32x8xf32> to vector<8x8xf32>
    %130 = vector.extract_strided_slice %116 {offsets = [9, 0], sizes = [83, 8], strides = [1, 1]} : vector<92x8xf32> to vector<83x8xf32>
    %cst_44 = arith.constant dense<0.000000e+00> : vector<83x8xf32>
    %131 = tpu.matmul %130, %129, %cst_44 {dimension_numbers = #tpu.dot_dimension_numbers<[1], [0], [0], [1], [0, 0, 1, 1], [], []>} : vector<83x8xf32>, vector<8x8xf32>, vector<83x8xf32> -> vector<83x8xf32>
    %132 = arith.addf %128, %131 : vector<83x8xf32>
    %c0_45 = arith.constant 0 : index
    %c0_46 = arith.constant 0 : index
    %133 = vector.load %arg9[%c0_45, %c0_46] : memref<1x8xf32, #tpu.memory_space<vmem>>, vector<1x8xf32>
    %134 = vector.broadcast %133 : vector<1x8xf32> to vector<83x8xf32>
    %135 = arith.addf %132, %134 : vector<83x8xf32>
    %c0_47 = arith.constant 0 : index
    %c0_48 = arith.constant 0 : index
    %136 = vector.load %arg10[%c0_47, %c0_48] : memref<72x2xf32, #tpu.memory_space<vmem>>, vector<72x2xf32>
    %c0_49 = arith.constant 0 : index
    %c0_50 = arith.constant 0 : index
    %137 = vector.load %arg11[%c0_49, %c0_50] : memref<1x2xf32, #tpu.memory_space<vmem>>, vector<1x2xf32>
    %138 = vector.extract_strided_slice %135 {offsets = [0, 0], sizes = [1, 8], strides = [1, 1]} : vector<83x8xf32> to vector<1x8xf32>
    %139 = vector.extract_strided_slice %136 {offsets = [0, 0], sizes = [8, 2], strides = [1, 1]} : vector<72x2xf32> to vector<8x2xf32>
    %cst_51 = arith.constant dense<0.000000e+00> : vector<1x2xf32>
    %140 = tpu.matmul %138, %139, %cst_51 {dimension_numbers = #tpu.dot_dimension_numbers<[1], [0], [0], [1], [0, 0, 1, 1], [], []>} : vector<1x8xf32>, vector<8x2xf32>, vector<1x2xf32> -> vector<1x2xf32>
    %141 = arith.addf %137, %140 : vector<1x2xf32>
    %142 = vector.extract_strided_slice %135 {offsets = [1, 0], sizes = [1, 8], strides = [1, 1]} : vector<83x8xf32> to vector<1x8xf32>
    %143 = vector.extract_strided_slice %136 {offsets = [8, 0], sizes = [8, 2], strides = [1, 1]} : vector<72x2xf32> to vector<8x2xf32>
    %cst_52 = arith.constant dense<0.000000e+00> : vector<1x2xf32>
    %144 = tpu.matmul %142, %143, %cst_52 {dimension_numbers = #tpu.dot_dimension_numbers<[1], [0], [0], [1], [0, 0, 1, 1], [], []>} : vector<1x8xf32>, vector<8x2xf32>, vector<1x2xf32> -> vector<1x2xf32>
    %145 = arith.addf %141, %144 : vector<1x2xf32>
    %146 = vector.extract_strided_slice %135 {offsets = [2, 0], sizes = [1, 8], strides = [1, 1]} : vector<83x8xf32> to vector<1x8xf32>
    %147 = vector.extract_strided_slice %136 {offsets = [16, 0], sizes = [8, 2], strides = [1, 1]} : vector<72x2xf32> to vector<8x2xf32>
    %cst_53 = arith.constant dense<0.000000e+00> : vector<1x2xf32>
    %148 = tpu.matmul %146, %147, %cst_53 {dimension_numbers = #tpu.dot_dimension_numbers<[1], [0], [0], [1], [0, 0, 1, 1], [], []>} : vector<1x8xf32>, vector<8x2xf32>, vector<1x2xf32> -> vector<1x2xf32>
    %149 = arith.addf %145, %148 : vector<1x2xf32>
    %150 = vector.extract_strided_slice %135 {offsets = [8, 0], sizes = [1, 8], strides = [1, 1]} : vector<83x8xf32> to vector<1x8xf32>
    %151 = vector.extract_strided_slice %136 {offsets = [24, 0], sizes = [8, 2], strides = [1, 1]} : vector<72x2xf32> to vector<8x2xf32>
    %cst_54 = arith.constant dense<0.000000e+00> : vector<1x2xf32>
    %152 = tpu.matmul %150, %151, %cst_54 {dimension_numbers = #tpu.dot_dimension_numbers<[1], [0], [0], [1], [0, 0, 1, 1], [], []>} : vector<1x8xf32>, vector<8x2xf32>, vector<1x2xf32> -> vector<1x2xf32>
    %153 = arith.addf %149, %152 : vector<1x2xf32>
    %154 = vector.extract_strided_slice %135 {offsets = [9, 0], sizes = [1, 8], strides = [1, 1]} : vector<83x8xf32> to vector<1x8xf32>
    %155 = vector.extract_strided_slice %136 {offsets = [32, 0], sizes = [8, 2], strides = [1, 1]} : vector<72x2xf32> to vector<8x2xf32>
    %cst_55 = arith.constant dense<0.000000e+00> : vector<1x2xf32>
    %156 = tpu.matmul %154, %155, %cst_55 {dimension_numbers = #tpu.dot_dimension_numbers<[1], [0], [0], [1], [0, 0, 1, 1], [], []>} : vector<1x8xf32>, vector<8x2xf32>, vector<1x2xf32> -> vector<1x2xf32>
    %157 = arith.addf %153, %156 : vector<1x2xf32>
    %158 = vector.extract_strided_slice %135 {offsets = [10, 0], sizes = [1, 8], strides = [1, 1]} : vector<83x8xf32> to vector<1x8xf32>
    %159 = vector.extract_strided_slice %136 {offsets = [40, 0], sizes = [8, 2], strides = [1, 1]} : vector<72x2xf32> to vector<8x2xf32>
    %cst_56 = arith.constant dense<0.000000e+00> : vector<1x2xf32>
    %160 = tpu.matmul %158, %159, %cst_56 {dimension_numbers = #tpu.dot_dimension_numbers<[1], [0], [0], [1], [0, 0, 1, 1], [], []>} : vector<1x8xf32>, vector<8x2xf32>, vector<1x2xf32> -> vector<1x2xf32>
    %161 = arith.addf %157, %160 : vector<1x2xf32>
    %162 = vector.extract_strided_slice %135 {offsets = [16, 0], sizes = [1, 8], strides = [1, 1]} : vector<83x8xf32> to vector<1x8xf32>
    %163 = vector.extract_strided_slice %136 {offsets = [48, 0], sizes = [8, 2], strides = [1, 1]} : vector<72x2xf32> to vector<8x2xf32>
    %cst_57 = arith.constant dense<0.000000e+00> : vector<1x2xf32>
    %164 = tpu.matmul %162, %163, %cst_57 {dimension_numbers = #tpu.dot_dimension_numbers<[1], [0], [0], [1], [0, 0, 1, 1], [], []>} : vector<1x8xf32>, vector<8x2xf32>, vector<1x2xf32> -> vector<1x2xf32>
    %165 = arith.addf %161, %164 : vector<1x2xf32>
    %166 = vector.extract_strided_slice %135 {offsets = [17, 0], sizes = [1, 8], strides = [1, 1]} : vector<83x8xf32> to vector<1x8xf32>
    %167 = vector.extract_strided_slice %136 {offsets = [56, 0], sizes = [8, 2], strides = [1, 1]} : vector<72x2xf32> to vector<8x2xf32>
    %cst_58 = arith.constant dense<0.000000e+00> : vector<1x2xf32>
    %168 = tpu.matmul %166, %167, %cst_58 {dimension_numbers = #tpu.dot_dimension_numbers<[1], [0], [0], [1], [0, 0, 1, 1], [], []>} : vector<1x8xf32>, vector<8x2xf32>, vector<1x2xf32> -> vector<1x2xf32>
    %169 = arith.addf %165, %168 : vector<1x2xf32>
    %170 = vector.extract_strided_slice %135 {offsets = [18, 0], sizes = [1, 8], strides = [1, 1]} : vector<83x8xf32> to vector<1x8xf32>
    %171 = vector.extract_strided_slice %136 {offsets = [64, 0], sizes = [8, 2], strides = [1, 1]} : vector<72x2xf32> to vector<8x2xf32>
    %cst_59 = arith.constant dense<0.000000e+00> : vector<1x2xf32>
    %172 = tpu.matmul %170, %171, %cst_59 {dimension_numbers = #tpu.dot_dimension_numbers<[1], [0], [0], [1], [0, 0, 1, 1], [], []>} : vector<1x8xf32>, vector<8x2xf32>, vector<1x2xf32> -> vector<1x2xf32>
    %173 = arith.addf %169, %172 : vector<1x2xf32>
    %cst_60 = arith.constant dense<0xFF800000> : vector<1xf32>
    %174 = vector.multi_reduction <maximumf>, %173, %cst_60 [1] : vector<1x2xf32> to vector<1xf32>
    %175 = vector.shape_cast %174 : vector<1xf32> to vector<1x1xf32>
    %176 = vector.broadcast %175 : vector<1x1xf32> to vector<1x2xf32>
    %177 = arith.subf %173, %176 : vector<1x2xf32>
    %178 = math.exp %177 : vector<1x2xf32>
    %cst_61 = arith.constant dense<0.000000e+00> : vector<1xf32>
    %179 = vector.multi_reduction <add>, %178, %cst_61 [1] : vector<1x2xf32> to vector<1xf32>
    %180 = vector.shape_cast %179 : vector<1xf32> to vector<1x1xf32>
    %181 = math.log %180 : vector<1x1xf32>
    %182 = arith.addf %175, %181 : vector<1x1xf32>
    %183 = vector.broadcast %182 : vector<1x1xf32> to vector<1x2xf32>
    %184 = arith.subf %173, %183 : vector<1x2xf32>
    %c0_62 = arith.constant 0 : index
    %c0_63 = arith.constant 0 : index
    %185 = vector.load %arg12[%c0_62, %c0_63] : memref<2x2xf32, #tpu.memory_space<vmem>>, vector<1x2xf32>
    tpu.vector_store %arg12[%c0_62, %c0_63], %184 {strides = array<i32>} : memref<2x2xf32, #tpu.memory_space<vmem>>, vector<1x2xf32>,
    %186 = vector.extract_strided_slice %135 {offsets = [64, 0], sizes = [1, 8], strides = [1, 1]} : vector<83x8xf32> to vector<1x8xf32>
    %187 = vector.extract_strided_slice %136 {offsets = [0, 0], sizes = [8, 2], strides = [1, 1]} : vector<72x2xf32> to vector<8x2xf32>
    %cst_64 = arith.constant dense<0.000000e+00> : vector<1x2xf32>
    %188 = tpu.matmul %186, %187, %cst_64 {dimension_numbers = #tpu.dot_dimension_numbers<[1], [0], [0], [1], [0, 0, 1, 1], [], []>} : vector<1x8xf32>, vector<8x2xf32>, vector<1x2xf32> -> vector<1x2xf32>
    %189 = arith.addf %137, %188 : vector<1x2xf32>
    %190 = vector.extract_strided_slice %135 {offsets = [65, 0], sizes = [1, 8], strides = [1, 1]} : vector<83x8xf32> to vector<1x8xf32>
    %191 = vector.extract_strided_slice %136 {offsets = [8, 0], sizes = [8, 2], strides = [1, 1]} : vector<72x2xf32> to vector<8x2xf32>
    %cst_65 = arith.constant dense<0.000000e+00> : vector<1x2xf32>
    %192 = tpu.matmul %190, %191, %cst_65 {dimension_numbers = #tpu.dot_dimension_numbers<[1], [0], [0], [1], [0, 0, 1, 1], [], []>} : vector<1x8xf32>, vector<8x2xf32>, vector<1x2xf32> -> vector<1x2xf32>
    %193 = arith.addf %189, %192 : vector<1x2xf32>
    %194 = vector.extract_strided_slice %135 {offsets = [66, 0], sizes = [1, 8], strides = [1, 1]} : vector<83x8xf32> to vector<1x8xf32>
    %195 = vector.extract_strided_slice %136 {offsets = [16, 0], sizes = [8, 2], strides = [1, 1]} : vector<72x2xf32> to vector<8x2xf32>
    %cst_66 = arith.constant dense<0.000000e+00> : vector<1x2xf32>
    %196 = tpu.matmul %194, %195, %cst_66 {dimension_numbers = #tpu.dot_dimension_numbers<[1], [0], [0], [1], [0, 0, 1, 1], [], []>} : vector<1x8xf32>, vector<8x2xf32>, vector<1x2xf32> -> vector<1x2xf32>
    %197 = arith.addf %193, %196 : vector<1x2xf32>
    %198 = vector.extract_strided_slice %135 {offsets = [72, 0], sizes = [1, 8], strides = [1, 1]} : vector<83x8xf32> to vector<1x8xf32>
    %199 = vector.extract_strided_slice %136 {offsets = [24, 0], sizes = [8, 2], strides = [1, 1]} : vector<72x2xf32> to vector<8x2xf32>
    %cst_67 = arith.constant dense<0.000000e+00> : vector<1x2xf32>
    %200 = tpu.matmul %198, %199, %cst_67 {dimension_numbers = #tpu.dot_dimension_numbers<[1], [0], [0], [1], [0, 0, 1, 1], [], []>} : vector<1x8xf32>, vector<8x2xf32>, vector<1x2xf32> -> vector<1x2xf32>
    %201 = arith.addf %197, %200 : vector<1x2xf32>
    %202 = vector.extract_strided_slice %135 {offsets = [73, 0], sizes = [1, 8], strides = [1, 1]} : vector<83x8xf32> to vector<1x8xf32>
    %203 = vector.extract_strided_slice %136 {offsets = [32, 0], sizes = [8, 2], strides = [1, 1]} : vector<72x2xf32> to vector<8x2xf32>
    %cst_68 = arith.constant dense<0.000000e+00> : vector<1x2xf32>
    %204 = tpu.matmul %202, %203, %cst_68 {dimension_numbers = #tpu.dot_dimension_numbers<[1], [0], [0], [1], [0, 0, 1, 1], [], []>} : vector<1x8xf32>, vector<8x2xf32>, vector<1x2xf32> -> vector<1x2xf32>
    %205 = arith.addf %201, %204 : vector<1x2xf32>
    %206 = vector.extract_strided_slice %135 {offsets = [74, 0], sizes = [1, 8], strides = [1, 1]} : vector<83x8xf32> to vector<1x8xf32>
    %207 = vector.extract_strided_slice %136 {offsets = [40, 0], sizes = [8, 2], strides = [1, 1]} : vector<72x2xf32> to vector<8x2xf32>
    %cst_69 = arith.constant dense<0.000000e+00> : vector<1x2xf32>
    %208 = tpu.matmul %206, %207, %cst_69 {dimension_numbers = #tpu.dot_dimension_numbers<[1], [0], [0], [1], [0, 0, 1, 1], [], []>} : vector<1x8xf32>, vector<8x2xf32>, vector<1x2xf32> -> vector<1x2xf32>
    %209 = arith.addf %205, %208 : vector<1x2xf32>
    %210 = vector.extract_strided_slice %135 {offsets = [80, 0], sizes = [1, 8], strides = [1, 1]} : vector<83x8xf32> to vector<1x8xf32>
    %211 = vector.extract_strided_slice %136 {offsets = [48, 0], sizes = [8, 2], strides = [1, 1]} : vector<72x2xf32> to vector<8x2xf32>
    %cst_70 = arith.constant dense<0.000000e+00> : vector<1x2xf32>
    %212 = tpu.matmul %210, %211, %cst_70 {dimension_numbers = #tpu.dot_dimension_numbers<[1], [0], [0], [1], [0, 0, 1, 1], [], []>} : vector<1x8xf32>, vector<8x2xf32>, vector<1x2xf32> -> vector<1x2xf32>
    %213 = arith.addf %209, %212 : vector<1x2xf32>
    %214 = vector.extract_strided_slice %135 {offsets = [81, 0], sizes = [1, 8], strides = [1, 1]} : vector<83x8xf32> to vector<1x8xf32>
    %215 = vector.extract_strided_slice %136 {offsets = [56, 0], sizes = [8, 2], strides = [1, 1]} : vector<72x2xf32> to vector<8x2xf32>
    %cst_71 = arith.constant dense<0.000000e+00> : vector<1x2xf32>
    %216 = tpu.matmul %214, %215, %cst_71 {dimension_numbers = #tpu.dot_dimension_numbers<[1], [0], [0], [1], [0, 0, 1, 1], [], []>} : vector<1x8xf32>, vector<8x2xf32>, vector<1x2xf32> -> vector<1x2xf32>
    %217 = arith.addf %213, %216 : vector<1x2xf32>
    %218 = vector.extract_strided_slice %135 {offsets = [82, 0], sizes = [1, 8], strides = [1, 1]} : vector<83x8xf32> to vector<1x8xf32>
    %219 = vector.extract_strided_slice %136 {offsets = [64, 0], sizes = [8, 2], strides = [1, 1]} : vector<72x2xf32> to vector<8x2xf32>
    %cst_72 = arith.constant dense<0.000000e+00> : vector<1x2xf32>
    %220 = tpu.matmul %218, %219, %cst_72 {dimension_numbers = #tpu.dot_dimension_numbers<[1], [0], [0], [1], [0, 0, 1, 1], [], []>} : vector<1x8xf32>, vector<8x2xf32>, vector<1x2xf32> -> vector<1x2xf32>
    %221 = arith.addf %217, %220 : vector<1x2xf32>
    %cst_73 = arith.constant dense<0xFF800000> : vector<1xf32>
    %222 = vector.multi_reduction <maximumf>, %221, %cst_73 [1] : vector<1x2xf32> to vector<1xf32>
    %223 = vector.shape_cast %222 : vector<1xf32> to vector<1x1xf32>
    %224 = vector.broadcast %223 : vector<1x1xf32> to vector<1x2xf32>
    %225 = arith.subf %221, %224 : vector<1x2xf32>
    %226 = math.exp %225 : vector<1x2xf32>
    %cst_74 = arith.constant dense<0.000000e+00> : vector<1xf32>
    %227 = vector.multi_reduction <add>, %226, %cst_74 [1] : vector<1x2xf32> to vector<1xf32>
    %228 = vector.shape_cast %227 : vector<1xf32> to vector<1x1xf32>
    %229 = math.log %228 : vector<1x1xf32>
    %230 = arith.addf %223, %229 : vector<1x1xf32>
    %231 = vector.broadcast %230 : vector<1x1xf32> to vector<1x2xf32>
    %232 = arith.subf %221, %231 : vector<1x2xf32>
    %c1 = arith.constant 1 : index
    %c0_75 = arith.constant 0 : index
    %233 = vector.load %arg12[%c1, %c0_75] : memref<2x2xf32, #tpu.memory_space<vmem>>, vector<1x2xf32>
    tpu.vector_store %arg12[%c1, %c0_75], %232 {strides = array<i32>} : memref<2x2xf32, #tpu.memory_space<vmem>>, vector<1x2xf32>,
    return
  }
  func.func @transform_0(%arg0: i32) -> (i32, i32) {
    %c0_i32 = arith.constant 0 : i32
    %c0_i32_0 = arith.constant 0 : i32
    %c0_i32_1 = arith.constant 0 : i32
    return %c0_i32, %c0_i32_0 : i32, i32
  }
  func.func @transform_1(%arg0: i32) -> (i32, i32) {
    %c0_i32 = arith.constant 0 : i32
    %c0_i32_0 = arith.constant 0 : i32
    %c0_i32_1 = arith.constant 0 : i32
    return %c0_i32, %c0_i32_0 : i32, i32
  }
  func.func @transform_2(%arg0: i32) -> (i32, i32) {
    %c0_i32 = arith.constant 0 : i32
    %c0_i32_0 = arith.constant 0 : i32
    %c0_i32_1 = arith.constant 0 : i32
    return %c0_i32, %c0_i32_0 : i32, i32
  }
  func.func @transform_3(%arg0: i32) -> (i32, i32) {
    %c0_i32 = arith.constant 0 : i32
    %c0_i32_0 = arith.constant 0 : i32
    %c0_i32_1 = arith.constant 0 : i32
    return %c0_i32, %c0_i32_0 : i32, i32
  }
  func.func @transform_4(%arg0: i32) -> (i32, i32) {
    %c0_i32 = arith.constant 0 : i32
    %c0_i32_0 = arith.constant 0 : i32
    %c0_i32_1 = arith.constant 0 : i32
    return %c0_i32, %c0_i32_0 : i32, i32
  }
  func.func @transform_5(%arg0: i32) -> (i32, i32) {
    %c0_i32 = arith.constant 0 : i32
    %c0_i32_0 = arith.constant 0 : i32
    %c0_i32_1 = arith.constant 0 : i32
    return %c0_i32, %c0_i32_0 : i32, i32
  }
  func.func @transform_6(%arg0: i32) -> (i32, i32) {
    %c0_i32 = arith.constant 0 : i32
    %c0_i32_0 = arith.constant 0 : i32
    %c0_i32_1 = arith.constant 0 : i32
    return %c0_i32, %c0_i32_0 : i32, i32
  }
  func.func @transform_7(%arg0: i32) -> (i32, i32) {
    %c0_i32 = arith.constant 0 : i32
    %c0_i32_0 = arith.constant 0 : i32
    %c0_i32_1 = arith.constant 0 : i32
    return %c0_i32, %c0_i32_0 : i32, i32
  }
  func.func @transform_8(%arg0: i32) -> (i32, i32) {
    %c0_i32 = arith.constant 0 : i32
    %c0_i32_0 = arith.constant 0 : i32
    %c0_i32_1 = arith.constant 0 : i32
    return %c0_i32, %c0_i32_0 : i32, i32
  }
  func.func @transform_9(%arg0: i32) -> (i32, i32) {
    %c0_i32 = arith.constant 0 : i32
    %c0_i32_0 = arith.constant 0 : i32
    %c0_i32_1 = arith.constant 0 : i32
    return %c0_i32, %c0_i32_0 : i32, i32
  }
  func.func @transform_10(%arg0: i32) -> (i32, i32) {
    %c0_i32 = arith.constant 0 : i32
    %c0_i32_0 = arith.constant 0 : i32
    %c0_i32_1 = arith.constant 0 : i32
    return %c0_i32, %c0_i32_0 : i32, i32
  }
  func.func @transform_11(%arg0: i32) -> (i32, i32) {
    %c0_i32 = arith.constant 0 : i32
    %c0_i32_0 = arith.constant 0 : i32
    %c0_i32_1 = arith.constant 0 : i32
    return %c0_i32, %c0_i32_0 : i32, i32
  }
}

module attributes {stable_mosaic.version = 11 : i64} {
  func.func @_rank_head_kernel(%arg0: i32, %arg1: i32, %arg2: memref<4x256xf32, #tpu.memory_space<vmem>>, %arg3: memref<256x512xbf16, #tpu.memory_space<vmem>>, %arg4: memref<1x512xf32, #tpu.memory_space<vmem>>, %arg5: memref<1x512xf32, #tpu.memory_space<vmem>>, %arg6: memref<1x4x1xf32, #tpu.memory_space<vmem>>, %arg7: memref<4x1xf32, #tpu.memory_space<vmem>>) attributes {dimension_semantics = [#tpu.dimension_semantics<parallel>, #tpu.dimension_semantics<arbitrary>], iteration_bounds = array<i64: 2, 4>, scalar_prefetch = 0 : i64, scratch_operands = 1 : i64, tpu.core_type = #tpu.core_type<tc>, window_params = [{pipeline_mode = #tpu.pipeline_mode<synchronous>, transform_indices = @transform_0, window_bounds = array<i64: 4, 256>}, {transform_indices = @transform_1, window_bounds = array<i64: 256, 512>}, {transform_indices = @transform_2, window_bounds = array<i64: 1, 512>}, {transform_indices = @transform_3, window_bounds = array<i64: 1, 512>}, {transform_indices = @transform_4, window_bounds = array<i64: 1, 4, 1>}]} {
    %c0_i32 = arith.constant 0 : i32
    %0 = arith.cmpi eq, %arg1, %c0_i32 : i32
    %1 = arith.extui %0 : i1 to i32
    %c0_i32_0 = arith.constant 0 : i32
    %2 = arith.cmpi ne, %1, %c0_i32_0 : i32
    scf.if %2 {
      %cst_15 = arith.constant 0.000000e+00 : f32
      %23 = vector.broadcast %cst_15 : f32 to vector<4x1xf32>
      %c0_16 = arith.constant 0 : index
      %c0_17 = arith.constant 0 : index
      %24 = vector.load %arg7[%c0_16, %c0_17] : memref<4x1xf32, #tpu.memory_space<vmem>>, vector<4x1xf32>
      tpu.vector_store %arg7[%c0_16, %c0_17], %23 {strides = array<i32>} : memref<4x1xf32, #tpu.memory_space<vmem>>, vector<4x1xf32>,
    } else {
    }
    %c0 = arith.constant 0 : index
    %c0_1 = arith.constant 0 : index
    %3 = vector.load %arg2[%c0, %c0_1] : memref<4x256xf32, #tpu.memory_space<vmem>>, vector<4x256xf32>
    %4 = arith.truncf %3 : vector<4x256xf32> to vector<4x256xbf16>
    %c0_2 = arith.constant 0 : index
    %c0_3 = arith.constant 0 : index
    %5 = vector.load %arg3[%c0_2, %c0_3] : memref<256x512xbf16, #tpu.memory_space<vmem>>, vector<256x512xbf16>
    %cst = arith.constant dense<0.000000e+00> : vector<4x512xf32>
    %6 = tpu.matmul %4, %5, %cst {dimension_numbers = #tpu.dot_dimension_numbers<[1], [0], [0], [1], [0, 0, 1, 1], [], []>} : vector<4x256xbf16>, vector<256x512xbf16>, vector<4x512xf32> -> vector<4x512xf32>
    %c0_4 = arith.constant 0 : index
    %c0_5 = arith.constant 0 : index
    %7 = vector.load %arg4[%c0_4, %c0_5] : memref<1x512xf32, #tpu.memory_space<vmem>>, vector<1x512xf32>
    %8 = vector.broadcast %7 : vector<1x512xf32> to vector<4x512xf32>
    %9 = arith.addf %6, %8 : vector<4x512xf32>
    %cst_6 = arith.constant 0.000000e+00 : f32
    %10 = vector.broadcast %cst_6 : f32 to vector<4x512xf32>
    %11 = arith.maximumf %9, %10 : vector<4x512xf32>
    %c0_7 = arith.constant 0 : index
    %c0_8 = arith.constant 0 : index
    %12 = vector.load %arg7[%c0_7, %c0_8] : memref<4x1xf32, #tpu.memory_space<vmem>>, vector<4x1xf32>
    %c0_9 = arith.constant 0 : index
    %c0_10 = arith.constant 0 : index
    %13 = vector.load %arg5[%c0_9, %c0_10] : memref<1x512xf32, #tpu.memory_space<vmem>>, vector<1x512xf32>
    %14 = vector.broadcast %13 : vector<1x512xf32> to vector<4x512xf32>
    %15 = arith.mulf %11, %14 : vector<4x512xf32>
    %cst_11 = arith.constant dense<0.000000e+00> : vector<4xf32>
    %16 = vector.multi_reduction <add>, %15, %cst_11 [1] : vector<4x512xf32> to vector<4xf32>
    %17 = vector.shape_cast %16 : vector<4xf32> to vector<4x1xf32>
    %18 = arith.addf %12, %17 : vector<4x1xf32>
    %c0_12 = arith.constant 0 : index
    %c0_13 = arith.constant 0 : index
    %19 = vector.load %arg7[%c0_12, %c0_13] : memref<4x1xf32, #tpu.memory_space<vmem>>, vector<4x1xf32>
    tpu.vector_store %arg7[%c0_12, %c0_13], %18 {strides = array<i32>} : memref<4x1xf32, #tpu.memory_space<vmem>>, vector<4x1xf32>,
    %c3_i32 = arith.constant 3 : i32
    %20 = arith.cmpi eq, %arg1, %c3_i32 : i32
    %21 = arith.extui %20 : i1 to i32
    %c0_i32_14 = arith.constant 0 : i32
    %22 = arith.cmpi ne, %21, %c0_i32_14 : i32
    scf.if %22 {
      %c0_15 = arith.constant 0 : index
      %c0_16 = arith.constant 0 : index
      %23 = vector.load %arg7[%c0_15, %c0_16] : memref<4x1xf32, #tpu.memory_space<vmem>>, vector<4x1xf32>
      %24 = vector.shape_cast %23 : vector<4x1xf32> to vector<1x4x1xf32>
      %c0_17 = arith.constant 0 : index
      %c0_18 = arith.constant 0 : index
      %c0_19 = arith.constant 0 : index
      %25 = vector.load %arg6[%c0_17, %c0_18, %c0_19] : memref<1x4x1xf32, #tpu.memory_space<vmem>>, vector<1x4x1xf32>
      tpu.vector_store %arg6[%c0_17, %c0_18, %c0_19], %24 {strides = array<i32>} : memref<1x4x1xf32, #tpu.memory_space<vmem>>, vector<1x4x1xf32>,
    } else {
    }
    return
  }
  func.func @transform_0(%arg0: i32, %arg1: i32) -> (i32, i32) {
    %c0_i32 = arith.constant 0 : i32
    %c0_i32_0 = arith.constant 0 : i32
    %c0_i32_1 = arith.constant 0 : i32
    return %c0_i32, %c0_i32_0 : i32, i32
  }
  func.func @transform_1(%arg0: i32, %arg1: i32) -> (i32, i32) {
    %c4_i32 = arith.constant 4 : i32
    %0 = arith.muli %arg0, %c4_i32 : i32
    %1 = arith.addi %0, %arg1 : i32
    %c0_i32 = arith.constant 0 : i32
    %c0_i32_0 = arith.constant 0 : i32
    return %c0_i32, %1 : i32, i32
  }
  func.func @transform_2(%arg0: i32, %arg1: i32) -> (i32, i32) {
    %c4_i32 = arith.constant 4 : i32
    %0 = arith.muli %arg0, %c4_i32 : i32
    %1 = arith.addi %0, %arg1 : i32
    %c0_i32 = arith.constant 0 : i32
    %c0_i32_0 = arith.constant 0 : i32
    return %c0_i32, %1 : i32, i32
  }
  func.func @transform_3(%arg0: i32, %arg1: i32) -> (i32, i32) {
    %c4_i32 = arith.constant 4 : i32
    %0 = arith.muli %arg0, %c4_i32 : i32
    %1 = arith.addi %0, %arg1 : i32
    %c0_i32 = arith.constant 0 : i32
    %c0_i32_0 = arith.constant 0 : i32
    return %c0_i32, %1 : i32, i32
  }
  func.func @transform_4(%arg0: i32, %arg1: i32) -> (i32, i32, i32) {
    %c0_i32 = arith.constant 0 : i32
    %c0_i32_0 = arith.constant 0 : i32
    %c0_i32_1 = arith.constant 0 : i32
    return %arg0, %c0_i32, %c0_i32_0 : i32, i32, i32
  }
}

</mosaic_0001>

<bundles_post_ra>
// kernel: rsscnn_forward.3
= control target key start
LH: loop header
LB: loop body
LE: loop exit
PB: predicated region body
PF: predicated region fallthrough
CT: control target
= control target key end

     0   :  { %s4478_s12 = smov 0   ;;  %s5726_s0 = inlined_call_operand.vmem [shape: f32[4,18,18,3], index: 0, kind: input, shape index: {}]   ;;  %s5727_s1 = inlined_call_operand.vmem [shape: f32[27,4], index: 1, kind: input, shape index: {}]   ;;  %s5728_s2 = inlined_call_operand.vmem [shape: f32[1,4], index: 2, kind: input, shape index: {}]   ;;  %s5729_s3 = inlined_call_operand.vmem [shape: f32[1024,4], index: 3, kind: output, shape index: {}]  }
   0x1 LB: > { %s4484_s13 = sadd.s32 4294967295, %s4456_s12   ;;  %p3132_p0 = scmp.ge.s32.totalorder %s4456_s12, 1  ;;  %s4456_s12 = sphi %s4478_s12, %s13_s12  }
   0x2   : > { %p137_p1 = scmp.lt.s32.totalorder %s4456_s12, 5 }
   0x4   : > { %p138_p2 = pnand %p3132_p0, %p137_p1 }
   0x6   : > { %141 = sbr.rel (%p138_p2) target bundleno = 530 (0x212), region = 32 }
   0xd   : > { %v4491_v0 = vld [vmem:[%s5727_s1] sm:$0xff]  ;;  %vm426_vm0 = vcmask 1042432   ;;  %v4496_v1 = vld [vmem:[%s5727_s1 + $0x8] sm:$0xff]  ;;  %p161_p3 = scmp.lt.s32.totalorder %s4484_s13, 3  ;;  %v4506_v4 = vld [vmem:[%s5727_s1 + $0x10] sm:$0xff]  ;;  %vm1896_vm1 = vcmask 1040384  }
   0xe   : > { %v360_v2 = vrot.slane %v4491_v0, 3  ;;  %v4501_v3 = vrot.slane %v4496_v1, 4  ;;  %v1897_v5 = vrot.slane %v4496_v1, 7  ;;  %v1898_v6 = vrot.slane %v4506_v4, 7  ;;  %s3134_s27 = sshll.u32 %s4484_s13, 5 }
   0xf   : > { %s162_s20 = scalar_select %p161_p3, %s4484_s13, 3  ;;  %vm278_vm2 = vcmask 1046528   ;;  %vm361_vm3 = vcmask 23552   ;;  %v5730_v11 = vrot.slane %v4506_v4, 2  ;;  %v1028_v12 = vrot.slane %v4491_v0, 6 }
  0x10   : > { %3733 = vmatprep.subr.msk.mxu1 %vm426_vm0, %v360_v2  ;;  %3933 = vmatprep.subr.msk.mxu0 %vm426_vm0, %v4501_v3  ;;  %v1899_v7 = vsel %vm1896_vm1, %v1897_v5, %v1898_v6  ;;  %v1029_v22 = vrot.slane %v4496_v1, 6  ;;  %vm1027_vm4 = vcmask 1041408   ;;  %vm945_vm5 = vcmask 1045504   ;;  %p167_p4 = scmp.lt.s32.totalorder %s3134_s27, 127 }
  0x11   : > { %3734 = vmatpush3.msk.msra.mxu1 %vm426_vm0, %v360_v2  ;;  %3934 = vmatpush3.msk.msra.mxu0 %vm426_vm0, %v4501_v3  ;;  %s4441_s21 = smul.u32 432, %s162_s20  ;;  %vm3039_vm6 = vcmask 31744  }
  0x12   : > { %3783 = vmatprep.subr.msk.mxu1 %vm426_vm0, %v4491_v0  ;;  %3983 = vmatprep.subr.msk.mxu0 %vm426_vm0, %v1899_v7  ;;  %v4595_v41 = vsel %vm1027_vm4, %v1028_v12, %v1029_v22  ;;  %s5911_s27 = smov (!%p167_p4, %s3134_s27), 127 }
  0x13   : > { %s4523_s24 = scalar_lea.vmem %s5726_s0, %s4441_s21  ;;  %s3135_s30 = sshll.u32 %s5911_s27, 3 }
  0x14   : > { %v4526_v8 = vld [vmem:[%s4523_s24] sm:$0xff]  ;;  %v4529_v9 = vld [vmem:[%s4523_s24 + $0x8] sm:$0xff]  ;;  %v4532_v10 = vld [vmem:[%s4523_s24 + $0x18] sm:$0xff]  ;;  %s5621_s6 = scalar_lea.vmem %s5729_s3, %s3135_s30 }
  0x15   : > { %5805 = vst [vmem:[#allocation2_spill] sm:$0xff] %v4532_v10  ;;  %v279_v13 = vrot.slane %v4526_v8, 1  ;;  %v280_v14 = vrot.slane %v4529_v9, 1  ;;  %v4539_v15 = vld [vmem:[%s4523_s24 + $0x20] sm:$0xff]  ;;  %v284_v16 = vrot.slane %v4532_v10, 1  ;;  %v4551_v21 = vld [vmem:[%s4523_s24 + $0x30] sm:$0xff] }
  0x16   : > { %5806 = vst [vmem:[#allocation3_spill] sm:$0xff] %v4539_v15  ;;  %v4543_v17 = vld [vmem:[%s4523_s24 + $0x10] sm:$0x3]  ;;  %v285_v18 = vrot.slane %v4539_v15, 1  ;;  %v4548_v20 = vld [vmem:[%s4523_s24 + $0x28] sm:$0x3] }
  0x17   : > { %v282_v19 = vrot.slane %v4543_v17, 1  ;;  %v281_v23 = vsel %vm278_vm2, %v279_v13, %v280_v14  ;;  %v287_v24 = vrot.slane %v4548_v20, 1  ;;  %v4557_v25 = vld [vmem:[%s4523_s24 + $0x38] sm:$0xff]  ;;  %v289_v26 = vrot.slane %v4551_v21, 1  ;;  %v4561_v27 = vld [vmem:[%s4523_s24 + $0x40] sm:$0x3] }
  0x18   : > { %3735 = vmatprep.mubr.msk.f32.mxu1 %vm361_vm3, %v281_v23  ;;  %v286_v28 = vsel %vm278_vm2, %v284_v16, %v285_v18  ;;  %v290_v30 = vrot.slane %v4557_v25, 1  ;;  %v292_v31 = vrot.slane %v4561_v27, 1  ;;  %v4569_v32 = vld [vmem:[%s4523_s24 + $0x48] sm:$0xff]  ;;  %v4572_v33 = vld [vmem:[%s4523_s24 + $0x50] sm:$0xff]  ;;  %v4575_v34 = vld [vmem:[%s4523_s24 + $0x58] sm:$0x3] }
  0x19   : > { %v283_v29 = vsel %vm278_vm2, %v280_v14, %v282_v19  ;;  %3935 = vmatprep.mubr.msk.f32.mxu0 %vm361_vm3, %v286_v28  ;;  %v288_v35 = vsel %vm278_vm2, %v285_v18, %v287_v24  ;;  %v294_v36 = vrot.slane %v4569_v32, 1  ;;  %v295_v37 = vrot.slane %v4572_v33, 1  ;;  %v4583_v38 = vld [vmem:[%s4523_s24 + $0x60] sm:$0xff]  ;;  %v4586_v39 = vld [vmem:[%s4523_s24 + $0x68] sm:$0xff]  ;;  %v4611_v47 = vld [vmem:[%s4523_s24 + $0x70] sm:$0x3] }
  0x1a   : > { %3736 = vmatmul.mubr.msk.f32.vlgmr.msra.gmra.mrb[0].mxu1 %vm361_vm3, %v283_v29  ;;  %3936 = vmatmul.mubr.msk.f32.vlgmr.msra.gmra.mrb[0].mxu0 %vm361_vm3, %v288_v35  ;;  %v4592_v40 = vsel %vm278_vm2, %v289_v26, %v290_v30  ;;  %v4600_v42 = vsel %vm278_vm2, %v290_v30, %v292_v31  ;;  %v297_v43 = vrot.slane %v4575_v34, 1  ;;  %v299_v45 = vrot.slane %v4583_v38, 1  ;;  %v4618_v48 = vld [vmem:[%s4523_s24 + $0x78] sm:$0xff]  ;;  %v4621_v49 = vld [vmem:[%s4523_s24 + $0x80] sm:$0xff]  ;;  %v4641_v55 = vld [vmem:[%s4523_s24 + $0x88] sm:$0x3] }
  0x1b   : > { %3784 = vmatpush3.msk.msra.mxu1 %vm426_vm0, %v4491_v0  ;;  %5807 = vst [vmem:[#allocation4_spill] sm:$0xff] %v4592_v40  ;;  %3984 = vmatpush3.msk.msra.mxu0 %vm426_vm0, %v1899_v7  ;;  %5808 = vst [vmem:[#allocation5_spill] sm:$0xff] %v4600_v42  ;;  %v4606_v44 = vsel %vm278_vm2, %v294_v36, %v295_v37  ;;  %v300_v46 = vrot.slane %v4586_v39, 1  ;;  %v302_v51 = vrot.slane %v4611_v47, 1  ;;  %v304_v53 = vrot.slane %v4618_v48, 1  ;;  %v4646_v56 = vld [vmem:[%s4523_s24 + $0x90] sm:$0xff] }
  0x1c   : > { %3738 = vmatprep.mubr.msk.f32.mxu1 %vm361_vm3, %v286_v28  ;;  %3938 = vmatprep.mubr.msk.f32.mxu0 %vm361_vm3, %v4592_v40  ;;  %5809 = vst [vmem:[#allocation6_spill] sm:$0xff] %v4606_v44  ;;  %v4632_v50 = vsel %vm278_vm2, %v295_v37, %v297_v43  ;;  %v305_v54 = vrot.slane %v4621_v49, 1  ;;  %v4649_v57 = vld [vmem:[%s4523_s24 + $0x98] sm:$0xff]  ;;  %v307_v59 = vrot.slane %v4641_v55, 1  ;;  %v309_v61 = vrot.slane %v4646_v56, 1  ;;  %v4672_v0 = vld [vmem:[%s4523_s24 + $0xa8] sm:$0xff] }
  0x1d   : > { %4033 = vmatprep.subr.msk.mxu0 %vm426_vm0, %v5730_v11  ;;  %3833 = vmatprep.subr.msk.mxu1 %vm426_vm0, %v4595_v41  ;;  %5810 = vst [vmem:[#allocation7_spill] sm:$0xff] %v4632_v50  ;;  %v4636_v52 = vsel %vm278_vm2, %v299_v45, %v300_v46  ;;  %v4658_v58 = vsel %vm278_vm2, %v300_v46, %v302_v51  ;;  %v310_v62 = vrot.slane %v4649_v57, 1  ;;  %v4667_v63 = vld [vmem:[%s4523_s24 + $0xa0] sm:$0x3]  ;;  %v4675_v2 = vld [vmem:[%s4523_s24 + $0xb0] sm:$0xff]  ;;  %v314_v12 = vrot.slane %v4672_v0, 1 }
  0x1e   : > { %3739 = vmatmul.mubr.msk.f32.gmra.mrb[2].mxu1 %vm361_vm3, %v288_v35  ;;  %3939 = vmatmul.mubr.msk.f32.gmra.mrb[2].mxu0 %vm361_vm3, %v4600_v42  ;;  %5811 = vst [vmem:[#allocation8_spill] sm:$0xff] %v4636_v52  ;;  %5812 = vst [vmem:[#allocation9_spill] sm:$0xff] %v4658_v58  ;;  %v4662_v60 = vsel %vm278_vm2, %v304_v53, %v305_v54  ;;  %v4684_v5 = vsel %vm278_vm2, %v305_v54, %v307_v59  ;;  %v312_v6 = vrot.slane %v4667_v63, 1  ;;  %v4693_v14 = vld [vmem:[%s4523_s24 + $0xb8] sm:$0x3]  ;;  %v4698_v16 = vld [vmem:[%s4523_s24 + $0xc0] sm:$0xff] }
  0x1f   : > { %3741 = vmatprep.mubr.msk.f32.mxu1 %vm361_vm3, %v4592_v40  ;;  %3941 = vmatprep.mubr.msk.f32.mxu0 %vm361_vm3, %v4606_v44  ;;  %5813 = vst [vmem:[#allocation10_spill] sm:$0xff] %v4662_v60  ;;  %5814 = vst [vmem:[#allocation11_spill] sm:$0xff] %v4684_v5  ;;  %v4688_v7 = vsel %vm278_vm2, %v309_v61, %v310_v62  ;;  %v315_v13 = vrot.slane %v4675_v2, 1  ;;  %v4701_v18 = vld [vmem:[%s4523_s24 + $0xc8] sm:$0xff]  ;;  %v317_v22 = vrot.slane %v4693_v14, 1  ;;  %v319_v24 = vrot.slane %v4698_v16, 1 }
  0x20   : > { %5815 = vst [vmem:[#allocation12_spill] sm:$0xff] %v4688_v7  ;;  %v4710_v19 = vsel %vm278_vm2, %v310_v62, %v312_v6  ;;  %v320_v26 = vrot.slane %v4701_v18, 1  ;;  %v4719_v28 = vld [vmem:[%s4523_s24 + $0xd0] sm:$0x3]  ;;  %v951_v35 = vrot.slane %v4532_v10, 2  ;;  %v952_v36 = vrot.slane %v4539_v15, 2 }
  0x21   : > { %5816 = vst [vmem:[#allocation13_spill] sm:$0xff] %v4710_v19  ;;  %v4714_v23 = vsel %vm278_vm2, %v314_v12, %v315_v13  ;;  %v4730_v29 = vsel %vm278_vm2, %v315_v13, %v317_v22  ;;  %v322_v30 = vrot.slane %v4719_v28, 1  ;;  %v4739_v37 = vld [vmem:[%s4523_s24 + $0xd8] sm:$0xff]  ;;  %v4742_v43 = vld [vmem:[%s4523_s24 + $0xe0] sm:$0xff]  ;;  %v954_v45 = vrot.slane %v4548_v20, 2  ;;  %v4767_v62 = vld [vmem:[%s4523_s24 + $0xf0] sm:$0xff] }
  0x22   : > { %3742 = vmatmul.mubr.msk.f32.gmra.mrb[4].mxu1 %vm361_vm3, %v4600_v42  ;;  %3942 = vmatmul.mubr.msk.f32.gmra.mrb[4].mxu0 %vm361_vm3, %v4632_v50  ;;  %5817 = vst [vmem:[#allocation14_spill] sm:$0xff] %v4714_v23  ;;  %5818 = vst [vmem:[#allocation15_spill] sm:$0xff] %v4730_v29  ;;  %v4734_v31 = vsel %vm278_vm2, %v319_v24, %v320_v26  ;;  %v324_v51 = vrot.slane %v4739_v37, 1  ;;  %v325_v53 = vrot.slane %v4742_v43, 1  ;;  %v4759_v54 = vld [vmem:[%s4523_s24 + $0xe8] sm:$0x3] }
  0x23   : > { %3744 = vmatprep.mubr.msk.f32.mxu1 %vm361_vm3, %v4606_v44  ;;  %3944 = vmatprep.mubr.msk.f32.mxu0 %vm361_vm3, %v4636_v52  ;;  %5819 = vst [vmem:[#allocation16_spill] sm:$0xff] %v4734_v31  ;;  %v4754_v46 = vsel %vm278_vm2, %v320_v26, %v322_v30  ;;  %v4762_v59 = vsel %vm945_vm5, %v951_v35, %v952_v36  ;;  %v956_v61 = vrot.slane %v4551_v21, 2  ;;  %v957_v20 = vrot.slane %v4557_v25, 2  ;;  %v4770_v6 = vld [vmem:[%s4523_s24 + $0xf8] sm:$0xff]  ;;  %v4791_v35 = vld [vmem:[%s4523_s24 + $0x100] sm:$0x3] }
  0x24   : > { %5820 = vst [vmem:[#allocation17_spill] sm:$0xff] %v4754_v46  ;;  %v327_v12 = vrot.slane %v4759_v54, 1  ;;  %v959_v13 = vrot.slane %v4561_v27, 2  ;;  %v4783_v22 = vsel %vm945_vm5, %v952_v36, %v954_v45  ;;  %v4786_v24 = vsel %vm278_vm2, %v324_v51, %v325_v53  ;;  %v4802_v36 = vld [vmem:[%s4523_s24 + $0x110] sm:$0xff]  ;;  %v4903_v40 = vld [vmem:[%s4523_s24 + $0x148] sm:$0x3] }
  0x25   : > { %5821 = vst [vmem:[#allocation18_spill] sm:$0xff] %v4786_v24  ;;  %v329_v26 = vrot.slane %v4767_v62, 1  ;;  %v330_v30 = vrot.slane %v4770_v6, 1  ;;  %v4794_v11 = vsel %vm945_vm5, %v956_v61, %v957_v20  ;;  %v961_v27 = vrot.slane %v4569_v32, 2 }
  0x26   : > { %3745 = vmatmul.mubr.msk.f32.gmra.mrb[6].mxu1 %vm361_vm3, %v4632_v50  ;;  %3945 = vmatmul.mubr.msk.f32.gmra.mrb[6].mxu0 %vm361_vm3, %v4658_v58  ;;  %5822 = vst [vmem:[#allocation19_spill] sm:$0xff] %v4794_v11  ;;  %v4812_v51 = vsel %vm278_vm2, %v325_v53, %v327_v12  ;;  %v4815_v61 = vsel %vm945_vm5, %v957_v20, %v959_v13  ;;  %v5825_v45 = vrot.slane %v4506_v4, 2  ;;  %v335_v12 = vrot.slane %v4802_v36, 1  ;;  %v4830_v20 = vld [vmem:[%s4523_s24 + $0x118] sm:$0x3] }
  0x27   : > { %3747 = vmatprep.mubr.msk.f32.mxu1 %vm361_vm3, %v4636_v52  ;;  %3947 = vmatprep.mubr.msk.f32.mxu0 %vm361_vm3, %v4662_v60  ;;  %5823 = vst [vmem:[#allocation20_spill] sm:$0xff] %v4812_v51  ;;  %5824 = vst [vmem:[#allocation21_spill] sm:$0xff] %v4815_v61  ;;  %v4868_v52 = vld [vmem:[%s4523_s24 + $0x130] sm:$0x3]  ;;  %v4876_v50 = vld [vmem:[%s4523_s24 + $0x138] sm:$0xff]  ;;  %v974_v44 = vrot.slane %v4641_v55, 2 }
  0x28   : > { %v344_v42 = vrot.slane %v4876_v50, 1 }
  0x2a   : > { %3748 = vmatmul.mubr.msk.f32.gmra.mrb[8].mxu1 %vm361_vm3, %v4658_v58  ;;  %3948 = vmatmul.mubr.msk.f32.gmra.mrb[8].mxu0 %vm361_vm3, %v4684_v5 }
  0x2b   : > { %3750 = vmatprep.mubr.msk.f32.mxu1 %vm361_vm3, %v4662_v60  ;;  %3950 = vmatprep.mubr.msk.f32.mxu0 %vm361_vm3, %v4688_v7  ;;  %v969_v60 = vrot.slane %v4611_v47, 2  ;;  %v971_v47 = vrot.slane %v4618_v48, 2 }
  0x2e   : > { %3751 = vmatmul.mubr.msk.f32.gmra.mrb[10].mxu1 %vm361_vm3, %v4684_v5  ;;  %3951 = vmatmul.mubr.msk.f32.gmra.mrb[10].mxu0 %vm361_vm3, %v4710_v19  ;;  %v337_v5 = vrot.slane %v4830_v20, 1 }
  0x2f   : > { %3753 = vmatprep.mubr.msk.f32.mxu1 %vm361_vm3, %v4688_v7  ;;  %3953 = vmatprep.mubr.msk.f32.mxu0 %vm361_vm3, %v4714_v23  ;;  %v4838_v7 = vld [vmem:[%s4523_s24 + $0x120] sm:$0xff] }
  0x30   : > { %v339_v58 = vrot.slane %v4838_v7, 1 }
  0x32   : > { %3754 = vmatmul.mubr.msk.f32.gmra.mrb[12].mxu1 %vm361_vm3, %v4710_v19  ;;  %3954 = vmatmul.mubr.msk.f32.gmra.mrb[12].mxu0 %vm361_vm3, %v4730_v29  ;;  %v966_v19 = vrot.slane %v4583_v38, 2 }
  0x33   : > { %3756 = vmatprep.mubr.msk.f32.mxu1 %vm361_vm3, %v4714_v23  ;;  %3956 = vmatprep.mubr.msk.f32.mxu0 %vm361_vm3, %v4734_v31  ;;  %v332_v23 = vrot.slane %v4791_v35, 1 }
  0x36   : > { %3757 = vmatmul.mubr.msk.f32.gmra.mrb[14].mxu1 %vm361_vm3, %v4730_v29  ;;  %3957 = vmatmul.mubr.msk.f32.gmra.mrb[14].mxu0 %vm361_vm3, %v4754_v46  ;;  %v4799_v29 = vld [vmem:[%s4523_s24 + $0x108] sm:$0xff] }
  0x37   : > { %3759 = vmatprep.mubr.msk.f32.mxu1 %vm361_vm3, %v4734_v31  ;;  %3985 = vmatprep.mubr.msk.f32.mxu0 %vm361_vm3, %v4762_v59  ;;  %v962_v31 = vrot.slane %v4572_v33, 2  ;;  %v334_v53 = vrot.slane %v4799_v29, 1 }
  0x39   : > { %v4833_v13 = vsel %vm945_vm5, %v961_v27, %v962_v31  ;;  %v4853_v27 = vsel %vm278_vm2, %v330_v30, %v332_v23 }
  0x3a   : > { %3760 = vmatmul.mubr.msk.f32.gmra.mrb[16].mxu1 %vm361_vm3, %v4754_v46  ;;  %3986 = vmatmul.mubr.msk.f32.vlgmr.msra.gmra.mrb[0].mxu0 %vm361_vm3, %v4783_v22  ;;  %v4824_v46 = vsel %vm278_vm2, %v329_v26, %v330_v30  ;;  %5827 = vst [vmem:[#allocation23_spill] sm:$0xff] %v4833_v13  ;;  %v4841_v26 = vld [vmem:[%s4523_s24 + $0x128] sm:$0xff]  ;;  %5829 = vst [vmem:[#allocation24_spill] sm:$0xff] %v4853_v27  ;;  %v972_v30 = vrot.slane %v4621_v49, 2 }
  0x3b   : > { %3762 = vmatprep.mubr.msk.f32.mxu1 %vm361_vm3, %v4786_v24  ;;  %4034 = vmatpush3.msk.msra.mxu0 %vm426_vm0, %v5825_v45  ;;  %5826 = vst [vmem:[#allocation22_spill] sm:$0xff] %v4824_v46  ;;  %v964_v24 = vrot.slane %v4575_v34, 2  ;;  %v967_v45 = vrot.slane %v4586_v39, 2  ;;  %v5828_v34 = vrot.slane %v4506_v4, 5 }
  0x3c   : > { %3988 = vmatprep.mubr.msk.f32.mxu0 %vm361_vm3, %v4794_v11  ;;  %v4973_v11 = vld [vmem:[%s4523_s24 + $0x178] sm:$0x3] }
  0x3d   : > { %4083 = vmatprep.subr.msk.mxu0 %vm426_vm0, %v5828_v34  ;;  %v4860_v34 = vsel %vm945_vm5, %v962_v31, %v964_v24  ;;  %v4871_v23 = vsel %vm945_vm5, %v966_v19, %v967_v45  ;;  %v4879_v31 = vld [vmem:[%s4523_s24 + $0x140] sm:$0xff]  ;;  %v4888_v19 = vsel %vm278_vm2, %v335_v12, %v337_v5  ;;  %v4891_v24 = vsel %vm945_vm5, %v967_v45, %v969_v60  ;;  %v4911_v45 = vld [vmem:[%s4523_s24 + $0x150] sm:$0xff] }
  0x3e   : > { %3763 = vmatmul.mubr.msk.f32.gmra.mrb[18].mxu1 %vm361_vm3, %v4812_v51  ;;  %3989 = vmatmul.mubr.msk.f32.gmra.mrb[2].mxu0 %vm361_vm3, %v4815_v61  ;;  %5830 = vst [vmem:[#allocation25_spill] sm:$0xff] %v4860_v34  ;;  %v4863_v51 = vsel %vm278_vm2, %v334_v53, %v335_v12  ;;  %5832 = vst [vmem:[#allocation27_spill] sm:$0xff] %v4871_v23  ;;  %v342_v53 = vrot.slane %v4868_v52, 1  ;;  %v4906_v5 = vsel %vm945_vm5, %v971_v47, %v972_v30 }
  0x3f   : > { %3765 = vmatprep.mubr.msk.f32.mxu1 %vm361_vm3, %v4824_v46  ;;  %3991 = vmatprep.mubr.msk.f32.mxu0 %vm361_vm3, %v4833_v13  ;;  %5831 = vst [vmem:[#allocation26_spill] sm:$0xff] %v4863_v51  ;;  %v340_v46 = vrot.slane %v4841_v26, 1  ;;  %5833 = vst [vmem:[#allocation28_spill] sm:$0xff] %v4888_v19  ;;  %v976_v60 = vrot.slane %v4646_v56, 2  ;;  %v977_v12 = vrot.slane %v4649_v57, 2  ;;  %v347_v47 = vrot.slane %v4903_v40, 1 }
  0x40   : > { %5834 = vst [vmem:[#allocation29_spill] sm:$0xff] %v4891_v24  ;;  %5836 = vst [vmem:[#allocation31_spill] sm:$0xff] %v4906_v5  ;;  %v4938_v13 = vld [vmem:[%s4523_s24 + $0x160] sm:$0x3] }
  0x41   : > { %v4923_v55 = vsel %vm278_vm2, %v340_v46, %v342_v53  ;;  %v982_v53 = vrot.slane %v4675_v2, 2 }
  0x42   : > { %3766 = vmatmul.mubr.msk.f32.gmra.mrb[20].mxu1 %vm361_vm3, %v4853_v27  ;;  %3992 = vmatmul.mubr.msk.f32.gmra.mrb[4].mxu0 %vm361_vm3, %v4860_v34  ;;  %v4897_v27 = vsel %vm278_vm2, %v339_v58, %v340_v46  ;;  %v4914_v58 = vld [vmem:[%s4523_s24 + $0x158] sm:$0xff]  ;;  %5837 = vst [vmem:[#allocation32_spill] sm:$0xff] %v4923_v55  ;;  %v4930_v34 = vsel %vm945_vm5, %v972_v30, %v974_v44  ;;  %v4949_v44 = vld [vmem:[%s4523_s24 + $0x170] sm:$0xff] }
  0x43   : > { %3768 = vmatprep.mubr.msk.f32.mxu1 %vm361_vm3, %v4863_v51  ;;  %3994 = vmatprep.mubr.msk.f32.mxu0 %vm361_vm3, %v4871_v23  ;;  %5835 = vst [vmem:[#allocation30_spill] sm:$0xff] %v4897_v27  ;;  %v345_v51 = vrot.slane %v4879_v31, 1  ;;  %v979_v23 = vrot.slane %v4667_v63, 2  ;;  %5838 = vst [vmem:[#allocation33_spill] sm:$0xff] %v4930_v34  ;;  %v4941_v46 = vsel %vm945_vm5, %v976_v60, %v977_v12  ;;  %v981_v63 = vrot.slane %v4672_v0, 2 }
  0x44   : > { %5840 = vst [vmem:[#allocation35_spill] sm:$0xff] %v4949_v44  ;;  %v352_v60 = vrot.slane %v4938_v13, 1 }
  0x45   : > { %v4961_v30 = vsel %vm945_vm5, %v977_v12, %v979_v23  ;;  %v986_v23 = vrot.slane %v4698_v16, 2  ;;  %v987_v12 = vrot.slane %v4701_v18, 2 }
  0x46   : > { %3769 = vmatmul.mubr.msk.f32.gmra.mrb[22].mxu1 %vm361_vm3, %v4888_v19  ;;  %3995 = vmatmul.mubr.msk.f32.gmra.mrb[6].mxu0 %vm361_vm3, %v4891_v24  ;;  %v4933_v19 = vsel %vm278_vm2, %v344_v42, %v345_v51  ;;  %v349_v24 = vrot.slane %v4911_v45, 1  ;;  %v4958_v42 = vsel %vm278_vm2, %v345_v51, %v347_v47  ;;  %5842 = vst [vmem:[#allocation37_spill] sm:$0xff] %v4961_v30 }
  0x47   : > { %3771 = vmatprep.mubr.msk.f32.mxu1 %vm361_vm3, %v4897_v27  ;;  %3997 = vmatprep.mubr.msk.f32.mxu0 %vm361_vm3, %v4906_v5  ;;  %5839 = vst [vmem:[#allocation34_spill] sm:$0xff] %v4933_v19  ;;  %v350_v27 = vrot.slane %v4914_v58, 1  ;;  %v4946_v5 = vld [vmem:[%s4523_s24 + $0x168] sm:$0xff]  ;;  %5841 = vst [vmem:[#allocation36_spill] sm:$0xff] %v4958_v42  ;;  %v4976_v51 = vsel %vm945_vm5, %v981_v63, %v982_v53 }
  0x49   : > { %v4967_v61 = vsel %vm278_vm2, %v349_v24, %v350_v27  ;;  %v357_v24 = vrot.slane %v4973_v11, 1 }
  0x4a   : > { %3772 = vmatmul.mubr.msk.f32.gmra.mrb[24].mxu1 %vm361_vm3, %v4923_v55  ;;  %3998 = vmatmul.mubr.msk.f32.gmra.mrb[8].mxu0 %vm361_vm3, %v4930_v34  ;;  %5843 = vst [vmem:[#allocation38_spill] sm:$0xff] %v4967_v61  ;;  %v984_v55 = vrot.slane %v4693_v14, 2  ;;  %v354_v34 = vrot.slane %v4946_v5, 1  ;;  %v4987_v14 = vsel %vm278_vm2, %v350_v27, %v352_v60  ;;  %v992_v27 = vrot.slane %v4742_v43, 2 }
  0x4b   : > { %3774 = vmatprep.mubr.msk.f32.mxu1 %vm361_vm3, %v4933_v19  ;;  %4000 = vmatprep.mubr.msk.f32.mxu0 %vm361_vm3, %v4941_v46  ;;  %v355_v19 = vrot.slane %v4949_v44, 1  ;;  %5844 = vst [vmem:[#allocation39_spill] sm:$0xff] %v4987_v14  ;;  %v996_v60 = vrot.slane %v4767_v62, 2 }
  0x4c   : > { %v4993_v47 = vsel %vm945_vm5, %v982_v53, %v984_v55  ;;  %v994_v55 = vrot.slane %v4759_v54, 2 }
  0x4d   : > { %v4996_v63 = vsel %vm278_vm2, %v354_v34, %v355_v19  ;;  %v5011_v34 = vsel %vm278_vm2, %v355_v19, %v357_v24  ;;  %v5785_v24 = vrot.slane %v4496_v1, 1 }
  0x4e   : > { %3775 = vmatmul.mubr.msk.f32.gmra.mrb[26].mxu1 %vm361_vm3, %v4958_v42  ;;  %4001 = vmatmul.mubr.msk.f32.gmra.mrb[10].mxu0 %vm361_vm3, %v4961_v30  ;;  %5845 = vst [vmem:[#allocation40_spill] sm:$0xff] %v4996_v63  ;;  %v989_v42 = vrot.slane %v4719_v28, 2  ;;  %v5000_v30 = vsel %vm945_vm5, %v986_v23, %v987_v12  ;;  %5847 = vst [vmem:[#allocation42_spill] sm:$0xff] %v5011_v34  ;;  %v997_v23 = vrot.slane %v4770_v6, 2 }
  0x4f   : > { %3777 = vmatprep.mubr.msk.f32.mxu1 %vm361_vm3, %v4967_v61  ;;  %4003 = vmatprep.mubr.msk.f32.mxu0 %vm361_vm3, %v4976_v51  ;;  %5846 = vst [vmem:[#allocation41_spill] sm:$0xff] %v5000_v30  ;;  %v991_v61 = vrot.slane %v4739_v37, 2  ;;  %v5033_v54 = vsel %vm945_vm5, %v992_v27, %v994_v55 }
  0x50   : > { %v5016_v28 = vsel %vm945_vm5, %v987_v12, %v989_v42  ;;  %v5037_v19 = vsel %vm945_vm5, %v996_v60, %v997_v23  ;;  %v1001_v42 = vrot.slane %v4799_v29, 2  ;;  %v1002_v12 = vrot.slane %v4802_v36, 2 }
  0x51   : > { %v5020_v53 = vsel %vm945_vm5, %v991_v61, %v992_v27  ;;  %v999_v61 = vrot.slane %v4791_v35, 2  ;;  %v1004_v27 = vrot.slane %v4830_v20, 2  ;;  %v1006_v60 = vrot.slane %v4838_v7, 2 }
  0x52   : > { %3778 = vmatmul.mubr.msk.f32.gmra.mrb[28].mxu1 %vm361_vm3, %v4987_v14  ;;  %4004 = vmatmul.mubr.msk.f32.gmra.mrb[12].mxu0 %vm361_vm3, %v4993_v47  ;;  %v5057_v55 = vsel %vm945_vm5, %v1001_v42, %v1002_v12  ;;  %v1011_v42 = vrot.slane %v4876_v50, 2  ;;  %v5118_v14 = vld [vmem:[%s4523_s24 + $0x180] sm:$0xff] }
  0x53   : > { %3780 = vmatprep.mubr.msk.f32.mxu1 %vm361_vm3, %v4996_v63  ;;  %4006 = vmatprep.mubr.msk.f32.mxu0 %vm361_vm3, %v5000_v30  ;;  %v5053_v35 = vsel %vm945_vm5, %v997_v23, %v999_v61  ;;  %v5073_v20 = vsel %vm945_vm5, %v1002_v12, %v1004_v27  ;;  %v1009_v23 = vrot.slane %v4868_v52, 2  ;;  %v1014_v12 = vrot.slane %v4903_v40, 2 }
  0x54   : > { %v1022_v63 = vrot.slane %v4949_v44, 2 }
  0x56   : > { %3781 = vmatmul.mubr.msk.f32.gmra.mrb[30].mxu1 %vm361_vm3, %v5011_v34  ;;  %4007 = vmatmul.mubr.msk.f32.gmra.mrb[14].mxu0 %vm361_vm3, %v5016_v28  ;;  %v1017_v34 = vrot.slane %v4914_v58, 2 }
  0x57   : > { %3785 = vmatprep.mubr.msk.f32.mxu1 %vm361_vm3, %v4526_v8  ;;  %4009 = vmatprep.mubr.msk.f32.mxu0 %vm361_vm3, %v5020_v53 }
  0x5a   : > { %3786 = vmatmul.mubr.msk.f32.vlgmr.msra.gmra.mrb[0].mxu1 %vm361_vm3, %v4529_v9  ;;  %4010 = vmatmul.mubr.msk.f32.gmra.mrb[16].mxu0 %vm361_vm3, %v5033_v54 }
  0x5b   : > { %3834 = vmatpush3.msk.msra.mxu1 %vm426_vm0, %v4595_v41  ;;  %3788 = vmatprep.mubr.msk.f32.mxu1 %vm361_vm3, %v4532_v10  ;;  %v1007_v41 = vrot.slane %v4841_v26, 2 }
  0x5c   : > { %4012 = vmatprep.mubr.msk.f32.mxu0 %vm361_vm3, %v5037_v19  ;;  %3883 = vmatprep.subr.msk.mxu1 %vm426_vm0, %v5785_v24  ;;  %v1012_v24 = vrot.slane %v4879_v31, 2 }
  0x5d   : > { %v5077_v61 = vsel %vm945_vm5, %v1006_v60, %v1007_v41  ;;  %v5090_v52 = vsel %vm945_vm5, %v1007_v41, %v1009_v23  ;;  %v1016_v60 = vrot.slane %v4911_v45, 2  ;;  %v1019_v41 = vrot.slane %v4938_v13, 2 }
  0x5e   : > { %3789 = vmatmul.mubr.msk.f32.gmra.mrb[2].mxu1 %vm361_vm3, %v4539_v15  ;;  %4013 = vmatmul.mubr.msk.f32.gmra.mrb[18].mxu0 %vm361_vm3, %v5053_v35  ;;  %v5094_v27 = vsel %vm945_vm5, %v1011_v42, %v1012_v24  ;;  %v5107_v40 = vsel %vm945_vm5, %v1012_v24, %v1014_v12  ;;  %v1021_v42 = vrot.slane %v4946_v5, 2  ;;  %v5121_v15 = vld [vmem:[%s4523_s24 + $0x188] sm:$0xff]  ;;  %v1024_v24 = vrot.slane %v4973_v11, 2 }
  0x5f   : > { %3791 = vmatprep.mubr.msk.f32.mxu1 %vm361_vm3, %v4551_v21  ;;  %4015 = vmatprep.mubr.msk.f32.mxu0 %vm361_vm3, %v5057_v55  ;;  %5848 = vst [vmem:[#allocation43_spill] sm:$0xff] %v5094_v27  ;;  %5849 = vst [vmem:[#allocation44_spill] sm:$0xff] %v5107_v40  ;;  %v5111_v23 = vsel %vm945_vm5, %v1016_v60, %v1017_v34  ;;  %v5130_v13 = vsel %vm945_vm5, %v1017_v34, %v1019_v41  ;;  %v1890_v60 = vrot.slane %v5118_v14, 2 }
  0x60   : > { %5850 = vst [vmem:[#allocation45_spill] sm:$0xff] %v5111_v23  ;;  %5851 = vst [vmem:[#allocation46_spill] sm:$0xff] %v5130_v13  ;;  %v5134_v12 = vsel %vm945_vm5, %v1021_v42, %v1022_v63  ;;  %v1891_v10 = vrot.slane %v5121_v15, 2  ;;  %v5150_v11 = vsel %vm945_vm5, %v1022_v63, %v1024_v24  ;;  %v5856_v42 = vrot.slane %v4506_v4, 5 }
  0x61   : > { %5852 = vst [vmem:[#allocation47_spill] sm:$0xff] %v5134_v12  ;;  %5853 = vst [vmem:[#allocation48_spill] sm:$0xff] %v5150_v11  ;;  %v946_v4 = vrot.slane %v4526_v8, 2  ;;  %v947_v24 = vrot.slane %v4529_v9, 2  ;;  %v5857_v9 = vrot.slane %v4496_v1, 1  ;;  %v5858_v1 = vld [vmem:[#allocation19_spill] sm:$0xff] }
  0x62   : > { %3792 = vmatmul.mubr.msk.f32.gmra.mrb[4].mxu1 %vm361_vm3, %v4557_v25  ;;  %4016 = vmatmul.mubr.msk.f32.gmra.mrb[20].mxu0 %vm361_vm3, %v5073_v20  ;;  %v5154_v41 = vsel %vm945_vm5, %v1890_v60, %v1891_v10  ;;  %v949_v60 = vrot.slane %v4543_v17, 2  ;;  %v5859_v17 = vld [vmem:[#allocation21_spill] sm:$0xff] }
  0x63   : > { %3794 = vmatprep.mubr.msk.f32.mxu1 %vm361_vm3, %v4569_v32  ;;  %4018 = vmatprep.mubr.msk.f32.mxu0 %vm361_vm3, %v5077_v61  ;;  %5854 = vst [vmem:[#allocation49_spill] sm:$0xff] %v5154_v41 }
  0x64   : > { %v950_v8 = vsel %vm945_vm5, %v947_v24, %v949_v60  ;;  %v5865_v60 = vld [vmem:[#allocation33_spill] sm:$0xff] }
  0x66   : > { %3795 = vmatmul.mubr.msk.f32.gmra.mrb[6].mxu1 %vm361_vm3, %v4572_v33  ;;  %4019 = vmatmul.mubr.msk.f32.gmra.mrb[22].mxu0 %vm361_vm3, %v5090_v52 }
  0x67   : > { %3797 = vmatprep.mubr.msk.f32.mxu1 %vm361_vm3, %v4583_v38  ;;  %4021 = vmatprep.mubr.msk.f32.mxu0 %vm361_vm3, %v5094_v27  ;;  %v5139_v27 = vld [vmem:[%s4523_s24 + $0x190] sm:$0x3] }
  0x68   : > { %v1893_v34 = vrot.slane %v5139_v27, 2 }
  0x6a   : > { %3798 = vmatmul.mubr.msk.f32.gmra.mrb[8].mxu1 %vm361_vm3, %v4586_v39  ;;  %4022 = vmatmul.mubr.msk.f32.gmra.mrb[24].mxu0 %vm361_vm3, %v5107_v40  ;;  %v5165_v63 = vsel %vm945_vm5, %v1891_v10, %v1893_v34  ;;  %v5180_v10 = vld [vmem:[%s5727_s1 + $0x18] sm:$0x7]  ;;  %v948_v34 = vsel %vm945_vm5, %v946_v4, %v947_v24  ;;  %v5864_v24 = vld [vmem:[#allocation31_spill] sm:$0xff] }
  0x6b   : > { %3800 = vmatprep.mubr.msk.f32.mxu1 %vm361_vm3, %v4618_v48  ;;  %4024 = vmatprep.mubr.msk.f32.mxu0 %vm361_vm3, %v5111_v23  ;;  %5855 = vst [vmem:[#allocation50_spill] sm:$0xff] %v5165_v63  ;;  %v5863_v4 = vld [vmem:[#allocation29_spill] sm:$0xff] }
  0x6e   : > { %3801 = vmatmul.mubr.msk.f32.gmra.mrb[10].mxu1 %vm361_vm3, %v4621_v49  ;;  %4025 = vmatmul.mubr.msk.f32.gmra.mrb[26].mxu0 %vm361_vm3, %v5130_v13 }
  0x6f   : > { %3803 = vmatprep.mubr.msk.f32.mxu1 %vm361_vm3, %v4646_v56  ;;  %4027 = vmatprep.mubr.msk.f32.mxu0 %vm361_vm3, %v5134_v12 }
  0x72   : > { %3804 = vmatmul.mubr.msk.f32.gmra.mrb[12].mxu1 %vm361_vm3, %v4649_v57  ;;  %4028 = vmatmul.mubr.msk.f32.gmra.mrb[28].mxu0 %vm361_vm3, %v5150_v11 }
  0x73   : > { %3806 = vmatprep.mubr.msk.f32.mxu1 %vm361_vm3, %v4672_v0  ;;  %4030 = vmatprep.mubr.msk.f32.mxu0 %vm361_vm3, %v5154_v41  ;;  %v5868_v41 = vld [vmem:[#allocation5_spill] sm:$0xff] }
  0x76   : > { %3807 = vmatmul.mubr.msk.f32.gmra.mrb[14].mxu1 %vm361_vm3, %v4675_v2  ;;  %4031 = vmatmul.mubr.msk.f32.gmra.mrb[30].mxu0 %vm361_vm3, %v5165_v63  ;;  %v5867_v63 = vld [vmem:[#allocation4_spill] sm:$0xff] }
  0x77   : > { %3809 = vmatprep.mubr.msk.f32.mxu1 %vm361_vm3, %v4698_v16  ;;  %4035 = vmatprep.mubr.msk.f32.mxu0 %vm361_vm3, %v4551_v21 }
  0x7a   : > { %3810 = vmatmul.mubr.msk.f32.gmra.mrb[16].mxu1 %vm361_vm3, %v4701_v18  ;;  %4036 = vmatmul.mubr.msk.f32.vlgmr.msra.gmra.mrb[0].mxu0 %vm361_vm3, %v4557_v25 }
  0x7b   : > { %3812 = vmatprep.mubr.msk.f32.mxu1 %vm361_vm3, %v4739_v37  ;;  %4084 = vmatpush3.msk.msra.mxu0 %vm426_vm0, %v5856_v42  ;;  %v5862_v42 = vld [vmem:[#allocation27_spill] sm:$0xff] }
  0x7c   : > { %4038 = vmatprep.mubr.msk.f32.mxu0 %vm361_vm3, %v4569_v32  ;;  %4133 = vmatprep.subr.msk.mxu0 %vm426_vm0, %v5180_v10 }
  0x7e   : > { %3813 = vmatmul.mubr.msk.f32.gmra.mrb[18].mxu1 %vm361_vm3, %v4742_v43  ;;  %4039 = vmatmul.mubr.msk.f32.gmra.mrb[2].mxu0 %vm361_vm3, %v4572_v33 }
  0x7f   : > { %3815 = vmatprep.mubr.msk.f32.mxu1 %vm361_vm3, %v4767_v62  ;;  %4041 = vmatprep.mubr.msk.f32.mxu0 %vm361_vm3, %v4583_v38 }
  0x82   : > { %3816 = vmatmul.mubr.msk.f32.gmra.mrb[20].mxu1 %vm361_vm3, %v4770_v6  ;;  %4042 = vmatmul.mubr.msk.f32.gmra.mrb[4].mxu0 %vm361_vm3, %v4586_v39 }
  0x83   : > { %3818 = vmatprep.mubr.msk.f32.mxu1 %vm361_vm3, %v4799_v29  ;;  %4044 = vmatprep.mubr.msk.f32.mxu0 %vm361_vm3, %v4618_v48 }
  0x86   : > { %3819 = vmatmul.mubr.msk.f32.gmra.mrb[22].mxu1 %vm361_vm3, %v4802_v36  ;;  %4045 = vmatmul.mubr.msk.f32.gmra.mrb[6].mxu0 %vm361_vm3, %v4621_v49 }
  0x87   : > { %3821 = vmatprep.mubr.msk.f32.mxu1 %vm361_vm3, %v4838_v7  ;;  %4047 = vmatprep.mubr.msk.f32.mxu0 %vm361_vm3, %v4646_v56 }
  0x8a   : > { %3822 = vmatmul.mubr.msk.f32.gmra.mrb[24].mxu1 %vm361_vm3, %v4841_v26  ;;  %4048 = vmatmul.mubr.msk.f32.gmra.mrb[8].mxu0 %vm361_vm3, %v4649_v57 }
  0x8b   : > { %3824 = vmatprep.mubr.msk.f32.mxu1 %vm361_vm3, %v4876_v50  ;;  %4050 = vmatprep.mubr.msk.f32.mxu0 %vm361_vm3, %v4672_v0 }
  0x8e   : > { %3825 = vmatmul.mubr.msk.f32.gmra.mrb[26].mxu1 %vm361_vm3, %v4879_v31  ;;  %4051 = vmatmul.mubr.msk.f32.gmra.mrb[10].mxu0 %vm361_vm3, %v4675_v2 }
  0x8f   : > { %3827 = vmatprep.mubr.msk.f32.mxu1 %vm361_vm3, %v4911_v45  ;;  %4053 = vmatprep.mubr.msk.f32.mxu0 %vm361_vm3, %v4698_v16 }
  0x92   : > { %3828 = vmatmul.mubr.msk.f32.gmra.mrb[28].mxu1 %vm361_vm3, %v4914_v58  ;;  %4054 = vmatmul.mubr.msk.f32.gmra.mrb[12].mxu0 %vm361_vm3, %v4701_v18 }
  0x93   : > { %3830 = vmatprep.mubr.msk.f32.mxu1 %vm361_vm3, %v4946_v5  ;;  %4056 = vmatprep.mubr.msk.f32.mxu0 %vm361_vm3, %v4739_v37 }
  0x96   : > { %3831 = vmatmul.mubr.msk.f32.gmra.mrb[30].mxu1 %vm361_vm3, %v4949_v44  ;;  %4057 = vmatmul.mubr.msk.f32.gmra.mrb[14].mxu0 %vm361_vm3, %v4742_v43 }
  0x97   : > { %3835 = vmatprep.mubr.msk.f32.mxu1 %vm361_vm3, %v948_v34  ;;  %4059 = vmatprep.mubr.msk.f32.mxu0 %vm361_vm3, %v4767_v62  ;;  %v5306_v34 = vld [vmem:[%s4523_s24 + $0x198] sm:$0xff] }
  0x9a   : > { %3836 = vmatmul.mubr.msk.f32.vlgmr.msra.gmra.mrb[0].mxu1 %vm361_vm3, %v950_v8  ;;  %4060 = vmatmul.mubr.msk.f32.gmra.mrb[16].mxu0 %vm361_vm3, %v4770_v6  ;;  %v5866_v8 = vld [vmem:[#allocation37_spill] sm:$0xff] }
  0x9b   : > { %3884 = vmatpush3.msk.msra.mxu1 %vm426_vm0, %v5857_v9  ;;  %3838 = vmatprep.mubr.msk.f32.mxu1 %vm361_vm3, %v4762_v59  ;;  %v5860_v59 = vld [vmem:[#allocation23_spill] sm:$0xff]  ;;  %v5317_v9 = vld [vmem:[%s4523_s24 + $0x1a0] sm:$0xff] }
  0x9c   : > { %4062 = vmatprep.mubr.msk.f32.mxu0 %vm361_vm3, %v4799_v29  ;;  %4183 = vmatprep.subr.msk.mxu1 %vm426_vm0, %v4501_v3 }
  0x9e   : > { %3839 = vmatmul.mubr.msk.f32.gmra.mrb[2].mxu1 %vm361_vm3, %v4783_v22  ;;  %4063 = vmatmul.mubr.msk.f32.gmra.mrb[18].mxu0 %vm361_vm3, %v4802_v36  ;;  %v5861_v22 = vld [vmem:[#allocation25_spill] sm:$0xff] }
  0x9f   : > { %3841 = vmatprep.mubr.msk.f32.mxu1 %vm361_vm3, %v5858_v1  ;;  %4065 = vmatprep.mubr.msk.f32.mxu0 %vm361_vm3, %v4838_v7 }
  0xa2   : > { %3842 = vmatmul.mubr.msk.f32.gmra.mrb[4].mxu1 %vm361_vm3, %v5859_v17  ;;  %4066 = vmatmul.mubr.msk.f32.gmra.mrb[20].mxu0 %vm361_vm3, %v4841_v26 }
  0xa3   : > { %3844 = vmatprep.mubr.msk.f32.mxu1 %vm361_vm3, %v5860_v59  ;;  %4068 = vmatprep.mubr.msk.f32.mxu0 %vm361_vm3, %v4876_v50 }
  0xa6   : > { %3845 = vmatmul.mubr.msk.f32.gmra.mrb[6].mxu1 %vm361_vm3, %v5861_v22  ;;  %4069 = vmatmul.mubr.msk.f32.gmra.mrb[22].mxu0 %vm361_vm3, %v4879_v31 }
  0xa7   : > { %3847 = vmatprep.mubr.msk.f32.mxu1 %vm361_vm3, %v5862_v42  ;;  %4071 = vmatprep.mubr.msk.f32.mxu0 %vm361_vm3, %v4911_v45 }
  0xaa   : > { %3848 = vmatmul.mubr.msk.f32.gmra.mrb[8].mxu1 %vm361_vm3, %v5863_v4  ;;  %4072 = vmatmul.mubr.msk.f32.gmra.mrb[24].mxu0 %vm361_vm3, %v4914_v58 }
  0xab   : > { %3850 = vmatprep.mubr.msk.f32.mxu1 %vm361_vm3, %v5864_v24  ;;  %4074 = vmatprep.mubr.msk.f32.mxu0 %vm361_vm3, %v4946_v5 }
  0xae   : > { %3851 = vmatmul.mubr.msk.f32.gmra.mrb[10].mxu1 %vm361_vm3, %v5865_v60  ;;  %4075 = vmatmul.mubr.msk.f32.gmra.mrb[26].mxu0 %vm361_vm3, %v4949_v44  ;;  %v5869_v44 = vld [vmem:[#allocation6_spill] sm:$0xff] }
  0xaf   : > { %3853 = vmatprep.mubr.msk.f32.mxu1 %vm361_vm3, %v4941_v46  ;;  %4077 = vmatprep.mubr.msk.f32.mxu0 %vm361_vm3, %v5118_v14 }
  0xb2   : > { %3854 = vmatmul.mubr.msk.f32.gmra.mrb[12].mxu1 %vm361_vm3, %v5866_v8  ;;  %4078 = vmatmul.mubr.msk.f32.gmra.mrb[28].mxu0 %vm361_vm3, %v5121_v15 }
  0xb3   : > { %3856 = vmatprep.mubr.msk.f32.mxu1 %vm361_vm3, %v4976_v51  ;;  %4080 = vmatprep.mubr.msk.f32.mxu0 %vm361_vm3, %v5306_v34 }
  0xb6   : > { %3857 = vmatmul.mubr.msk.f32.gmra.mrb[14].mxu1 %vm361_vm3, %v4993_v47  ;;  %4081 = vmatmul.mubr.msk.f32.gmra.mrb[30].mxu0 %vm361_vm3, %v5317_v9 }
  0xb7   : > { %3859 = vmatprep.mubr.msk.f32.mxu1 %vm361_vm3, %v5000_v30  ;;  %4085 = vmatprep.mubr.msk.f32.mxu0 %vm361_vm3, %v5867_v63  ;;  %v5870_v30 = vld [vmem:[#allocation7_spill] sm:$0xff]  ;;  %v5871_v63 = vld [vmem:[#allocation8_spill] sm:$0xff] }
  0xba   : > { %3860 = vmatmul.mubr.msk.f32.gmra.mrb[16].mxu1 %vm361_vm3, %v5016_v28  ;;  %4086 = vmatmul.mubr.msk.f32.vlgmr.msra.gmra.mrb[0].mxu0 %vm361_vm3, %v5868_v41  ;;  %v5872_v41 = vld [vmem:[#allocation9_spill] sm:$0xff] }
  0xbb   : > { %3862 = vmatprep.mubr.msk.f32.mxu1 %vm361_vm3, %v5020_v53  ;;  %4134 = vmatpush3.msk.msra.mxu0 %vm426_vm0, %v5180_v10  ;;  %v5875_v10 = vld [vmem:[#allocation12_spill] sm:$0xff] }
  0xbc   : > { %4088 = vmatprep.mubr.msk.f32.mxu0 %vm361_vm3, %v5869_v44  ;;  %v5873_v44 = vld [vmem:[#allocation10_spill] sm:$0xff] }
  0xbe   : > { %3863 = vmatmul.mubr.msk.f32.gmra.mrb[18].mxu1 %vm361_vm3, %v5033_v54  ;;  %4089 = vmatmul.mubr.msk.f32.gmra.mrb[2].mxu0 %vm361_vm3, %v5870_v30  ;;  %v5874_v30 = vld [vmem:[#allocation11_spill] sm:$0xff] }
  0xbf   : > { %3865 = vmatprep.mubr.msk.f32.mxu1 %vm361_vm3, %v5037_v19  ;;  %4091 = vmatprep.mubr.msk.f32.mxu0 %vm361_vm3, %v5871_v63  ;;  %v5876_v63 = vld [vmem:[#allocation13_spill] sm:$0xff] }
  0xc2   : > { %3866 = vmatmul.mubr.msk.f32.gmra.mrb[20].mxu1 %vm361_vm3, %v5053_v35  ;;  %4092 = vmatmul.mubr.msk.f32.gmra.mrb[4].mxu0 %vm361_vm3, %v5872_v41  ;;  %v5877_v41 = vld [vmem:[#allocation43_spill] sm:$0xff] }
  0xc3   : > { %3868 = vmatprep.mubr.msk.f32.mxu1 %vm361_vm3, %v5057_v55  ;;  %4094 = vmatprep.mubr.msk.f32.mxu0 %vm361_vm3, %v5873_v44  ;;  %v5878_v44 = vld [vmem:[#allocation14_spill] sm:$0xff] }
  0xc6   : > { %3869 = vmatmul.mubr.msk.f32.gmra.mrb[22].mxu1 %vm361_vm3, %v5073_v20  ;;  %4095 = vmatmul.mubr.msk.f32.gmra.mrb[6].mxu0 %vm361_vm3, %v5874_v30  ;;  %v5879_v30 = vld [vmem:[#allocation15_spill] sm:$0xff] }
  0xc7   : > { %3871 = vmatprep.mubr.msk.f32.mxu1 %vm361_vm3, %v5077_v61  ;;  %4097 = vmatprep.mubr.msk.f32.mxu0 %vm361_vm3, %v5875_v10  ;;  %v5880_v10 = vld [vmem:[#allocation16_spill] sm:$0xff] }
  0xca   : > { %3872 = vmatmul.mubr.msk.f32.gmra.mrb[24].mxu1 %vm361_vm3, %v5090_v52  ;;  %4098 = vmatmul.mubr.msk.f32.gmra.mrb[8].mxu0 %vm361_vm3, %v5876_v63  ;;  %v5881_v63 = vld [vmem:[#allocation17_spill] sm:$0xff] }
  0xcb   : > { %3874 = vmatprep.mubr.msk.f32.mxu1 %vm361_vm3, %v5877_v41  ;;  %4100 = vmatprep.mubr.msk.f32.mxu0 %vm361_vm3, %v5878_v44  ;;  %v5882_v44 = vld [vmem:[#allocation18_spill] sm:$0xff] }
  0xce   : > { %3875 = vmatmul.mubr.msk.f32.gmra.mrb[26].mxu1 %vm361_vm3, %v5107_v40  ;;  %4101 = vmatmul.mubr.msk.f32.gmra.mrb[10].mxu0 %vm361_vm3, %v5879_v30  ;;  %v5883_v30 = vld [vmem:[#allocation20_spill] sm:$0xff]  ;;  %v5444_v40 = vld [vmem:[%s4523_s24 + $0x1a8] sm:$0x3] }
  0xcf   : > { %3877 = vmatprep.mubr.msk.f32.mxu1 %vm361_vm3, %v5111_v23  ;;  %4103 = vmatprep.mubr.msk.f32.mxu0 %vm361_vm3, %v5880_v10  ;;  %v5884_v23 = vld [vmem:[#allocation2_spill] sm:$0xff] }
  0xd0   : > { %v5885_v10 = vld [vmem:[#allocation22_spill] sm:$0xff] }
  0xd2   : > { %3878 = vmatmul.mubr.msk.f32.gmra.mrb[28].mxu1 %vm361_vm3, %v5130_v13  ;;  %4104 = vmatmul.mubr.msk.f32.gmra.mrb[12].mxu0 %vm361_vm3, %v5881_v63  ;;  %v5886_v13 = vld [vmem:[#allocation3_spill] sm:$0xff]  ;;  %v5887_v63 = vld [vmem:[#allocation24_spill] sm:$0xff] }
  0xd3   : > { %3880 = vmatprep.mubr.msk.f32.mxu1 %vm361_vm3, %v5134_v12  ;;  %4106 = vmatprep.mubr.msk.f32.mxu0 %vm361_vm3, %v5882_v44  ;;  %v5895_v12 = vld [vmem:[#allocation39_spill] sm:$0xff] }
  0xd6   : > { %3881 = vmatmul.mubr.msk.f32.gmra.mrb[30].mxu1 %vm361_vm3, %v5150_v11  ;;  %4107 = vmatmul.mubr.msk.f32.gmra.mrb[14].mxu0 %vm361_vm3, %v5883_v30  ;;  %v5888_v11 = vld [vmem:[#allocation26_spill] sm:$0xff] }
  0xd7   : > { %3885 = vmatprep.mubr.msk.f32.mxu1 %vm361_vm3, %v5884_v23  ;;  %4109 = vmatprep.mubr.msk.f32.mxu0 %vm361_vm3, %v5885_v10  ;;  %v5889_v23 = vld [vmem:[#allocation28_spill] sm:$0xff] }
  0xda   : > { %3886 = vmatmul.mubr.msk.f32.vlgmr.msra.gmra.mrb[0].mxu1 %vm361_vm3, %v5886_v13  ;;  %4110 = vmatmul.mubr.msk.f32.gmra.mrb[16].mxu0 %vm361_vm3, %v5887_v63  ;;  %v5890_v13 = vld [vmem:[#allocation30_spill] sm:$0xff] }
  0xdb   : > { %4184 = vmatpush3.msk.msra.mxu1 %vm426_vm0, %v4501_v3  ;;  %3888 = vmatprep.mubr.msk.f32.mxu1 %vm361_vm3, %v4551_v21  ;;  %v5891_v3 = vld [vmem:[#allocation32_spill] sm:$0xff]  ;;  %v5892_v21 = vld [vmem:[#allocation34_spill] sm:$0xff] }
  0xdc   : > { %4112 = vmatprep.mubr.msk.f32.mxu0 %vm361_vm3, %v5888_v11 }
  0xde   : > { %3889 = vmatmul.mubr.msk.f32.gmra.mrb[2].mxu1 %vm361_vm3, %v4557_v25  ;;  %4113 = vmatmul.mubr.msk.f32.gmra.mrb[18].mxu0 %vm361_vm3, %v5889_v23  ;;  %v5893_v25 = vld [vmem:[#allocation36_spill] sm:$0xff] }
  0xdf   : > { %3891 = vmatprep.mubr.msk.f32.mxu1 %vm361_vm3, %v4569_v32  ;;  %4115 = vmatprep.mubr.msk.f32.mxu0 %vm361_vm3, %v5890_v13  ;;  %v5894_v32 = vld [vmem:[#allocation38_spill] sm:$0xff] }
  0xe2   : > { %3892 = vmatmul.mubr.msk.f32.gmra.mrb[4].mxu1 %vm361_vm3, %v4572_v33  ;;  %4116 = vmatmul.mubr.msk.f32.gmra.mrb[20].mxu0 %vm361_vm3, %v5891_v3  ;;  %v1621_v33 = vrot.slane %v5118_v14, 1 }
  0xe3   : > { %3894 = vmatprep.mubr.msk.f32.mxu1 %vm361_vm3, %v4583_v38  ;;  %4118 = vmatprep.mubr.msk.f32.mxu0 %vm361_vm3, %v5892_v21  ;;  %v1622_v38 = vrot.slane %v5121_v15, 1 }
  0xe5   : > { %v5441_v21 = vsel %vm278_vm2, %v1621_v33, %v1622_v38 }
  0xe6   : > { %3895 = vmatmul.mubr.msk.f32.gmra.mrb[6].mxu1 %vm361_vm3, %v4586_v39  ;;  %4119 = vmatmul.mubr.msk.f32.gmra.mrb[22].mxu0 %vm361_vm3, %v5893_v25  ;;  %v5896_v39 = vld [vmem:[#allocation40_spill] sm:$0xff]  ;;  %v2431_v25 = vrot.slane %v5317_v9, 1 }
  0xe7   : > { %3897 = vmatprep.mubr.msk.f32.mxu1 %vm361_vm3, %v4618_v48  ;;  %4121 = vmatprep.mubr.msk.f32.mxu0 %vm361_vm3, %v5894_v32  ;;  %v1624_v48 = vrot.slane %v5139_v27, 1  ;;  %v2430_v32 = vrot.slane %v5306_v34, 1  ;;  %v2433_v27 = vrot.slane %v5444_v40, 1 }
  0xe9   : > { %v2432_v33 = vsel %vm278_vm2, %v2430_v32, %v2431_v25 }
  0xea   : > { %3898 = vmatmul.mubr.msk.f32.gmra.mrb[8].mxu1 %vm361_vm3, %v4621_v49  ;;  %4122 = vmatmul.mubr.msk.f32.gmra.mrb[24].mxu0 %vm361_vm3, %v5895_v12  ;;  %v5897_v49 = vld [vmem:[#allocation42_spill] sm:$0xff] }
  0xeb   : > { %3900 = vmatprep.mubr.msk.f32.mxu1 %vm361_vm3, %v4646_v56  ;;  %4124 = vmatprep.mubr.msk.f32.mxu0 %vm361_vm3, %v5896_v39  ;;  %v5455_v56 = vsel %vm278_vm2, %v1622_v38, %v1624_v48 }
  0xee   : > { %3901 = vmatmul.mubr.msk.f32.gmra.mrb[10].mxu1 %vm361_vm3, %v4649_v57  ;;  %4125 = vmatmul.mubr.msk.f32.gmra.mrb[26].mxu0 %vm361_vm3, %v5897_v49  ;;  %v2434_v57 = vsel %vm278_vm2, %v2431_v25, %v2433_v27 }
  0xef   : > { %3903 = vmatprep.mubr.msk.f32.mxu1 %vm361_vm3, %v4672_v0  ;;  %4127 = vmatprep.mubr.msk.f32.mxu0 %vm361_vm3, %v5441_v21  ;;  %v5899_v0 = vld [vmem:[#allocation35_spill] sm:$0xff] }
  0xf2   : > { %3904 = vmatmul.mubr.msk.f32.gmra.mrb[12].mxu1 %vm361_vm3, %v4675_v2  ;;  %4128 = vmatmul.mubr.msk.f32.gmra.mrb[28].mxu0 %vm361_vm3, %v5455_v56  ;;  %v5901_v2 = vld [vmem:[#allocation34_spill] sm:$0xff] }
  0xf3   : > { %3906 = vmatprep.mubr.msk.f32.mxu1 %vm361_vm3, %v4698_v16  ;;  %4130 = vmatprep.mubr.msk.f32.mxu0 %vm361_vm3, %v2432_v33  ;;  %v5903_v16 = vld [vmem:[#allocation36_spill] sm:$0xff] }
  0xf6   : > { %3907 = vmatmul.mubr.msk.f32.gmra.mrb[14].mxu1 %vm361_vm3, %v4701_v18  ;;  %4131 = vmatmul.mubr.msk.f32.gmra.mrb[30].mxu0 %vm361_vm3, %v2434_v57  ;;  %v5904_v18 = vld [vmem:[#allocation46_spill] sm:$0xff] }
  0xf7   : > { %3909 = vmatprep.mubr.msk.f32.mxu1 %vm361_vm3, %v4739_v37  ;;  %4135 = vmatprep.mubr.msk.f32.mxu0 %vm361_vm3, %v5858_v1  ;;  %v5906_v37 = vld [vmem:[#allocation47_spill] sm:$0xff]  ;;  %v5615_v1 = vld [vmem:[%s5728_s2] ss:$0 sm:$0xff] }
  0xfa   : > { %3910 = vmatmul.mubr.msk.f32.gmra.mrb[16].mxu1 %vm361_vm3, %v4742_v43  ;;  %4136 = vmatmul.mubr.msk.f32.vlgmr.msra.gmra.mrb[0].mxu0 %vm361_vm3, %v5859_v17  ;;  %v2699_v43 = vrot.slane %v5306_v34, 2 }
  0xfb   : > { %3912 = vmatprep.mubr.msk.f32.mxu1 %vm361_vm3, %v4767_v62  ;;  %4138 = vmatprep.mubr.msk.f32.mxu0 %vm361_vm3, %v5860_v59  ;;  %v2700_v62 = vrot.slane %v5317_v9, 2 }
  0xfe   : > { %3913 = vmatmul.mubr.msk.f32.gmra.mrb[18].mxu1 %vm361_vm3, %v4770_v6  ;;  %4139 = vmatmul.mubr.msk.f32.gmra.mrb[2].mxu0 %vm361_vm3, %v5861_v22  ;;  %v5907_v6 = vld [vmem:[#allocation48_spill] sm:$0xff] }
  0xff   : > { %3915 = vmatprep.mubr.msk.f32.mxu1 %vm361_vm3, %v4799_v29  ;;  %4141 = vmatprep.mubr.msk.f32.mxu0 %vm361_vm3, %v5862_v42  ;;  %v5905_v29 = vld [vmem:[#allocation38_spill] sm:$0xff] }
 0x102   : > { %3916 = vmatmul.mubr.msk.f32.gmra.mrb[20].mxu1 %vm361_vm3, %v4802_v36  ;;  %4142 = vmatmul.mubr.msk.f32.gmra.mrb[4].mxu0 %vm361_vm3, %v5863_v4  ;;  %v5908_v36 = vld [vmem:[#allocation49_spill] sm:$0xff] }
 0x103   : > { %3918 = vmatprep.mubr.msk.f32.mxu1 %vm361_vm3, %v4838_v7  ;;  %4144 = vmatprep.mubr.msk.f32.mxu0 %vm361_vm3, %v5864_v24  ;;  %v5902_v7 = vld [vmem:[#allocation45_spill] sm:$0xff] }
 0x106   : > { %3919 = vmatmul.mubr.msk.f32.gmra.mrb[22].mxu1 %vm361_vm3, %v4841_v26  ;;  %4145 = vmatmul.mubr.msk.f32.gmra.mrb[6].mxu0 %vm361_vm3, %v5865_v60  ;;  %v2702_v26 = vrot.slane %v5444_v40, 2 }
 0x107   : > { %3921 = vmatprep.mubr.msk.f32.mxu1 %vm361_vm3, %v4876_v50  ;;  %4147 = vmatprep.mubr.msk.f32.mxu0 %vm361_vm3, %v4941_v46  ;;  %v5898_v50 = vld [vmem:[#allocation41_spill] sm:$0xff] }
 0x10a   : > { %3922 = vmatmul.mubr.msk.f32.gmra.mrb[24].mxu1 %vm361_vm3, %v4879_v31  ;;  %4148 = vmatmul.mubr.msk.f32.gmra.mrb[8].mxu0 %vm361_vm3, %v5866_v8  ;;  %v2701_v31 = vsel %vm945_vm5, %v2699_v43, %v2700_v62 }
 0x10b   : > { %3924 = vmatprep.mubr.msk.f32.mxu1 %vm361_vm3, %v4911_v45  ;;  %4150 = vmatprep.mubr.msk.f32.mxu0 %vm361_vm3, %v4976_v51  ;;  %v2703_v45 = vsel %vm945_vm5, %v2700_v62, %v2702_v26 }
 0x10e   : > { %3925 = vmatmul.mubr.msk.f32.gmra.mrb[26].mxu1 %vm361_vm3, %v4914_v58  ;;  %4151 = vmatmul.mubr.msk.f32.gmra.mrb[10].mxu0 %vm361_vm3, %v4993_v47 }
 0x10f   : > { %3927 = vmatprep.mubr.msk.f32.mxu1 %vm361_vm3, %v4946_v5  ;;  %4153 = vmatprep.mubr.msk.f32.mxu0 %vm361_vm3, %v5898_v50  ;;  %v5909_v5 = vld [vmem:[#allocation50_spill] sm:$0xff] }
 0x112   : > { %3928 = vmatmul.mubr.msk.f32.gmra.mrb[28].mxu1 %vm361_vm3, %v5899_v0  ;;  %4154 = vmatmul.mubr.msk.f32.gmra.mrb[12].mxu0 %vm361_vm3, %v5016_v28 }
 0x113   : > { %3930 = vmatprep.mubr.msk.f32.mxu1 %vm361_vm3, %v5118_v14  ;;  %4156 = vmatprep.mubr.msk.f32.mxu0 %vm361_vm3, %v5020_v53 }
 0x116   : > { %3931 = vmatmul.mubr.msk.f32.gmra.mrb[30].mxu1 %vm361_vm3, %v5121_v15  ;;  %4157 = vmatmul.mubr.msk.f32.gmra.mrb[14].mxu0 %vm361_vm3, %v5033_v54  ;;  %v5900_v15 = vld [vmem:[#allocation44_spill] sm:$0xff] }
 0x117   : > { %3959 = vmatprep.mubr.msk.f32.mxu1 %vm361_vm3, %v5882_v44  ;;  %4159 = vmatprep.mubr.msk.f32.mxu0 %vm361_vm3, %v5037_v19 }
 0x11a   : > { %3960 = vmatmul.mubr.msk.f32.vlgmr.msra.gmra.mrb[16].mxu1 %vm361_vm3, %v5883_v30  ;;  %4160 = vmatmul.mubr.msk.f32.gmra.mrb[16].mxu0 %vm361_vm3, %v5053_v35 }
 0x11b   : > { %3962 = vmatprep.mubr.msk.f32.mxu1 %vm361_vm3, %v5885_v10  ;;  %4162 = vmatprep.mubr.msk.f32.mxu0 %vm361_vm3, %v5057_v55 }
 0x11e   : > { %3963 = vmatmul.mubr.msk.f32.gmra.mrb[18].mxu1 %vm361_vm3, %v5887_v63  ;;  %4163 = vmatmul.mubr.msk.f32.gmra.mrb[18].mxu0 %vm361_vm3, %v5073_v20 }
 0x11f   : > { %3965 = vmatprep.mubr.msk.f32.mxu1 %vm361_vm3, %v5888_v11  ;;  %4165 = vmatprep.mubr.msk.f32.mxu0 %vm361_vm3, %v5077_v61 }
 0x122   : > { %3966 = vmatmul.mubr.msk.f32.gmra.mrb[20].mxu1 %vm361_vm3, %v5889_v23  ;;  %4166 = vmatmul.mubr.msk.f32.gmra.mrb[20].mxu0 %vm361_vm3, %v5090_v52 }
 0x123   : > { %3968 = vmatprep.mubr.msk.f32.mxu1 %vm361_vm3, %v5890_v13  ;;  %4168 = vmatprep.mubr.msk.f32.mxu0 %vm361_vm3, %v5877_v41 }
 0x126   : > { %3969 = vmatmul.mubr.msk.f32.gmra.mrb[22].mxu1 %vm361_vm3, %v5891_v3  ;;  %4169 = vmatmul.mubr.msk.f32.gmra.mrb[22].mxu0 %vm361_vm3, %v5900_v15 }
 0x127   : > { %3971 = vmatprep.mubr.msk.f32.mxu1 %vm361_vm3, %v5901_v2  ;;  %4171 = vmatprep.mubr.msk.f32.mxu0 %vm361_vm3, %v5902_v7 }
 0x12a   : > { %3972 = vmatmul.mubr.msk.f32.gmra.mrb[24].mxu1 %vm361_vm3, %v5903_v16  ;;  %4172 = vmatmul.mubr.msk.f32.gmra.mrb[24].mxu0 %vm361_vm3, %v5904_v18 }
 0x12b   : > { %3974 = vmatprep.mubr.msk.f32.mxu1 %vm361_vm3, %v5905_v29  ;;  %4174 = vmatprep.mubr.msk.f32.mxu0 %vm361_vm3, %v5906_v37 }
 0x12e   : > { %3975 = vmatmul.mubr.msk.f32.gmra.mrb[26].mxu1 %vm361_vm3, %v5895_v12  ;;  %4175 = vmatmul.mubr.msk.f32.gmra.mrb[26].mxu0 %vm361_vm3, %v5907_v6 }
 0x12f   : > { %3977 = vmatprep.mubr.msk.f32.mxu1 %vm361_vm3, %v5896_v39  ;;  %4177 = vmatprep.mubr.msk.f32.mxu0 %vm361_vm3, %v5908_v36 }
 0x132   : > { %3978 = vmatmul.mubr.msk.f32.gmra.mrb[28].mxu1 %vm361_vm3, %v5897_v49  ;;  %4178 = vmatmul.mubr.msk.f32.gmra.mrb[28].mxu0 %vm361_vm3, %v5909_v5 }
 0x133   : > { %3980 = vmatprep.mubr.msk.f32.mxu1 %vm361_vm3, %v5441_v21  ;;  %4180 = vmatprep.mubr.msk.f32.mxu0 %vm361_vm3, %v2701_v31 }
 0x136   : > { %3981 = vmatmul.mubr.msk.f32.gmra.mrb[30].mxu1 %vm361_vm3, %v5455_v56  ;;  %4181 = vmatmul.mubr.msk.f32.gmra.mrb[30].mxu0 %vm361_vm3, %v2703_v45 }
 0x1ad   : > { %v3887_v58 = vpop.f32.mrb[0].mxu1 }
 0x1ae   : > { %v1429_v46 = vpop.f32.mrb[1].mxu1 }
 0x1b1   : > { %v3890_v51 = vpop.f32.mrb[2].mxu1 }
 0x1b2   : > { %v1439_v14 = vpop.f32.mrb[3].mxu1 }
 0x1b5   : > { %v3893_v47 = vpop.f32.mrb[4].mxu1 }
 0x1b6   : > { %v1449_v28 = vpop.f32.mrb[5].mxu1 }
 0x1b9   : > { %v3896_v53 = vpop.f32.mrb[6].mxu1 }
 0x1ba   : > { %v1459_v54 = vpop.f32.mrb[7].mxu1 }
 0x1bd   : > { %v3899_v19 = vpop.f32.mrb[8].mxu1 }
 0x1be   : > { %v1469_v35 = vpop.f32.mrb[9].mxu1 }
 0x1c1   : > { %v3902_v55 = vpop.f32.mrb[10].mxu1 }
 0x1c2   : > { %v5601_v20 = vpop.f32.mrb[11].mxu1 }
 0x1c5   : > { %v5604_v61 = vpop.f32.mrb[12].mxu1 }
 0x1c6   : > { %v5606_v52 = vpop.f32.mrb[13].mxu1 }
 0x1c9   : > { %v5608_v40 = vpop.f32.mrb[14].mxu1 }
 0x1ca   : > { %v5610_v12 = vpop.f32.mrb[15].mxu1 }
 0x1cd   : > { %v4137_v11 = vpop.f32.mrb[0].mxu0 }
 0x1ce   : > { %v4185_v17 = vadd.f32 %v4137_v11, %v3887_v58  ;;  %v2777_v59 = vpop.f32.mrb[1].mxu0 }
 0x1cf   : > { %v4186_v22 = vadd.f32 %v2777_v59, %v1429_v46 }
 0x1d0   : > { %v2976_v42 = vadd.f32 %v4185_v17, %v5615_v1 }
 0x1d1   : > { %v2975_v4 = vadd.f32 %v4186_v22, %v5615_v1  ;;  %v4140_v24 = vpop.f32.mrb[2].mxu0 }
 0x1d2   : > { %v3008_v60 = vmax.f32 %v2976_v42, 0.0  ;;  %v4187_v34 = vadd.f32 %v4140_v24, %v3890_v51  ;;  %v2787_v8 = vpop.f32.mrb[3].mxu0 }
 0x1d3   : > { %v3007_v9 = vmax.f32 %v2975_v4, 0.0  ;;  %v4188_v41 = vadd.f32 %v2787_v8, %v1439_v14 }
 0x1d4   : > { %3041 = vst.msk [vmem:[%s5621_s6 + $0x8] sm:$0xff] %vm3039_vm6, %v3008_v60  ;;  %v2978_v44 = vadd.f32 %v4187_v34, %v5615_v1 }
 0x1d5   : > { %3040 = vst.msk [vmem:[%s5621_s6] sm:$0xff] %vm3039_vm6, %v3007_v9  ;;  %v2977_v30 = vadd.f32 %v4188_v41, %v5615_v1  ;;  %v4143_v10 = vpop.f32.mrb[4].mxu0 }
 0x1d6   : > { %v3010_v63 = vmax.f32 %v2978_v44, 0.0  ;;  %v4189_v23 = vadd.f32 %v4143_v10, %v3893_v47  ;;  %v2797_v13 = vpop.f32.mrb[5].mxu0 }
 0x1d7   : > { %v3009_v3 = vmax.f32 %v2977_v30, 0.0  ;;  %v4190_v21 = vadd.f32 %v2797_v13, %v1449_v28 }
 0x1d8   : > { %3043 = vst.msk [vmem:[%s5621_s6 + $0x18] sm:$0xff] %vm3039_vm6, %v3010_v63  ;;  %v2980_v25 = vadd.f32 %v4189_v23, %v5615_v1 }
 0x1d9   : > { %3042 = vst.msk [vmem:[%s5621_s6 + $0x10] sm:$0xff] %vm3039_vm6, %v3009_v3  ;;  %v2979_v32 = vadd.f32 %v4190_v21, %v5615_v1  ;;  %v4146_v38 = vpop.f32.mrb[6].mxu0 }
 0x1da   : > { %v3012_v39 = vmax.f32 %v2980_v25, 0.0  ;;  %v4191_v48 = vadd.f32 %v4146_v38, %v3896_v53  ;;  %v2807_v49 = vpop.f32.mrb[7].mxu0 }
 0x1db   : > { %v3011_v56 = vmax.f32 %v2979_v32, 0.0  ;;  %v4192_v27 = vadd.f32 %v2807_v49, %v1459_v54 }
 0x1dc   : > { %3045 = vst.msk [vmem:[%s5621_s6 + $0x28] sm:$0xff] %vm3039_vm6, %v3012_v39  ;;  %v2982_v33 = vadd.f32 %v4191_v48, %v5615_v1 }
 0x1dd   : > { %3044 = vst.msk [vmem:[%s5621_s6 + $0x20] sm:$0xff] %vm3039_vm6, %v3011_v56  ;;  %v2981_v57 = vadd.f32 %v4192_v27, %v5615_v1  ;;  %v4149_v50 = vpop.f32.mrb[8].mxu0 }
 0x1de   : > { %v3014_v0 = vmax.f32 %v2982_v33, 0.0  ;;  %v4193_v15 = vadd.f32 %v4149_v50, %v3899_v19  ;;  %v2817_v2 = vpop.f32.mrb[9].mxu0 }
 0x1df   : > { %v3013_v7 = vmax.f32 %v2981_v57, 0.0  ;;  %v4194_v16 = vadd.f32 %v2817_v2, %v1469_v35 }
 0x1e0   : > { %3047 = vst.msk [vmem:[%s5621_s6 + $0x38] sm:$0xff] %vm3039_vm6, %v3014_v0  ;;  %v2984_v18 = vadd.f32 %v4193_v15, %v5615_v1 }
 0x1e1   : > { %3046 = vst.msk [vmem:[%s5621_s6 + $0x30] sm:$0xff] %vm3039_vm6, %v3013_v7  ;;  %v2983_v29 = vadd.f32 %v4194_v16, %v5615_v1  ;;  %v4152_v37 = vpop.f32.mrb[10].mxu0 }
 0x1e2   : > { %v3016_v43 = vmax.f32 %v2984_v18, 0.0  ;;  %v4195_v62 = vadd.f32 %v4152_v37, %v3902_v55  ;;  %v2827_v6 = vpop.f32.mrb[11].mxu0 }
 0x1e3   : > { %v3015_v36 = vmax.f32 %v2983_v29, 0.0  ;;  %v4196_v26 = vadd.f32 %v2827_v6, %v5601_v20 }
 0x1e4   : > { %3049 = vst.msk [vmem:[%s5621_s6 + $0x48] sm:$0xff] %vm3039_vm6, %v3016_v43  ;;  %v2986_v31 = vadd.f32 %v4195_v62, %v5615_v1 }
 0x1e5   : > { %3048 = vst.msk [vmem:[%s5621_s6 + $0x40] sm:$0xff] %vm3039_vm6, %v3015_v36  ;;  %v2985_v5 = vadd.f32 %v4196_v26, %v5615_v1  ;;  %v4155_v45 = vpop.f32.mrb[12].mxu0 }
 0x1e6   : > { %v3018_v58 = vmax.f32 %v2986_v31, 0.0  ;;  %v4197_v46 = vadd.f32 %v4155_v45, %v5604_v61  ;;  %v2837_v51 = vpop.f32.mrb[13].mxu0 }
 0x1e7   : > { %v3017_v14 = vmax.f32 %v2985_v5, 0.0  ;;  %v4198_v47 = vadd.f32 %v2837_v51, %v5606_v52 }
 0x1e8   : > { %3051 = vst.msk [vmem:[%s5621_s6 + $0x58] sm:$0xff] %vm3039_vm6, %v3018_v58  ;;  %v2988_v28 = vadd.f32 %v4197_v46, %v5615_v1 }
 0x1e9   : > { %3050 = vst.msk [vmem:[%s5621_s6 + $0x50] sm:$0xff] %vm3039_vm6, %v3017_v14  ;;  %v2987_v53 = vadd.f32 %v4198_v47, %v5615_v1  ;;  %v4158_v54 = vpop.f32.mrb[14].mxu0 }
 0x1ea   : > { %v3020_v19 = vmax.f32 %v2988_v28, 0.0  ;;  %v4199_v35 = vadd.f32 %v4158_v54, %v5608_v40  ;;  %v2847_v55 = vpop.f32.mrb[15].mxu0 }
 0x1eb   : > { %v3019_v20 = vmax.f32 %v2987_v53, 0.0  ;;  %v4200_v61 = vadd.f32 %v2847_v55, %v5610_v12 }
 0x1ec   : > { %3053 = vst.msk [vmem:[%s5621_s6 + $0x68] sm:$0xff] %vm3039_vm6, %v3020_v19  ;;  %v2990_v52 = vadd.f32 %v4199_v35, %v5615_v1 }
 0x1ed   : > { %v3961_v11 = vpop.f32.mrb[16].mxu1  ;;  %3052 = vst.msk [vmem:[%s5621_s6 + $0x60] sm:$0xff] %vm3039_vm6, %v3019_v20  ;;  %v2989_v17 = vadd.f32 %v4200_v61, %v5615_v1  ;;  %v4161_v59 = vpop.f32.mrb[16].mxu0 }
 0x1ee   : > { %v1779_v22 = vpop.f32.mrb[17].mxu1  ;;  %v3022_v42 = vmax.f32 %v2990_v52, 0.0  ;;  %v4201_v4 = vadd.f32 %v4161_v59, %v3961_v11  ;;  %v2857_v40 = vpop.f32.mrb[17].mxu0 }
 0x1ef   : > { %v3021_v24 = vmax.f32 %v2989_v17, 0.0  ;;  %v4202_v60 = vadd.f32 %v2857_v40, %v1779_v22 }
 0x1f0   : > { %3055 = vst.msk [vmem:[%s5621_s6 + $0x78] sm:$0xff] %vm3039_vm6, %v3022_v42  ;;  %v2992_v12 = vadd.f32 %v4201_v4, %v5615_v1 }
 0x1f1   : > { %v3964_v34 = vpop.f32.mrb[18].mxu1  ;;  %3054 = vst.msk [vmem:[%s5621_s6 + $0x70] sm:$0xff] %vm3039_vm6, %v3021_v24  ;;  %v2991_v8 = vadd.f32 %v4202_v60, %v5615_v1  ;;  %v4164_v9 = vpop.f32.mrb[18].mxu0 }
 0x1f2   : > { %v1789_v41 = vpop.f32.mrb[19].mxu1  ;;  %v3024_v44 = vmax.f32 %v2992_v12, 0.0  ;;  %v4203_v30 = vadd.f32 %v4164_v9, %v3964_v34  ;;  %v2867_v10 = vpop.f32.mrb[19].mxu0 }
 0x1f3   : > { %v3023_v63 = vmax.f32 %v2991_v8, 0.0  ;;  %v4204_v23 = vadd.f32 %v2867_v10, %v1789_v41 }
 0x1f4   : > { %3057 = vst.msk [vmem:[%s5621_s6 + $0x88] sm:$0xff] %vm3039_vm6, %v3024_v44  ;;  %v2994_v13 = vadd.f32 %v4203_v30, %v5615_v1 }
 0x1f5   : > { %v3967_v3 = vpop.f32.mrb[20].mxu1  ;;  %3056 = vst.msk [vmem:[%s5621_s6 + $0x80] sm:$0xff] %vm3039_vm6, %v3023_v63  ;;  %v2993_v21 = vadd.f32 %v4204_v23, %v5615_v1  ;;  %v4167_v25 = vpop.f32.mrb[20].mxu0 }
 0x1f6   : > { %v1799_v32 = vpop.f32.mrb[21].mxu1  ;;  %v3026_v38 = vmax.f32 %v2994_v13, 0.0  ;;  %v4205_v39 = vadd.f32 %v4167_v25, %v3967_v3  ;;  %v2877_v48 = vpop.f32.mrb[21].mxu0 }
 0x1f7   : > { %v3025_v49 = vmax.f32 %v2993_v21, 0.0  ;;  %v4206_v56 = vadd.f32 %v2877_v48, %v1799_v32 }
 0x1f8   : > { %3059 = vst.msk [vmem:[%s5621_s6 + $0x98] sm:$0xff] %vm3039_vm6, %v3026_v38  ;;  %v2996_v27 = vadd.f32 %v4205_v39, %v5615_v1 }
 0x1f9   : > { %v3970_v33 = vpop.f32.mrb[22].mxu1  ;;  %3058 = vst.msk [vmem:[%s5621_s6 + $0x90] sm:$0xff] %vm3039_vm6, %v3025_v49  ;;  %v2995_v57 = vadd.f32 %v4206_v56, %v5615_v1  ;;  %v4170_v50 = vpop.f32.mrb[22].mxu0 }
 0x1fa   : > { %v1809_v0 = vpop.f32.mrb[23].mxu1  ;;  %v3028_v15 = vmax.f32 %v2996_v27, 0.0  ;;  %v4207_v2 = vadd.f32 %v4170_v50, %v3970_v33  ;;  %v2887_v7 = vpop.f32.mrb[23].mxu0 }
 0x1fb   : > { %v3027_v16 = vmax.f32 %v2995_v57, 0.0  ;;  %v4208_v18 = vadd.f32 %v2887_v7, %v1809_v0 }
 0x1fc   : > { %3061 = vst.msk [vmem:[%s5621_s6 + $0xa8] sm:$0xff] %vm3039_vm6, %v3028_v15  ;;  %v2998_v29 = vadd.f32 %v4207_v2, %v5615_v1 }
 0x1fd   : > { %v3973_v37 = vpop.f32.mrb[24].mxu1  ;;  %3060 = vst.msk [vmem:[%s5621_s6 + $0xa0] sm:$0xff] %vm3039_vm6, %v3027_v16  ;;  %v2997_v43 = vadd.f32 %v4208_v18, %v5615_v1  ;;  %v4173_v62 = vpop.f32.mrb[24].mxu0 }
 0x1fe   : > { %v1819_v6 = vpop.f32.mrb[25].mxu1  ;;  %v3030_v36 = vmax.f32 %v2998_v29, 0.0  ;;  %v4209_v26 = vadd.f32 %v4173_v62, %v3973_v37  ;;  %v2897_v31 = vpop.f32.mrb[25].mxu0 }
 0x1ff   : > { %v3029_v5 = vmax.f32 %v2997_v43, 0.0  ;;  %v4210_v45 = vadd.f32 %v2897_v31, %v1819_v6 }
 0x200   : > { %3063 = vst.msk [vmem:[%s5621_s6 + $0xb8] sm:$0xff] %vm3039_vm6, %v3030_v36  ;;  %v3000_v58 = vadd.f32 %v4209_v26, %v5615_v1 }
 0x201   : > { %v3976_v46 = vpop.f32.mrb[26].mxu1  ;;  %3062 = vst.msk [vmem:[%s5621_s6 + $0xb0] sm:$0xff] %vm3039_vm6, %v3029_v5  ;;  %v2999_v51 = vadd.f32 %v4210_v45, %v5615_v1  ;;  %v4176_v14 = vpop.f32.mrb[26].mxu0 }
 0x202   : > { %v1829_v47 = vpop.f32.mrb[27].mxu1  ;;  %v3032_v28 = vmax.f32 %v3000_v58, 0.0  ;;  %v4211_v53 = vadd.f32 %v4176_v14, %v3976_v46  ;;  %v2907_v54 = vpop.f32.mrb[27].mxu0 }
 0x203   : > { %v3031_v19 = vmax.f32 %v2999_v51, 0.0  ;;  %v4212_v35 = vadd.f32 %v2907_v54, %v1829_v47 }
 0x204   : > { %3065 = vst.msk [vmem:[%s5621_s6 + $0xc8] sm:$0xff] %vm3039_vm6, %v3032_v28  ;;  %v3002_v55 = vadd.f32 %v4211_v53, %v5615_v1 }
 0x205   : > { %v3979_v20 = vpop.f32.mrb[28].mxu1  ;;  %3064 = vst.msk [vmem:[%s5621_s6 + $0xc0] sm:$0xff] %vm3039_vm6, %v3031_v19  ;;  %v3001_v61 = vadd.f32 %v4212_v35, %v5615_v1  ;;  %v4179_v52 = vpop.f32.mrb[28].mxu0 }
 0x206   : > { %v1839_v11 = vpop.f32.mrb[29].mxu1  ;;  %v3034_v17 = vmax.f32 %v3002_v55, 0.0  ;;  %v4213_v59 = vadd.f32 %v4179_v52, %v3979_v20  ;;  %v2917_v22 = vpop.f32.mrb[29].mxu0 }
 0x207   : > { %v3033_v42 = vmax.f32 %v3001_v61, 0.0  ;;  %v4214_v4 = vadd.f32 %v2917_v22, %v1839_v11 }
 0x208   : > { %3067 = vst.msk [vmem:[%s5621_s6 + $0xd8] sm:$0xff] %vm3039_vm6, %v3034_v17  ;;  %v3004_v40 = vadd.f32 %v4213_v59, %v5615_v1 }
 0x209   : > { %v3982_v24 = vpop.f32.mrb[30].mxu1  ;;  %3066 = vst.msk [vmem:[%s5621_s6 + $0xd0] sm:$0xff] %vm3039_vm6, %v3033_v42  ;;  %v3003_v60 = vadd.f32 %v4214_v4, %v5615_v1  ;;  %v4182_v12 = vpop.f32.mrb[30].mxu0 }
 0x20a   : > { %v1849_v34 = vpop.f32.mrb[31].mxu1  ;;  %v3036_v8 = vmax.f32 %v3004_v40, 0.0  ;;  %v4215_v9 = vadd.f32 %v4182_v12, %v3982_v24  ;;  %v2927_v41 = vpop.f32.mrb[31].mxu0 }
 0x20b   : > { %v3035_v44 = vmax.f32 %v3003_v60, 0.0  ;;  %v4216_v30 = vadd.f32 %v2927_v41, %v1849_v34 }
 0x20c   : > { %3069 = vst.msk [vmem:[%s5621_s6 + $0xe8] sm:$0xff] %vm3039_vm6, %v3036_v8  ;;  %v3006_v10 = vadd.f32 %v4215_v9, %v5615_v1 }
 0x20d   : > { %3068 = vst.msk [vmem:[%s5621_s6 + $0xe0] sm:$0xff] %vm3039_vm6, %v3035_v44  ;;  %v3005_v63 = vadd.f32 %v4216_v30, %v5615_v1 }
 0x20e   : > { %v3038_v23 = vmax.f32 %v3006_v10, 0.0 }
 0x20f   : > { %v3037_v13 = vmax.f32 %v3005_v63, 0.0 }
 0x210   : > { %3071 = vst.msk [vmem:[%s5621_s6 + $0xf8] sm:$0xff] %vm3039_vm6, %v3038_v23 }
 0x211   : > { %3070 = vst.msk [vmem:[%s5621_s6 + $0xf0] sm:$0xff] %vm3039_vm6, %v3037_v13 }
 0x212 PF: > { %s13_s12 = sadd.s32 1, %s4456_s12  }
 0x213   : > { %p10_p5 = scmp.ge.s32.totalorder %s13_s12, 6  }
 0x215   :  { %12 = sbr.rel (!%p10_p5) target bundleno = 1 (0x1), region = 62 }

// kernel: rsscnn_forward.5
= control target key start
LH: loop header
LB: loop body
LE: loop exit
PB: predicated region body
PF: predicated region fallthrough
CT: control target
= control target key end

     0   :  { %s1395_s15 = smov 0   ;;  %s1397_s16 = smov 0   ;;  %s1710_s0 = inlined_call_operand.vmem [shape: f32[4,256], index: 0, kind: input, shape index: {}]   ;;  %s1711_s1 = inlined_call_operand.vmem [shape: bf16[256,4096], index: 1, kind: input, shape index: {}]   ;;  %s1712_s2 = inlined_call_operand.vmem [shape: f32[1,4096], index: 2, kind: input, shape index: {}]   ;;  %s1713_s3 = inlined_call_operand.vmem [shape: f32[1,4096], index: 3, kind: input, shape index: {}]   ;;  %s1714_s4 = inlined_call_operand.vmem [shape: f32[2,4,1], index: 4, kind: output, shape index: {}]  }
   0x1   :  { %s1399_s17 = smov 0   ;;  %s1401_s18 = smov 0  }
   0x2   :  { %s1403_s19 = smov 0   ;;  %s1405_s20 = smov 0  }
   0x3   :  { %s1407_s21 = smov 0  }
   0x4 LB: > { %s23_s22 = sadd.s32 1, %s1359_s19  ;;  %s26_s23 = sadd.s32 1, %s1363_s20  ;;  %s1367_s21 = sphi %s1407_s21, %s14_s21   ;;  %s1363_s20 = sphi %s1405_s20, %s1720_s20   ;;  %s1359_s19 = sphi %s1403_s19, %s1719_s19   ;;  %s1355_s18 = sphi %s1401_s18, %s1718_s18   ;;  %s1351_s17 = sphi %s1399_s17, %s1717_s17   ;;  %s1347_s16 = sphi %s1397_s16, %s1716_s16   ;;  %s1343_s15 = sphi %s1395_s15, %s1715_s15  }
   0x5   : > { %p24_p0 = scmp.ge.s32.totalorder %s23_s22, 4  ;;  %p65_p1 = scmp.ne.s32.totalorder %s1347_s16, %s1343_s15 }
   0x6   : > { %p66_p2 = scmp.eq.s32.totalorder %s1367_s21, 0  ;;  %s1071_s24 = sshll.u32 %s1363_s20, 2 }
   0x7   : > { %s1722_s22 = smov (%p24_p0, %s23_s22), 0  ;;  %s1724_s23 = smov (!%p24_p0, %s26_s23), %s1363_s20 }
   0x8   : > { %p28_p3 = scmp.ge.s32.totalorder %s1724_s23, 2  ;;  %p67_p4 = por %p66_p2, %p65_p1 }
   0x9   : > { %s52_s25 = sadd.s32 %s1359_s19, %s1071_s24  ;;  %s58_s29 = sadd.s32 1, %s1347_s16 }
   0xa   : > { %s1726_s23 = smov (%p28_p3, %s1724_s23), 0  ;;  %p1078_p6 = scmp.ge.s32.totalorder %s1367_s21, 8 }
   0xb   : > { %s1072_s26 = sshll.u32 %s1726_s23, 2 }
   0xc   : > { %s54_s27 = sadd.s32 %s1072_s26, %s1722_s22  ;;  %180 = sbr.rel (%p1078_p6) target bundleno = 55 (0x37), region = 20 }
   0xd   : > { %s55_s28 = ssub.s32 %s52_s25, %s54_s27 }
   0xe   : > { %p56_p5 = scmp.eq.s32.totalorder %s55_s28, 0 }
  0x10   : > { %s1446_s30 = scalar_select %p56_p5, %s1347_s16, %s58_s29  }
  0x13   : > { %183 = sbr.rel (!%p67_p4) target bundleno = 55 (0x37), region = 24  ;;  %s185_s5 = sand.u32 (%p67_p4), 1, %s1347_s16  }
  0x14   : > { %s1158_s6 = sshll.u32 (%p67_p4), %s52_s25, 4  ;;  %s1079_s7 = sshll.u32 (%p67_p4), %s185_s5, 9 }
  0x15   : > { %s1453_s10 = scalar_lea.vmem (%p67_p4), %s1711_s1, %s1158_s6  ;;  %s1458_s11 = scalar_lea.vmem (%p67_p4), [#allocation3], %s1079_s7 }
  0x16   : > { %v205_v0 = vld [vmem:[%s1453_s10] sm:$0xff] (%p67_p4)  ;;  %v207_v1 = vld [vmem:[%s1453_s10 + $0x8] sm:$0xff] (%p67_p4) }
  0x17   : > { %v209_v2 = vld [vmem:[%s1453_s10 + $0x80] sm:$0xff] (%p67_p4)  ;;  %206 = vst [vmem:[%s1458_s11] sm:$0xff] (%p67_p4), %v205_v0  ;;  %208 = vst [vmem:[%s1458_s11 + $0x8] sm:$0xff] (%p67_p4), %v207_v1  ;;  %v211_v3 = vld [vmem:[%s1453_s10 + $0x88] sm:$0xff] (%p67_p4) }
  0x18   : > { %210 = vst [vmem:[%s1458_s11 + $0x10] sm:$0xff] (%p67_p4), %v209_v2  ;;  %v213_v4 = vld [vmem:[%s1453_s10 + $0x100] sm:$0xff] (%p67_p4)  ;;  %v215_v5 = vld [vmem:[%s1453_s10 + $0x108] sm:$0xff] (%p67_p4)  ;;  %212 = vst [vmem:[%s1458_s11 + $0x18] sm:$0xff] (%p67_p4), %v211_v3 }
  0x19   : > { %214 = vst [vmem:[%s1458_s11 + $0x20] sm:$0xff] (%p67_p4), %v213_v4  ;;  %216 = vst [vmem:[%s1458_s11 + $0x28] sm:$0xff] (%p67_p4), %v215_v5  ;;  %v217_v6 = vld [vmem:[%s1453_s10 + $0x180] sm:$0xff] (%p67_p4)  ;;  %v219_v7 = vld [vmem:[%s1453_s10 + $0x188] sm:$0xff] (%p67_p4) }
  0x1a   : > { %v221_v8 = vld [vmem:[%s1453_s10 + $0x200] sm:$0xff]  ;;  %218 = vst [vmem:[%s1458_s11 + $0x30] sm:$0xff] %v217_v6  ;;  %220 = vst [vmem:[%s1458_s11 + $0x38] sm:$0xff] %v219_v7  ;;  %v223_v9 = vld [vmem:[%s1453_s10 + $0x208] sm:$0xff] }
  0x1b   : > { %222 = vst [vmem:[%s1458_s11 + $0x40] sm:$0xff] %v221_v8  ;;  %v225_v10 = vld [vmem:[%s1453_s10 + $0x280] sm:$0xff]  ;;  %v227_v11 = vld [vmem:[%s1453_s10 + $0x288] sm:$0xff]  ;;  %224 = vst [vmem:[%s1458_s11 + $0x48] sm:$0xff] %v223_v9 }
  0x1c   : > { %226 = vst [vmem:[%s1458_s11 + $0x50] sm:$0xff] %v225_v10  ;;  %228 = vst [vmem:[%s1458_s11 + $0x58] sm:$0xff] %v227_v11  ;;  %v229_v12 = vld [vmem:[%s1453_s10 + $0x300] sm:$0xff]  ;;  %v231_v13 = vld [vmem:[%s1453_s10 + $0x308] sm:$0xff] }
  0x1d   : > { %v233_v14 = vld [vmem:[%s1453_s10 + $0x380] sm:$0xff]  ;;  %230 = vst [vmem:[%s1458_s11 + $0x60] sm:$0xff] %v229_v12  ;;  %232 = vst [vmem:[%s1458_s11 + $0x68] sm:$0xff] %v231_v13  ;;  %v235_v15 = vld [vmem:[%s1453_s10 + $0x388] sm:$0xff] }
  0x1e   : > { %234 = vst [vmem:[%s1458_s11 + $0x70] sm:$0xff] %v233_v14  ;;  %v237_v16 = vld [vmem:[%s1453_s10 + $0x400] sm:$0xff]  ;;  %v239_v17 = vld [vmem:[%s1453_s10 + $0x408] sm:$0xff]  ;;  %236 = vst [vmem:[%s1458_s11 + $0x78] sm:$0xff] %v235_v15 }
  0x1f   : > { %238 = vst [vmem:[%s1458_s11 + $0x80] sm:$0xff] %v237_v16  ;;  %240 = vst [vmem:[%s1458_s11 + $0x88] sm:$0xff] %v239_v17  ;;  %v241_v18 = vld [vmem:[%s1453_s10 + $0x480] sm:$0xff]  ;;  %v243_v19 = vld [vmem:[%s1453_s10 + $0x488] sm:$0xff] }
  0x20   : > { %v245_v20 = vld [vmem:[%s1453_s10 + $0x500] sm:$0xff]  ;;  %242 = vst [vmem:[%s1458_s11 + $0x90] sm:$0xff] %v241_v18  ;;  %244 = vst [vmem:[%s1458_s11 + $0x98] sm:$0xff] %v243_v19  ;;  %v247_v21 = vld [vmem:[%s1453_s10 + $0x508] sm:$0xff] }
  0x21   : > { %246 = vst [vmem:[%s1458_s11 + $0xa0] sm:$0xff] %v245_v20  ;;  %v249_v22 = vld [vmem:[%s1453_s10 + $0x580] sm:$0xff]  ;;  %v251_v23 = vld [vmem:[%s1453_s10 + $0x588] sm:$0xff]  ;;  %248 = vst [vmem:[%s1458_s11 + $0xa8] sm:$0xff] %v247_v21 }
  0x22   : > { %250 = vst [vmem:[%s1458_s11 + $0xb0] sm:$0xff] %v249_v22  ;;  %252 = vst [vmem:[%s1458_s11 + $0xb8] sm:$0xff] %v251_v23  ;;  %v253_v24 = vld [vmem:[%s1453_s10 + $0x600] sm:$0xff]  ;;  %v255_v25 = vld [vmem:[%s1453_s10 + $0x608] sm:$0xff] }
  0x23   : > { %v257_v26 = vld [vmem:[%s1453_s10 + $0x680] sm:$0xff]  ;;  %254 = vst [vmem:[%s1458_s11 + $0xc0] sm:$0xff] %v253_v24  ;;  %256 = vst [vmem:[%s1458_s11 + $0xc8] sm:$0xff] %v255_v25  ;;  %v259_v27 = vld [vmem:[%s1453_s10 + $0x688] sm:$0xff] }
  0x24   : > { %258 = vst [vmem:[%s1458_s11 + $0xd0] sm:$0xff] %v257_v26  ;;  %v261_v28 = vld [vmem:[%s1453_s10 + $0x700] sm:$0xff]  ;;  %v263_v29 = vld [vmem:[%s1453_s10 + $0x708] sm:$0xff]  ;;  %260 = vst [vmem:[%s1458_s11 + $0xd8] sm:$0xff] %v259_v27 }
  0x25   : > { %262 = vst [vmem:[%s1458_s11 + $0xe0] sm:$0xff] %v261_v28  ;;  %264 = vst [vmem:[%s1458_s11 + $0xe8] sm:$0xff] %v263_v29  ;;  %v265_v30 = vld [vmem:[%s1453_s10 + $0x780] sm:$0xff]  ;;  %v267_v31 = vld [vmem:[%s1453_s10 + $0x788] sm:$0xff] }
  0x26   : > { %v269_v32 = vld [vmem:[%s1453_s10 + $0x800] sm:$0xff]  ;;  %266 = vst [vmem:[%s1458_s11 + $0xf0] sm:$0xff] %v265_v30  ;;  %268 = vst [vmem:[%s1458_s11 + $0xf8] sm:$0xff] %v267_v31  ;;  %v271_v33 = vld [vmem:[%s1453_s10 + $0x808] sm:$0xff] }
  0x27   : > { %270 = vst [vmem:[%s1458_s11 + $0x100] sm:$0xff] %v269_v32  ;;  %v273_v34 = vld [vmem:[%s1453_s10 + $0x880] sm:$0xff]  ;;  %v275_v35 = vld [vmem:[%s1453_s10 + $0x888] sm:$0xff]  ;;  %272 = vst [vmem:[%s1458_s11 + $0x108] sm:$0xff] %v271_v33 }
  0x28   : > { %274 = vst [vmem:[%s1458_s11 + $0x110] sm:$0xff] %v273_v34  ;;  %276 = vst [vmem:[%s1458_s11 + $0x118] sm:$0xff] %v275_v35  ;;  %v277_v36 = vld [vmem:[%s1453_s10 + $0x900] sm:$0xff]  ;;  %v279_v37 = vld [vmem:[%s1453_s10 + $0x908] sm:$0xff] }
  0x29   : > { %v281_v38 = vld [vmem:[%s1453_s10 + $0x980] sm:$0xff]  ;;  %278 = vst [vmem:[%s1458_s11 + $0x120] sm:$0xff] %v277_v36  ;;  %280 = vst [vmem:[%s1458_s11 + $0x128] sm:$0xff] %v279_v37  ;;  %v283_v39 = vld [vmem:[%s1453_s10 + $0x988] sm:$0xff] }
  0x2a   : > { %282 = vst [vmem:[%s1458_s11 + $0x130] sm:$0xff] %v281_v38  ;;  %v285_v40 = vld [vmem:[%s1453_s10 + $0xa00] sm:$0xff]  ;;  %v287_v41 = vld [vmem:[%s1453_s10 + $0xa08] sm:$0xff]  ;;  %284 = vst [vmem:[%s1458_s11 + $0x138] sm:$0xff] %v283_v39 }
  0x2b   : > { %286 = vst [vmem:[%s1458_s11 + $0x140] sm:$0xff] %v285_v40  ;;  %288 = vst [vmem:[%s1458_s11 + $0x148] sm:$0xff] %v287_v41  ;;  %v289_v42 = vld [vmem:[%s1453_s10 + $0xa80] sm:$0xff]  ;;  %v291_v43 = vld [vmem:[%s1453_s10 + $0xa88] sm:$0xff] }
  0x2c   : > { %v293_v44 = vld [vmem:[%s1453_s10 + $0xb00] sm:$0xff]  ;;  %290 = vst [vmem:[%s1458_s11 + $0x150] sm:$0xff] %v289_v42  ;;  %292 = vst [vmem:[%s1458_s11 + $0x158] sm:$0xff] %v291_v43  ;;  %v295_v45 = vld [vmem:[%s1453_s10 + $0xb08] sm:$0xff] }
  0x2d   : > { %294 = vst [vmem:[%s1458_s11 + $0x160] sm:$0xff] %v293_v44  ;;  %v297_v46 = vld [vmem:[%s1453_s10 + $0xb80] sm:$0xff]  ;;  %v299_v47 = vld [vmem:[%s1453_s10 + $0xb88] sm:$0xff]  ;;  %296 = vst [vmem:[%s1458_s11 + $0x168] sm:$0xff] %v295_v45 }
  0x2e   : > { %298 = vst [vmem:[%s1458_s11 + $0x170] sm:$0xff] %v297_v46  ;;  %300 = vst [vmem:[%s1458_s11 + $0x178] sm:$0xff] %v299_v47  ;;  %v301_v48 = vld [vmem:[%s1453_s10 + $0xc00] sm:$0xff]  ;;  %v303_v49 = vld [vmem:[%s1453_s10 + $0xc08] sm:$0xff] }
  0x2f   : > { %v305_v50 = vld [vmem:[%s1453_s10 + $0xc80] sm:$0xff]  ;;  %302 = vst [vmem:[%s1458_s11 + $0x180] sm:$0xff] %v301_v48  ;;  %304 = vst [vmem:[%s1458_s11 + $0x188] sm:$0xff] %v303_v49  ;;  %v307_v51 = vld [vmem:[%s1453_s10 + $0xc88] sm:$0xff] }
  0x30   : > { %306 = vst [vmem:[%s1458_s11 + $0x190] sm:$0xff] %v305_v50  ;;  %v309_v52 = vld [vmem:[%s1453_s10 + $0xd00] sm:$0xff]  ;;  %v311_v53 = vld [vmem:[%s1453_s10 + $0xd08] sm:$0xff]  ;;  %308 = vst [vmem:[%s1458_s11 + $0x198] sm:$0xff] %v307_v51 }
  0x31   : > { %310 = vst [vmem:[%s1458_s11 + $0x1a0] sm:$0xff] %v309_v52  ;;  %312 = vst [vmem:[%s1458_s11 + $0x1a8] sm:$0xff] %v311_v53  ;;  %v313_v54 = vld [vmem:[%s1453_s10 + $0xd80] sm:$0xff]  ;;  %v315_v55 = vld [vmem:[%s1453_s10 + $0xd88] sm:$0xff] }
  0x32   : > { %v317_v56 = vld [vmem:[%s1453_s10 + $0xe00] sm:$0xff]  ;;  %314 = vst [vmem:[%s1458_s11 + $0x1b0] sm:$0xff] %v313_v54  ;;  %316 = vst [vmem:[%s1458_s11 + $0x1b8] sm:$0xff] %v315_v55  ;;  %v319_v57 = vld [vmem:[%s1453_s10 + $0xe08] sm:$0xff] }
  0x33   : > { %318 = vst [vmem:[%s1458_s11 + $0x1c0] sm:$0xff] %v317_v56  ;;  %v321_v58 = vld [vmem:[%s1453_s10 + $0xe80] sm:$0xff]  ;;  %v323_v59 = vld [vmem:[%s1453_s10 + $0xe88] sm:$0xff]  ;;  %320 = vst [vmem:[%s1458_s11 + $0x1c8] sm:$0xff] %v319_v57 }
  0x34   : > { %322 = vst [vmem:[%s1458_s11 + $0x1d0] sm:$0xff] %v321_v58  ;;  %324 = vst [vmem:[%s1458_s11 + $0x1d8] sm:$0xff] %v323_v59  ;;  %v325_v60 = vld [vmem:[%s1453_s10 + $0xf00] sm:$0xff]  ;;  %v327_v61 = vld [vmem:[%s1453_s10 + $0xf08] sm:$0xff] }
  0x35   : > { %v329_v62 = vld [vmem:[%s1453_s10 + $0xf80] sm:$0xff]  ;;  %326 = vst [vmem:[%s1458_s11 + $0x1e0] sm:$0xff] %v325_v60  ;;  %328 = vst [vmem:[%s1458_s11 + $0x1e8] sm:$0xff] %v327_v61  ;;  %v331_v63 = vld [vmem:[%s1453_s10 + $0xf88] sm:$0xff] }
  0x36   : > { %330 = vst [vmem:[%s1458_s11 + $0x1f0] sm:$0xff] %v329_v62  ;;  %332 = vst [vmem:[%s1458_s11 + $0x1f8] sm:$0xff] %v331_v63 }
  0x37 PF: > { %p1083_p7 = scmp.ge.s32.totalorder %s1367_s21, 1  ;;  %p361_p8 = scmp.lt.s32.totalorder %s1367_s21, 9 }
  0x39   : > { %p362_p9 = pnand %p1083_p7, %p361_p8 }
  0x3a   : > { %s368_s12 = sand.u32 (!%p362_p9), 1, %s1343_s15   ;;  %s1085_s13 = sshll.u32 (!%p362_p9), %s1355_s18, 2 }
  0x3b   : > { %365 = sbr.rel (%p362_p9) target bundleno = 519 (0x207), region = 55  ;;  %s1084_s14 = sshll.u32 (!%p362_p9), %s368_s12, 9 }
  0x3c   : > { %s408_s24 = sadd.s32 (!%p362_p9), %s1351_s17, %s1085_s13  ;;  %p425_p11 = scmp.lt.s32.totalorder (!%p362_p9), %s1355_s18, 1 }
  0x3d   : > { %s1086_s25 = sshll.u32 (!%p362_p9), %s408_s24, 2  ;;  %s1607_s10 = scalar_lea.vmem (!%p362_p9), [#allocation3], %s1084_s14 }
  0x3e   : > { %p410_p10 = scmp.lt.s32.totalorder (!%p362_p9), %s1086_s25, 31  ;;  %p1090_p12 = scmp.ne.s32.totalorder (!%p362_p9), %s1351_s17, 0 }
  0x42   : > { %s1728_s25 = smov (!%p410_p10, %s1086_s25), 31  ;;  %s1730_s18 = smov (!%p425_p11, %s1355_s18), 1 }
  0x43   : > { %s412_s28 = scalar_lea.vmem %s1712_s2, %s1728_s25  ;;  %s421_s6 = scalar_lea.vmem %s1713_s3, %s1728_s25  ;;  %vm433_vm0 = vcmask (!%p1090_p12), 3072   ;;  %v1369_v0 = vmov (!%p1090_p12), 0.0  }
  0x44   : > { %s1089_s15 = sshll.u32 %s1730_s18, 2  ;;  %432 = sbr.rel (%p1090_p12) target bundleno = 75 (0x4b), region = 63  ;;  %434 = vst.msk [vmem:[#allocation2] sm:$0xf] (!%p1090_p12), %vm433_vm0, %v1369_v0 }
  0x45   : > { %s1605_s9 = scalar_lea.vmem %s1714_s4, %s1089_s15 }
  0x4b PF: > { %v1216_v1 = vld [vmem:[%s1607_s10 + $0x4] ss:$16 sps:$4 sm:$0xff]   ;;  %v1218_v2 = vld [vmem:[%s1607_s10 + $0xc] ss:$16 sps:$4 sm:$0xff]   ;;  %v1220_v3 = vld [vmem:[%s1607_s10] ss:$16 sps:$4 sm:$0xff]  }
  0x4c   : > { %847 = vmatprep.subr.bf16.mxu0 %v1216_v1  ;;  %v1221_v4 = vld [vmem:[%s1607_s10 + $0x8] ss:$16 sps:$4 sm:$0xff]   ;;  %888 = vmatprep.subr.bf16.mxu1 %v1218_v2  ;;  %v1222_v5 = vld [vmem:[%s1607_s10 + $0x24] ss:$16 sps:$4 sm:$0xff]   ;;  %v1224_v6 = vld [vmem:[%s1607_s10 + $0x2c] ss:$16 sps:$4 sm:$0xff]  }
  0x4d   : > { %848 = vmatpush1.bf16.msra.mxu0 %v1220_v3  ;;  %889 = vmatpush1.bf16.msra.mxu1 %v1221_v4  ;;  %v1226_v7 = vld [vmem:[%s1607_s10 + $0x20] ss:$16 sps:$4 sm:$0xff]   ;;  %v1227_v8 = vld [vmem:[%s1607_s10 + $0x28] ss:$16 sps:$4 sm:$0xff]   ;;  %v1228_v9 = vld [vmem:[%s1607_s10 + $0x44] ss:$16 sps:$4 sm:$0xff]  }
  0x4e   : > { %849 = vmatprep.subr.bf16.mxu0 %v1222_v5  ;;  %890 = vmatprep.subr.bf16.mxu1 %v1224_v6  ;;  %v1230_v10 = vld [vmem:[%s1607_s10 + $0x4c] ss:$16 sps:$4 sm:$0xff]   ;;  %v1232_v11 = vld [vmem:[%s1607_s10 + $0x40] ss:$16 sps:$4 sm:$0xff]   ;;  %v1233_v12 = vld [vmem:[%s1607_s10 + $0x48] ss:$16 sps:$4 sm:$0xff]   ;;  %v507_v5 = vlaneseq }
  0x4f   : > { %v1234_v13 = vld [vmem:[%s1607_s10 + $0x64] ss:$16 sps:$4 sm:$0xff]   ;;  %v1236_v14 = vld [vmem:[%s1607_s10 + $0x6c] ss:$16 sps:$4 sm:$0xff]   ;;  %v1238_v15 = vld [vmem:[%s1607_s10 + $0x60] ss:$16 sps:$4 sm:$0xff]  }
  0x50   : > { %v1239_v16 = vld [vmem:[%s1607_s10 + $0x68] ss:$16 sps:$4 sm:$0xff]   ;;  %v1240_v17 = vld [vmem:[%s1607_s10 + $0x84] ss:$16 sps:$4 sm:$0xff]   ;;  %v1242_v18 = vld [vmem:[%s1607_s10 + $0x8c] ss:$16 sps:$4 sm:$0xff]  }
  0x51   : > { %850 = vmatpush1.bf16.msra.mxu0 %v1226_v7  ;;  %891 = vmatpush1.bf16.msra.mxu1 %v1227_v8  ;;  %v1244_v19 = vld [vmem:[%s1607_s10 + $0x80] ss:$16 sps:$4 sm:$0xff]   ;;  %v1245_v20 = vld [vmem:[%s1607_s10 + $0x88] ss:$16 sps:$4 sm:$0xff]   ;;  %v1246_v21 = vld [vmem:[%s1607_s10 + $0xa4] ss:$16 sps:$4 sm:$0xff]  }
  0x52   : > { %851 = vmatprep.subr.bf16.mxu0 %v1228_v9  ;;  %892 = vmatprep.subr.bf16.mxu1 %v1230_v10  ;;  %v1248_v22 = vld [vmem:[%s1607_s10 + $0xac] ss:$16 sps:$4 sm:$0xff]   ;;  %v1250_v23 = vld [vmem:[%s1607_s10 + $0xa0] ss:$16 sps:$4 sm:$0xff]   ;;  %v1251_v24 = vld [vmem:[%s1607_s10 + $0xa8] ss:$16 sps:$4 sm:$0xff]  }
  0x53   : > { %v1252_v25 = vld [vmem:[%s1607_s10 + $0xc4] ss:$16 sps:$4 sm:$0xff]   ;;  %v1254_v26 = vld [vmem:[%s1607_s10 + $0xcc] ss:$16 sps:$4 sm:$0xff]   ;;  %v1256_v27 = vld [vmem:[%s1607_s10 + $0xc0] ss:$16 sps:$4 sm:$0xff]  }
  0x54   : > { %v1257_v28 = vld [vmem:[%s1607_s10 + $0xc8] ss:$16 sps:$4 sm:$0xff]   ;;  %v1258_v29 = vld [vmem:[%s1607_s10 + $0xe4] ss:$16 sps:$4 sm:$0xff]   ;;  %v1260_v30 = vld [vmem:[%s1607_s10 + $0xec] ss:$16 sps:$4 sm:$0xff]  }
  0x55   : > { %852 = vmatpush1.bf16.msra.mxu0 %v1232_v11  ;;  %893 = vmatpush1.bf16.msra.mxu1 %v1233_v12  ;;  %v1262_v31 = vld [vmem:[%s1607_s10 + $0xe0] ss:$16 sps:$4 sm:$0xff]   ;;  %v1263_v32 = vld [vmem:[%s1607_s10 + $0xe8] ss:$16 sps:$4 sm:$0xff]   ;;  %v1264_v33 = vld [vmem:[%s1607_s10 + $0x104] ss:$16 sps:$4 sm:$0xff]  }
  0x56   : > { %853 = vmatprep.subr.bf16.mxu0 %v1234_v13  ;;  %894 = vmatprep.subr.bf16.mxu1 %v1236_v14  ;;  %v1266_v34 = vld [vmem:[%s1607_s10 + $0x10c] ss:$16 sps:$4 sm:$0xff]   ;;  %v1268_v35 = vld [vmem:[%s1607_s10 + $0x100] ss:$16 sps:$4 sm:$0xff]   ;;  %v1269_v36 = vld [vmem:[%s1607_s10 + $0x108] ss:$16 sps:$4 sm:$0xff]  }
  0x57   : > { %v1270_v37 = vld [vmem:[%s1607_s10 + $0x124] ss:$16 sps:$4 sm:$0xff]   ;;  %v1272_v38 = vld [vmem:[%s1607_s10 + $0x12c] ss:$16 sps:$4 sm:$0xff]   ;;  %v1274_v39 = vld [vmem:[%s1607_s10 + $0x120] ss:$16 sps:$4 sm:$0xff]  }
  0x58   : > { %v1275_v40 = vld [vmem:[%s1607_s10 + $0x128] ss:$16 sps:$4 sm:$0xff]   ;;  %v1276_v41 = vld [vmem:[%s1607_s10 + $0x144] ss:$16 sps:$4 sm:$0xff]   ;;  %v1278_v42 = vld [vmem:[%s1607_s10 + $0x14c] ss:$16 sps:$4 sm:$0xff]  }
  0x59   : > { %854 = vmatpush1.bf16.msra.mxu0 %v1238_v15  ;;  %895 = vmatpush1.bf16.msra.mxu1 %v1239_v16  ;;  %v1280_v43 = vld [vmem:[%s1607_s10 + $0x140] ss:$16 sps:$4 sm:$0xff]   ;;  %v1281_v44 = vld [vmem:[%s1607_s10 + $0x148] ss:$16 sps:$4 sm:$0xff]   ;;  %v1282_v45 = vld [vmem:[%s1607_s10 + $0x164] ss:$16 sps:$4 sm:$0xff]  }
  0x5a   : > { %855 = vmatprep.subr.bf16.mxu0 %v1240_v17  ;;  %896 = vmatprep.subr.bf16.mxu1 %v1242_v18  ;;  %v1284_v46 = vld [vmem:[%s1607_s10 + $0x16c] ss:$16 sps:$4 sm:$0xff]   ;;  %v1286_v49 = vld [vmem:[%s1607_s10 + $0x160] ss:$16 sps:$4 sm:$0xff]   ;;  %v1287_v50 = vld [vmem:[%s1607_s10 + $0x168] ss:$16 sps:$4 sm:$0xff]  }
  0x5b   : > { %v435_v47 = vld [vmem:[%s1710_s0] sm:$0xff]  ;;  %v1288_v51 = vld [vmem:[%s1607_s10 + $0x184] ss:$16 sps:$4 sm:$0xff]   ;;  %v1293_v55 = vld [vmem:[%s1607_s10 + $0x188] ss:$16 sps:$4 sm:$0xff]   ;;  %v508_v6 = vshrl.u32 %v507_v5, 7 }
  0x5c   : > { %v437_v48 = vcombine.high %v435_v47, %v435_v47  ;;  %v1290_v52 = vld [vmem:[%s1607_s10 + $0x18c] ss:$16 sps:$4 sm:$0xff]   ;;  %v1292_v54 = vld [vmem:[%s1607_s10 + $0x180] ss:$16 sps:$4 sm:$0xff]   ;;  %v1294_v56 = vld [vmem:[%s1607_s10 + $0x1a4] ss:$16 sps:$4 sm:$0xff]   ;;  %v439_v4 = vpack.c.bf16 %v435_v47, %v435_v47 }
  0x5d   : > { %856 = vmatpush1.bf16.msra.mxu0 %v1244_v19  ;;  %897 = vmatpush1.bf16.msra.mxu1 %v1245_v20  ;;  %v1296_v57 = vld [vmem:[%s1607_s10 + $0x1ac] ss:$16 sps:$4 sm:$0xff]   ;;  %v1298_v58 = vld [vmem:[%s1607_s10 + $0x1a0] ss:$16 sps:$4 sm:$0xff]   ;;  %v1299_v59 = vld [vmem:[%s1607_s10 + $0x1a8] ss:$16 sps:$4 sm:$0xff]  }
  0x5e   : > { %857 = vmatprep.subr.bf16.mxu0 %v1246_v21  ;;  %898 = vmatprep.subr.bf16.mxu1 %v1248_v22  ;;  %v440_v53 = vpack.c.bf16 %v437_v48, %v437_v48  ;;  %v1300_v60 = vld [vmem:[%s1607_s10 + $0x1c4] ss:$16 sps:$4 sm:$0xff]   ;;  %v1302_v61 = vld [vmem:[%s1607_s10 + $0x1cc] ss:$16 sps:$4 sm:$0xff]   ;;  %v1304_v62 = vld [vmem:[%s1607_s10 + $0x1c0] ss:$16 sps:$4 sm:$0xff]  }
  0x5f   : > { %v1305_v63 = vld [vmem:[%s1607_s10 + $0x1c8] ss:$16 sps:$4 sm:$0xff]   ;;  %v1306_v0 = vld [vmem:[%s1607_s10 + $0x1e4] ss:$16 sps:$4 sm:$0xff]   ;;  %v1308_v1 = vld [vmem:[%s1607_s10 + $0x1ec] ss:$16 sps:$4 sm:$0xff]  }
  0x60   : > { %879 = vmatprep.mubr.bf16.mxu0 %v440_v53  ;;  %920 = vmatprep.mubr.bf16.mxu1 %v440_v53  ;;  %v1310_v2 = vld [vmem:[%s1607_s10 + $0x1e0] ss:$16 sps:$4 sm:$0xff]   ;;  %v1311_v3 = vld [vmem:[%s1607_s10 + $0x1e8] ss:$16 sps:$4 sm:$0xff]   ;;  %v509_v7 = vsub.s32 0, %v508_v6  ;;  %v517_v8 = vsub.s32 2, %v508_v6 }
  0x61   : > { %858 = vmatpush1.bf16.msra.mxu0 %v1250_v23  ;;  %899 = vmatpush1.bf16.msra.mxu1 %v1251_v24  ;;  %v505_v9 = vld [vmem:[%s412_s28] sm:$0xf]  ;;  %v513_v10 = vsub.s32 1, %v508_v6  ;;  %v521_v11 = vsub.s32 3, %v508_v6  ;;  %vm960_vm1 = vcmask 1043456   ;;  %vm971_vm2 = vcmask 3072  }
  0x62   : > { %859 = vmatprep.subr.bf16.mxu0 %v1252_v25  ;;  %900 = vmatprep.subr.bf16.mxu1 %v1254_v26  ;;  %v510_v12 = vrot.slane %v505_v9, %v509_v7  ;;  %v518_v13 = vrot.slane %v505_v9, %v517_v8  ;;  %v934_v14 = vld [vmem:[%s421_s6] sm:$0xf]  ;;  %p1155_p13 = scmp.ne.s32.totalorder %s1351_s17, 3 }
  0x63   : > { %v514_v15 = vrot.slane %v505_v9, %v513_v10  ;;  %v522_v16 = vrot.slane %v505_v9, %v521_v11  ;;  %v939_v20 = vrot.slane %v934_v14, %v509_v7  ;;  %v947_v22 = vrot.slane %v934_v14, %v517_v8  ;;  %v933_v48 = vld [vmem:[#allocation2] sm:$0xf] }
  0x64   : > { %v943_v26 = vrot.slane %v934_v14, %v513_v10 }
  0x65   : > { %860 = vmatpush1.bf16.msra.mxu0 %v1256_v27  ;;  %901 = vmatpush1.bf16.msra.mxu1 %v1257_v28 }
  0x66   : > { %861 = vmatprep.subr.bf16.mxu0 %v1258_v29  ;;  %902 = vmatprep.subr.bf16.mxu1 %v1260_v30 }
  0x69   : > { %862 = vmatpush1.bf16.msra.mxu0 %v1262_v31  ;;  %903 = vmatpush1.bf16.msra.mxu1 %v1263_v32 }
  0x6a   : > { %863 = vmatprep.subr.bf16.mxu0 %v1264_v33  ;;  %904 = vmatprep.subr.bf16.mxu1 %v1266_v34 }
  0x6d   : > { %864 = vmatpush1.bf16.msra.mxu0 %v1268_v35  ;;  %905 = vmatpush1.bf16.msra.mxu1 %v1269_v36  ;;  %v951_v36 = vrot.slane %v934_v14, %v521_v11 }
  0x6e   : > { %865 = vmatprep.subr.bf16.mxu0 %v1270_v37  ;;  %906 = vmatprep.subr.bf16.mxu1 %v1272_v38 }
  0x71   : > { %866 = vmatpush1.bf16.msra.mxu0 %v1274_v39  ;;  %907 = vmatpush1.bf16.msra.mxu1 %v1275_v40 }
  0x72   : > { %867 = vmatprep.subr.bf16.mxu0 %v1276_v41  ;;  %908 = vmatprep.subr.bf16.mxu1 %v1278_v42 }
  0x75   : > { %868 = vmatpush1.bf16.msra.mxu0 %v1280_v43  ;;  %909 = vmatpush1.bf16.msra.mxu1 %v1281_v44 }
  0x76   : > { %869 = vmatprep.subr.bf16.mxu0 %v1282_v45  ;;  %910 = vmatprep.subr.bf16.mxu1 %v1284_v46 }
  0x79   : > { %870 = vmatpush1.bf16.msra.mxu0 %v1286_v49  ;;  %911 = vmatpush1.bf16.msra.mxu1 %v1287_v50 }
  0x7a   : > { %871 = vmatprep.subr.bf16.mxu0 %v1288_v51  ;;  %912 = vmatprep.subr.bf16.mxu1 %v1290_v52 }
  0x7d   : > { %872 = vmatpush1.bf16.msra.mxu0 %v1292_v54  ;;  %913 = vmatpush1.bf16.msra.mxu1 %v1293_v55 }
  0x7e   : > { %873 = vmatprep.subr.bf16.mxu0 %v1294_v56  ;;  %914 = vmatprep.subr.bf16.mxu1 %v1296_v57 }
  0x81   : > { %874 = vmatpush1.bf16.msra.mxu0 %v1298_v58  ;;  %915 = vmatpush1.bf16.msra.mxu1 %v1299_v59 }
  0x82   : > { %875 = vmatprep.subr.bf16.mxu0 %v1300_v60  ;;  %916 = vmatprep.subr.bf16.mxu1 %v1302_v61 }
  0x85   : > { %876 = vmatpush1.bf16.msra.mxu0 %v1304_v62  ;;  %917 = vmatpush1.bf16.msra.mxu1 %v1305_v63 }
  0x86   : > { %877 = vmatprep.subr.bf16.mxu0 %v1306_v0  ;;  %918 = vmatprep.subr.bf16.mxu1 %v1308_v1 }
  0x89   : > { %878 = vmatpush1.bf16.msra.mxu0 %v1310_v2  ;;  %919 = vmatpush1.bf16.msra.mxu1 %v1311_v3 }
  0x8c   : > { %880 = vmatmul.mubr.bf16.vlgmr.msra.gmra.mrb[0].mxu0 %v439_v4  ;;  %921 = vmatmul.mubr.bf16.vlgmr.msra.gmra.mrb[0].mxu1 %v439_v4 }
 0x15f   : > { %v881_v17 = vpop.f32.mrb[0].mxu0  ;;  %v922_v18 = vpop.f32.mrb[0].mxu1 }
 0x160   : > { %v882_v19 = vadd.f32 %v881_v17, %v510_v12  ;;  %v923_v21 = vadd.f32 %v922_v18, %v518_v13  ;;  %v883_v23 = vpop.f32.mrb[1].mxu0  ;;  %v924_v24 = vpop.f32.mrb[1].mxu1 }
 0x161   : > { %v884_v25 = vadd.f32 %v883_v23, %v514_v15  ;;  %v925_v27 = vadd.f32 %v924_v24, %v522_v16  ;;  %v885_v28 = vpop.f32.mrb[2].mxu0  ;;  %v926_v29 = vpop.f32.mrb[2].mxu1 }
 0x162   : > { %v929_v30 = vmax.f32 %v882_v19, 0.0  ;;  %v931_v31 = vmax.f32 %v923_v21, 0.0  ;;  %v886_v32 = vpop.f32.mrb[3].mxu0  ;;  %v927_v33 = vpop.f32.mrb[3].mxu1 }
 0x163   : > { %v930_v34 = vmax.f32 %v884_v25, 0.0  ;;  %v932_v35 = vmax.f32 %v925_v27, 0.0 }
 0x164   : > { %v956_v37 = vmul.f32 %v939_v20, %v929_v30  ;;  %v958_v38 = vmul.f32 %v947_v22, %v931_v31 }
 0x165   : > { %v957_v39 = vmul.f32 %v943_v26, %v930_v34  ;;  %v959_v41 = vmul.f32 %v951_v36, %v932_v35 }
 0x166   : > { %v961_v40 = vsel %vm960_vm1, %v956_v37, 0.0  ;;  %v964_v43 = vsel %vm960_vm1, %v958_v38, 0.0 }
 0x167   : > { %v962_v42 = vsel %vm960_vm1, %v957_v39, 0.0  ;;  %v966_v46 = vsel %vm960_vm1, %v959_v41, 0.0 }
 0x168   : > { %v963_v44 = vadd.f32 %v962_v42, %v961_v40 }
 0x16a   : > { %v965_v45 = vadd.f32 %v964_v43, %v963_v44 }
 0x16c   : > { %v967_v47 = vadd.f32 %v966_v46, %v965_v45 }
 0x16e   : > { %968 = vadd.xlane.f32.xlu0 %v967_v47 }
 0x1f8   : > { %976 = sbr.rel (%p1155_p13) target bundleno = 519 (0x207), region = 67 }
 0x1fb   : > { %v969_v49 = vpop.xlane.xlu0 %968 }
 0x1fc   : > { %v970_v50 = vadd.f32 %v969_v49, %v933_v48 }
 0x1fe   : > { %972 = vst.msk [vmem:[#allocation2] sm:$0xf] %vm971_vm2, %v970_v50 }
 0x205   : > { %v977_v51 = vld [vmem:[#allocation2] sm:$0xf] }
 0x206   : > { %978 = vst.msk [vmem:[%s1605_s9] sm:$0xf] %vm971_vm2, %v977_v51 }
 0x207 PF: > { %s14_s21 = sadd.s32 1, %s1367_s21   ;;  %s1715_s15 = smov %s1347_s16 }
 0x208   : > { %p11_p0 = scmp.ge.s32.totalorder %s14_s21, 10   ;;  %s1716_s16 = smov %s1446_s30 }
 0x209   : > { %s1717_s17 = smov %s1359_s19  ;;  %s1718_s18 = smov %s1363_s20 }
 0x20a   : > { %s1719_s19 = smov %s1722_s22  ;;  %s1720_s20 = smov %s1726_s23 }
 0x20b   :  { %13 = sbr.rel (!%p11_p0) target bundleno = 4 (0x4), region = 108 }

// kernel: rsscnn_forward.4
= control target key start
LH: loop header
LB: loop body
LE: loop exit
PB: predicated region body
PF: predicated region fallthrough
CT: control target
= control target key end

     0   :  { %vm124_vm0 = vcmask 1043456   ;;  %vm81_vm1 = vcmask 31744   ;;  %s10528_s0 = inlined_call_operand.vmem [shape: f32[128,4], index: 0, kind: input, shape index: {}]   ;;  %s10529_s1 = inlined_call_operand.vmem [shape: f32[128,4], index: 1, kind: input, shape index: {}]   ;;  %s10530_s2 = inlined_call_operand.vmem [shape: f32[36,8], index: 2, kind: input, shape index: {}]   ;;  %s10531_s3 = inlined_call_operand.vmem [shape: f32[36,8], index: 3, kind: input, shape index: {}]   ;;  %s10532_s4 = inlined_call_operand.vmem [shape: f32[1,8], index: 4, kind: input, shape index: {}]   ;;  %s10533_s5 = inlined_call_operand.vmem [shape: f32[72,8], index: 5, kind: input, shape index: {}]   ;;  %s10534_s6 = inlined_call_operand.vmem [shape: f32[1,8], index: 6, kind: input, shape index: {}]   ;;  %s10535_s7 = inlined_call_operand.vmem [shape: f32[32,8], index: 7, kind: input, shape index: {}]   ;;  %s10536_s8 = inlined_call_operand.vmem [shape: f32[1,8], index: 8, kind: input, shape index: {}]   ;;  %s10537_s9 = inlined_call_operand.vmem [shape: f32[72,2], index: 9, kind: input, shape index: {}]   ;;  %s10538_s10 = inlined_call_operand.vmem [shape: f32[1,2], index: 10, kind: input, shape index: {}]   ;;  %s10539_s11 = inlined_call_operand.hbm [shape: f32[2,2], index: 11, kind: output, shape index: {}]  }
   0x1   :  { %v8744_v0 = vld [vmem:[%s10531_s3] sm:$0xff]  ;;  %v8754_v2 = vld [vmem:[%s10529_s1 + $0x8] sm:$0xff]  ;;  %v8766_v4 = vld [vmem:[%s10529_s1 + $0x10] sm:$0xff] }
   0x2   :  { %v8749_v1 = vld [vmem:[%s10529_s1] sm:$0xff]  ;;  %7449 = vmatprep.subr.msk.mxu0 %vm124_vm0, %v8744_v0  ;;  %8273 = vmatprep.subr.msk.mxu1 %vm124_vm0, %v8744_v0  ;;  %v8781_v6 = vld [vmem:[%s10529_s1 + $0x18] sm:$0xff]  ;;  %v8803_v9 = vld [vmem:[%s10528_s0 + $0x8] sm:$0xff]  ;;  %v678_v12 = vrot.slane %v8744_v0, 4 }
   0x3   :  { %7451 = vmatprep.mubr.msk.f32.mxu0 %vm81_vm1, %v8749_v1  ;;  %v71_v3 = vld [vmem:[%s10530_s2] sm:$0xff]  ;;  %7450 = vmatpush3.msk.msra.mxu0 %vm124_vm0, %v8744_v0  ;;  %v8808_v10 = vld [vmem:[%s10529_s1 + $0x28] sm:$0xff]  ;;  %v8815_v11 = vld [vmem:[%s10528_s0 + $0x10] sm:$0xff] }
   0x4   :  { %v471_v5 = vrot.slane %v71_v3, 4  ;;  %7452 = vmatmul.mubr.msk.f32.vlgmr.msra.gmra.mrb[0].mxu0 %vm81_vm1, %v8754_v2  ;;  %7472 = vmatprep.subr.msk.mxu0 %vm124_vm0, %v71_v3  ;;  %v8786_v7 = vld [vmem:[%s10528_s0] sm:$0xff]  ;;  %v8821_v13 = vld [vmem:[%s10529_s1 + $0x30] sm:$0xff] }
   0x5   :  { %7473 = vmatpush3.msk.msra.mxu0 %vm124_vm0, %v71_v3  ;;  %7454 = vmatprep.mubr.msk.f32.mxu0 %vm81_vm1, %v8766_v4  ;;  %v8796_v8 = vld [vmem:[%s10529_s1 + $0x20] sm:$0xff] }
   0x6   :  { %7495 = vmatprep.subr.msk.mxu0 %vm124_vm0, %v471_v5  ;;  %8274 = vmatpush3.msk.msra.mxu1 %vm124_vm0, %v8744_v0 }
   0x7   :  { %7457 = vmatprep.mubr.msk.f32.mxu1 %vm81_vm1, %v8796_v8 }
   0x8   :  { %7455 = vmatmul.mubr.msk.f32.gmra.mrb[2].mxu0 %vm81_vm1, %v8781_v6  ;;  %7458 = vmatmul.mubr.msk.f32.vlgmr.msra.gmra.mrb[0].mxu1 %vm81_vm1, %v8808_v10 }
   0x9   :  { %7474 = vmatprep.mubr.msk.f32.mxu0 %vm81_vm1, %v8786_v7  ;;  %7460 = vmatprep.mubr.msk.f32.mxu1 %vm81_vm1, %v8821_v13 }
   0xc   :  { %7475 = vmatmul.mubr.msk.f32.vlgmr.msra.gmra.mrb[0].mxu0 %vm81_vm1, %v8803_v9 }
   0xd   :  { %16 = vsyncpa [#allocation3], 0  ;;  %7496 = vmatpush3.msk.msra.mxu0 %vm124_vm0, %v471_v5  ;;  %7477 = vmatprep.mubr.msk.f32.mxu0 %vm81_vm1, %v8815_v11  ;;  %v8835_v14 = vld [vmem:[%s10528_s0 + $0x18] sm:$0xff]  ;;  %v8845_v16 = vld [vmem:[%s10528_s0 + $0x20] sm:$0xff]  ;;  %v444_v30 = vrot.slane %v8786_v7, 1  ;;  %v445_v32 = vrot.slane %v8803_v9, 1 }
   0xe   :  { %v8840_v15 = vld [vmem:[%s10529_s1 + $0x38] sm:$0xff]  ;;  %7518 = vmatprep.subr.msk.mxu0 %vm124_vm0, %v678_v12  ;;  %v8851_v17 = vld [vmem:[%s10529_s1 + $0x40] sm:$0xff]  ;;  %v8864_v18 = vld [vmem:[%s10528_s0 + $0x28] sm:$0xff]  ;;  %vm443_vm2 = vcmask 1046528   ;;  %v447_v33 = vrot.slane %v8815_v11, 1  ;;  %v449_v36 = vrot.slane %v8835_v14, 1 }
   0xf   :  { %7461 = vmatmul.mubr.msk.f32.gmra.mrb[2].mxu1 %vm81_vm1, %v8840_v15  ;;  %v8869_v19 = vld [vmem:[%s10529_s1 + $0x48] sm:$0xff]  ;;  %v8874_v20 = vld [vmem:[%s10528_s0 + $0x30] sm:$0xff]  ;;  %v8892_v22 = vld [vmem:[%s10528_s0 + $0x38] sm:$0xff]  ;;  %v446_v35 = vsel %vm443_vm2, %v444_v30, %v445_v32  ;;  %v451_v38 = vrot.slane %v8845_v16, 1  ;;  %v453_v40 = vrot.slane %v8864_v18, 1  ;;  %v651_v59 = vrot.slane %v8749_v1, 1 }
  0x10   :  { %7463 = vmatprep.mubr.msk.f32.mxu1 %vm81_vm1, %v8851_v17  ;;  %7478 = vmatmul.mubr.msk.f32.gmra.mrb[2].mxu0 %vm81_vm1, %v8835_v14  ;;  %v8879_v21 = vld [vmem:[%s10529_s1 + $0x50] sm:$0xff]  ;;  %v8897_v23 = vld [vmem:[%s10529_s1 + $0x58] sm:$0xff]  ;;  %v8902_v24 = vld [vmem:[%s10528_s0 + $0x40] sm:$0xff]  ;;  %v8966_v37 = vsel %vm443_vm2, %v445_v32, %v447_v33  ;;  %v8970_v39 = vsel %vm443_vm2, %v447_v33, %v449_v36  ;;  %v455_v43 = vrot.slane %v8874_v20, 1  ;;  %v457_v45 = vrot.slane %v8892_v22, 1 }
  0x11   :  { %7480 = vmatprep.mubr.msk.f32.mxu0 %vm81_vm1, %v8845_v16  ;;  %v8907_v25 = vld [vmem:[%s10529_s1 + $0x60] sm:$0xff]  ;;  %v8920_v26 = vld [vmem:[%s10528_s0 + $0x48] sm:$0xff]  ;;  %v8930_v28 = vld [vmem:[%s10528_s0 + $0x50] sm:$0xff]  ;;  %v8984_v42 = vsel %vm443_vm2, %v449_v36, %v451_v38  ;;  %v8988_v44 = vsel %vm443_vm2, %v451_v38, %v453_v40  ;;  %v459_v47 = vrot.slane %v8902_v24, 1  ;;  %v652_v60 = vrot.slane %v8754_v2, 1 }
  0x12   :  { %v8925_v27 = vld [vmem:[%s10529_s1 + $0x68] sm:$0xff]  ;;  %v8941_v29 = vld [vmem:[%s10528_s0 + $0x58] sm:$0xff]  ;;  %v8947_v31 = vld [vmem:[%s10528_s0 + $0x60] sm:$0xff]  ;;  %v8998_v46 = vsel %vm443_vm2, %v453_v40, %v455_v43  ;;  %v9002_v48 = vsel %vm443_vm2, %v455_v43, %v457_v45  ;;  %v461_v49 = vrot.slane %v8920_v26, 1  ;;  %v463_v51 = vrot.slane %v8930_v28, 1 }
  0x13   :  { %7464 = vmatmul.mubr.msk.f32.gmra.mrb[4].mxu1 %vm81_vm1, %v8869_v19  ;;  %v8958_v34 = vld [vmem:[%s10528_s0 + $0x68] sm:$0xff]  ;;  %v9010_v50 = vsel %vm443_vm2, %v457_v45, %v459_v47  ;;  %v465_v53 = vrot.slane %v8941_v29, 1  ;;  %v467_v55 = vrot.slane %v8947_v31, 1  ;;  %v654_v62 = vrot.slane %v8766_v4, 1 }
  0x14   :  { %7466 = vmatprep.mubr.msk.f32.mxu1 %vm81_vm1, %v8879_v21  ;;  %7481 = vmatmul.mubr.msk.f32.gmra.mrb[4].mxu0 %vm81_vm1, %v8864_v18  ;;  %v8976_v41 = vld [vmem:[%s10530_s2 + $0x8] sm:$0xff]  ;;  %v9014_v52 = vsel %vm443_vm2, %v459_v47, %v461_v49  ;;  %v9022_v54 = vsel %vm443_vm2, %v461_v49, %v463_v51  ;;  %v9029_v57 = vrot.slane %v8958_v34, 1  ;;  %v653_v63 = vsel %vm443_vm2, %v651_v59, %v652_v60 }
  0x15   :  { %7483 = vmatprep.mubr.msk.f32.mxu0 %vm81_vm1, %v8874_v20  ;;  %v9026_v56 = vsel %vm443_vm2, %v463_v51, %v465_v53  ;;  %v9036_v58 = vsel %vm443_vm2, %v465_v53, %v467_v55  ;;  %v656_v0 = vrot.slane %v8781_v6, 1  ;;  %v9055_v3 = vsel %vm443_vm2, %v652_v60, %v654_v62  ;;  %v9065_v32 = vld [vmem:[%s10531_s3 + $0x8] sm:$0xff] }
  0x16   :  { %v9042_v61 = vsel %vm443_vm2, %v467_v55, %v9029_v57  ;;  %v658_v5 = vrot.slane %v8796_v8, 1  ;;  %v660_v30 = vrot.slane %v8808_v10, 1  ;;  %v664_v38 = vrot.slane %v8840_v15, 1 }
  0x17   :  { %7467 = vmatmul.mubr.msk.f32.gmra.mrb[6].mxu1 %vm81_vm1, %v8897_v23  ;;  %v666_v43 = vrot.slane %v8851_v17, 1  ;;  %v668_v47 = vrot.slane %v8869_v19, 1  ;;  %v670_v51 = vrot.slane %v8879_v21, 1  ;;  %v672_v55 = vrot.slane %v8897_v23, 1 }
  0x18   :  { %7469 = vmatprep.mubr.msk.f32.mxu1 %vm81_vm1, %v8907_v25  ;;  %7484 = vmatmul.mubr.msk.f32.gmra.mrb[6].mxu0 %vm81_vm1, %v8892_v22  ;;  %v9074_v33 = vsel %vm443_vm2, %v656_v0, %v658_v5  ;;  %v9078_v36 = vsel %vm443_vm2, %v658_v5, %v660_v30  ;;  %v674_v60 = vrot.slane %v8907_v25, 1  ;;  %v859_v5 = vrot.slane %v8786_v7, 2 }
  0x19   :  { %7486 = vmatprep.mubr.msk.f32.mxu0 %vm81_vm1, %v8902_v24  ;;  %v9100_v49 = vsel %vm443_vm2, %v664_v38, %v666_v43  ;;  %v9104_v53 = vsel %vm443_vm2, %v666_v43, %v668_v47  ;;  %v9112_v59 = vsel %vm443_vm2, %v668_v47, %v670_v51  ;;  %vm858_vm3 = vcmask 1045504  }
  0x1a   :  { %10583 = vst [vmem:[#allocation5_spill] sm:$0xff] %v9112_v59  ;;  %v864_v47 = vrot.slane %v8835_v14, 2  ;;  %vm3222_vm4 = vcmask 64512   ;;  %vm8679_vm5 = vmmov 0   ;;  %vm5826_vm6 = vcmask 8192  }
  0x1b   :  { %7470 = vmatmul.mubr.msk.f32.gmra.mrb[8].mxu1 %vm81_vm1, %v8925_v27 }
  0x1c   :  { %7487 = vmatmul.mubr.msk.f32.gmra.mrb[8].mxu0 %vm81_vm1, %v8920_v26 }
  0x1d   :  { %7489 = vmatprep.mubr.msk.f32.mxu0 %vm81_vm1, %v8930_v28 }
  0x20   :  { %7490 = vmatmul.mubr.msk.f32.gmra.mrb[10].mxu0 %vm81_vm1, %v8941_v29 }
  0x21   :  { %7492 = vmatprep.mubr.msk.f32.mxu0 %vm81_vm1, %v8947_v31 }
  0x24   :  { %7493 = vmatmul.mubr.msk.f32.gmra.mrb[12].mxu0 %vm81_vm1, %v8958_v34 }
  0x25   :  { %7497 = vmatprep.mubr.msk.f32.mxu0 %vm81_vm1, %v446_v35  ;;  %v662_v35 = vrot.slane %v8821_v13, 1 }
  0x27   :  { %v9088_v40 = vsel %vm443_vm2, %v660_v30, %v662_v35  ;;  %v9092_v45 = vsel %vm443_vm2, %v662_v35, %v664_v38  ;;  %v860_v35 = vrot.slane %v8803_v9, 2  ;;  %v862_v38 = vrot.slane %v8815_v11, 2 }
  0x28   :  { %7498 = vmatmul.mubr.msk.f32.vlgmr.msra.gmra.mrb[0].mxu0 %vm81_vm1, %v8966_v37 }
  0x29   :  { %7519 = vmatpush3.msk.msra.mxu0 %vm124_vm0, %v678_v12  ;;  %7500 = vmatprep.mubr.msk.f32.mxu0 %vm81_vm1, %v8970_v39  ;;  %v9059_v12 = vsel %vm443_vm2, %v654_v62, %v656_v0  ;;  %v9116_v62 = vsel %vm443_vm2, %v670_v51, %v672_v55  ;;  %v9126_v0 = vsel %vm443_vm2, %v672_v55, %v674_v60  ;;  %v866_v51 = vrot.slane %v8845_v16, 2 }
  0x2a   :  { %7541 = vmatprep.subr.msk.mxu0 %vm124_vm0, %v8976_v41  ;;  %10584 = vst [vmem:[#allocation6_spill] sm:$0xff] %v9116_v62  ;;  %10585 = vst [vmem:[#allocation7_spill] sm:$0xff] %v9126_v0  ;;  %v861_v43 = vsel %vm858_vm3, %v859_v5, %v860_v35  ;;  %v9145_v7 = vsel %vm858_vm3, %v860_v35, %v862_v38  ;;  %v1273_v55 = vrot.slane %v8976_v41, 4  ;;  %v870_v35 = vrot.slane %v8874_v20, 2 }
  0x2b   :  { %10587 = vst [vmem:[#allocation9_spill] sm:$0xff] %v9145_v7  ;;  %v9160_v5 = vsel %vm858_vm3, %v864_v47, %v866_v51 }
  0x2c   :  { %7501 = vmatmul.mubr.msk.f32.gmra.mrb[2].mxu0 %vm81_vm1, %v8984_v42  ;;  %10589 = vst [vmem:[#allocation11_spill] sm:$0xff] %v9160_v5 }
  0x2d   :  { %7503 = vmatprep.mubr.msk.f32.mxu0 %vm81_vm1, %v8988_v44 }
  0x30   :  { %7504 = vmatmul.mubr.msk.f32.gmra.mrb[4].mxu0 %vm81_vm1, %v8998_v46 }
  0x31   :  { %7506 = vmatprep.mubr.msk.f32.mxu0 %vm81_vm1, %v9002_v48 }
  0x34   :  { %7507 = vmatmul.mubr.msk.f32.gmra.mrb[6].mxu0 %vm81_vm1, %v9010_v50 }
  0x35   :  { %7509 = vmatprep.mubr.msk.f32.mxu0 %vm81_vm1, %v9014_v52 }
  0x38   :  { %7510 = vmatmul.mubr.msk.f32.gmra.mrb[8].mxu0 %vm81_vm1, %v9022_v54 }
  0x39   :  { %7512 = vmatprep.mubr.msk.f32.mxu0 %vm81_vm1, %v9026_v56 }
  0x3c   :  { %7513 = vmatmul.mubr.msk.f32.gmra.mrb[10].mxu0 %vm81_vm1, %v9036_v58 }
  0x3d   :  { %7515 = vmatprep.mubr.msk.f32.mxu0 %vm81_vm1, %v9042_v61 }
  0x40   :  { %7516 = vmatmul.mubr.msk.f32.gmra.mrb[12].mxu0 %vm81_vm1, %v9029_v57 }
  0x41   :  { %7520 = vmatprep.mubr.msk.f32.mxu0 %vm81_vm1, %v653_v63  ;;  %v9119_v63 = vrot.slane %v8925_v27, 1 }
  0x43   :  { %v9131_v30 = vsel %vm443_vm2, %v674_v60, %v9119_v63  ;;  %v9150_v60 = vsel %vm858_vm3, %v862_v38, %v864_v47  ;;  %v872_v38 = vrot.slane %v8892_v22, 2  ;;  %v874_v47 = vrot.slane %v8902_v24, 2 }
  0x44   :  { %7521 = vmatmul.mubr.msk.f32.vlgmr.msra.gmra.mrb[0].mxu0 %vm81_vm1, %v9055_v3  ;;  %10586 = vst [vmem:[#allocation8_spill] sm:$0xff] %v9131_v30  ;;  %10588 = vst [vmem:[#allocation10_spill] sm:$0xff] %v9150_v60 }
  0x45   :  { %7542 = vmatpush3.msk.msra.mxu0 %vm124_vm0, %v8976_v41  ;;  %7523 = vmatprep.mubr.msk.f32.mxu0 %vm81_vm1, %v9059_v12 }
  0x46   :  { %7564 = vmatprep.subr.msk.mxu0 %vm124_vm0, %v9065_v32 }
  0x48   :  { %7524 = vmatmul.mubr.msk.f32.gmra.mrb[2].mxu0 %vm81_vm1, %v9074_v33 }
  0x49   :  { %7526 = vmatprep.mubr.msk.f32.mxu0 %vm81_vm1, %v9078_v36 }
  0x4c   :  { %7527 = vmatmul.mubr.msk.f32.gmra.mrb[4].mxu0 %vm81_vm1, %v9088_v40 }
  0x4d   :  { %7529 = vmatprep.mubr.msk.f32.mxu0 %vm81_vm1, %v9092_v45 }
  0x50   :  { %7530 = vmatmul.mubr.msk.f32.gmra.mrb[6].mxu0 %vm81_vm1, %v9100_v49 }
  0x51   :  { %7532 = vmatprep.mubr.msk.f32.mxu0 %vm81_vm1, %v9104_v53 }
  0x54   :  { %7533 = vmatmul.mubr.msk.f32.gmra.mrb[8].mxu0 %vm81_vm1, %v9112_v59 }
  0x55   :  { %7535 = vmatprep.mubr.msk.f32.mxu0 %vm81_vm1, %v9116_v62 }
  0x58   :  { %7536 = vmatmul.mubr.msk.f32.gmra.mrb[10].mxu0 %vm81_vm1, %v9126_v0 }
  0x59   :  { %7538 = vmatprep.mubr.msk.f32.mxu0 %vm81_vm1, %v9131_v30  ;;  %v868_v30 = vrot.slane %v8864_v18, 2 }
  0x5b   :  { %v9164_v41 = vsel %vm858_vm3, %v866_v51, %v868_v30  ;;  %v876_v51 = vrot.slane %v8920_v26, 2 }
  0x5c   :  { %7539 = vmatmul.mubr.msk.f32.gmra.mrb[12].mxu0 %vm81_vm1, %v9119_v63  ;;  %10590 = vst [vmem:[#allocation12_spill] sm:$0xff] %v9164_v41 }
  0x5d   :  { %7543 = vmatprep.mubr.msk.f32.mxu0 %vm81_vm1, %v861_v43  ;;  %v9173_v43 = vsel %vm858_vm3, %v868_v30, %v870_v35  ;;  %v9189_v30 = vsel %vm858_vm3, %v874_v47, %v876_v51 }
  0x5e   :  { %10591 = vst [vmem:[#allocation13_spill] sm:$0xff] %v9173_v43  ;;  %10594 = vst [vmem:[#allocation16_spill] sm:$0xff] %v9189_v30 }
  0x60   :  { %7544 = vmatmul.mubr.msk.f32.vlgmr.msra.gmra.mrb[0].mxu0 %vm81_vm1, %v9145_v7  ;;  %v880_v7 = vrot.slane %v8941_v29, 2 }
  0x61   :  { %7565 = vmatpush3.msk.msra.mxu0 %vm124_vm0, %v9065_v32  ;;  %7546 = vmatprep.mubr.msk.f32.mxu0 %vm81_vm1, %v9150_v60  ;;  %v9177_v60 = vsel %vm858_vm3, %v870_v35, %v872_v38 }
  0x62   :  { %7587 = vmatprep.subr.msk.mxu0 %vm124_vm0, %v1273_v55  ;;  %10592 = vst [vmem:[#allocation14_spill] sm:$0xff] %v9177_v60 }
  0x64   :  { %7547 = vmatmul.mubr.msk.f32.gmra.mrb[2].mxu0 %vm81_vm1, %v9160_v5  ;;  %v9185_v5 = vsel %vm858_vm3, %v872_v38, %v874_v47 }
  0x65   :  { %7549 = vmatprep.mubr.msk.f32.mxu0 %vm81_vm1, %v9164_v41  ;;  %10593 = vst [vmem:[#allocation15_spill] sm:$0xff] %v9185_v5  ;;  %v878_v41 = vrot.slane %v8930_v28, 2 }
  0x67   :  { %v9197_v35 = vsel %vm858_vm3, %v876_v51, %v878_v41  ;;  %v9201_v38 = vsel %vm858_vm3, %v878_v41, %v880_v7  ;;  %v1066_v51 = vrot.slane %v8749_v1, 2 }
  0x68   :  { %7550 = vmatmul.mubr.msk.f32.gmra.mrb[4].mxu0 %vm81_vm1, %v9173_v43  ;;  %10595 = vst [vmem:[#allocation17_spill] sm:$0xff] %v9197_v35  ;;  %10596 = vst [vmem:[#allocation18_spill] sm:$0xff] %v9201_v38  ;;  %v9204_v43 = vrot.slane %v8958_v34, 2 }
  0x69   :  { %7552 = vmatprep.mubr.msk.f32.mxu0 %vm81_vm1, %v9177_v60  ;;  %v882_v60 = vrot.slane %v8947_v31, 2 }
  0x6b   :  { %v9211_v47 = vsel %vm858_vm3, %v880_v7, %v882_v60  ;;  %v9217_v41 = vsel %vm858_vm3, %v882_v60, %v9204_v43  ;;  %v1071_v7 = vrot.slane %v8781_v6, 2  ;;  %v1073_v60 = vrot.slane %v8796_v8, 2 }
  0x6c   :  { %7553 = vmatmul.mubr.msk.f32.gmra.mrb[6].mxu0 %vm81_vm1, %v9185_v5  ;;  %10597 = vst [vmem:[#allocation19_spill] sm:$0xff] %v9211_v47  ;;  %10598 = vst [vmem:[#allocation20_spill] sm:$0xff] %v9217_v41  ;;  %v1069_v5 = vrot.slane %v8766_v4, 2 }
  0x6d   :  { %7555 = vmatprep.mubr.msk.f32.mxu0 %vm81_vm1, %v9189_v30  ;;  %v1067_v30 = vrot.slane %v8754_v2, 2 }
  0x6f   :  { %v9230_v1 = vsel %vm858_vm3, %v1067_v30, %v1069_v5 }
  0x70   :  { %7556 = vmatmul.mubr.msk.f32.gmra.mrb[8].mxu0 %vm81_vm1, %v9197_v35  ;;  %v9235_v35 = vsel %vm858_vm3, %v1069_v5, %v1071_v7  ;;  %v1079_v5 = vrot.slane %v8840_v15, 2 }
  0x71   :  { %7558 = vmatprep.mubr.msk.f32.mxu0 %vm81_vm1, %v9201_v38  ;;  %v1068_v38 = vsel %vm858_vm3, %v1066_v51, %v1067_v30  ;;  %10599 = vst [vmem:[#allocation21_spill] sm:$0xff] %v9235_v35  ;;  %v9244_v30 = vsel %vm858_vm3, %v1071_v7, %v1073_v60  ;;  %v1081_v51 = vrot.slane %v8851_v17, 2 }
  0x72   :  { %10600 = vst [vmem:[#allocation22_spill] sm:$0xff] %v9244_v30 }
  0x74   :  { %7559 = vmatmul.mubr.msk.f32.gmra.mrb[10].mxu0 %vm81_vm1, %v9211_v47  ;;  %v1428_v47 = vrot.slane %v9065_v32, 4 }
  0x75   :  { %7561 = vmatprep.mubr.msk.f32.mxu0 %vm81_vm1, %v9217_v41  ;;  %v1075_v41 = vrot.slane %v8808_v10, 2 }
  0x77   :  { %v9248_v32 = vsel %vm858_vm3, %v1073_v60, %v1075_v41  ;;  %v1083_v60 = vrot.slane %v8869_v19, 2 }
  0x78   :  { %7562 = vmatmul.mubr.msk.f32.gmra.mrb[12].mxu0 %vm81_vm1, %v9204_v43  ;;  %10601 = vst [vmem:[#allocation23_spill] sm:$0xff] %v9248_v32 }
  0x79   :  { %7566 = vmatprep.mubr.msk.f32.mxu0 %vm81_vm1, %v1068_v38  ;;  %v1077_v38 = vrot.slane %v8821_v13, 2 }
  0x7b   :  { %v9261_v7 = vsel %vm858_vm3, %v1077_v38, %v1079_v5 }
  0x7c   :  { %7567 = vmatmul.mubr.msk.f32.vlgmr.msra.gmra.mrb[0].mxu0 %vm81_vm1, %v9230_v1  ;;  %10603 = vst [vmem:[#allocation25_spill] sm:$0xff] %v9261_v7 }
  0x7d   :  { %7588 = vmatpush3.msk.msra.mxu0 %vm124_vm0, %v1273_v55  ;;  %7569 = vmatprep.mubr.msk.f32.mxu0 %vm81_vm1, %v9235_v35  ;;  %v9257_v55 = vsel %vm858_vm3, %v1075_v41, %v1077_v38  ;;  %v9273_v41 = vsel %vm858_vm3, %v1081_v51, %v1083_v60  ;;  %v1087_v35 = vrot.slane %v8897_v23, 2 }
  0x7e   :  { %7610 = vmatprep.subr.msk.mxu0 %vm124_vm0, %v1428_v47  ;;  %10602 = vst [vmem:[#allocation24_spill] sm:$0xff] %v9257_v55 }
  0x80   :  { %7570 = vmatmul.mubr.msk.f32.gmra.mrb[2].mxu0 %vm81_vm1, %v9244_v30  ;;  %v9269_v30 = vsel %vm858_vm3, %v1079_v5, %v1081_v51 }
  0x81   :  { %7572 = vmatprep.mubr.msk.f32.mxu0 %vm81_vm1, %v9248_v32  ;;  %v1085_v32 = vrot.slane %v8879_v21, 2 }
  0x83   :  { %v9281_v38 = vsel %vm858_vm3, %v1083_v60, %v1085_v32  ;;  %v9285_v5 = vsel %vm858_vm3, %v1085_v32, %v1087_v35 }
  0x84   :  { %7573 = vmatmul.mubr.msk.f32.gmra.mrb[4].mxu0 %vm81_vm1, %v9257_v55  ;;  %10604 = vst [vmem:[#allocation26_spill] sm:$0xff] %v9285_v5  ;;  %v9288_v55 = vrot.slane %v8925_v27, 2 }
  0x85   :  { %7575 = vmatprep.mubr.msk.f32.mxu0 %vm81_vm1, %v9261_v7  ;;  %v1089_v7 = vrot.slane %v8907_v25, 2 }
  0x87   :  { %v9295_v51 = vsel %vm858_vm3, %v1087_v35, %v1089_v7  ;;  %v9299_v60 = vsel %vm858_vm3, %v1089_v7, %v9288_v55  ;;  %v73_v35 = vld [vmem:[%s10530_s2 + $0x10] sm:$0xff] }
  0x88   :  { %7576 = vmatmul.mubr.msk.f32.gmra.mrb[6].mxu0 %vm81_vm1, %v9269_v30  ;;  %v1901_v32 = vrot.slane %v73_v35, 4 }
  0x89   :  { %7578 = vmatprep.mubr.msk.f32.mxu0 %vm81_vm1, %v9273_v41 }
  0x8c   :  { %7579 = vmatmul.mubr.msk.f32.gmra.mrb[8].mxu0 %vm81_vm1, %v9281_v38 }
  0x8d   :  { %7581 = vmatprep.mubr.msk.f32.mxu0 %vm81_vm1, %v9285_v5 }
  0x90   :  { %7582 = vmatmul.mubr.msk.f32.gmra.mrb[10].mxu0 %vm81_vm1, %v9295_v51 }
  0x91   :  { %7584 = vmatprep.mubr.msk.f32.mxu0 %vm81_vm1, %v9299_v60 }
  0x94   :  { %7585 = vmatmul.mubr.msk.f32.gmra.mrb[12].mxu0 %vm81_vm1, %v9288_v55 }
  0x95   :  { %7589 = vmatprep.mubr.msk.f32.mxu0 %vm81_vm1, %v8803_v9  ;;  %v9341_v9 = vld [vmem:[%s10528_s0 + $0x70] sm:$0xff] }
  0x98   :  { %7590 = vmatmul.mubr.msk.f32.vlgmr.msra.gmra.mrb[0].mxu0 %vm81_vm1, %v8815_v11 }
  0x99   :  { %7611 = vmatpush3.msk.msra.mxu0 %vm124_vm0, %v1428_v47  ;;  %7592 = vmatprep.mubr.msk.f32.mxu0 %vm81_vm1, %v8835_v14  ;;  %v78_v47 = vld [vmem:[%s10531_s3 + $0x10] sm:$0xff] }
  0x9a   :  { %7633 = vmatprep.subr.msk.mxu0 %vm124_vm0, %v73_v35 }
  0x9c   :  { %7593 = vmatmul.mubr.msk.f32.gmra.mrb[2].mxu0 %vm81_vm1, %v8845_v16 }
  0x9d   :  { %7595 = vmatprep.mubr.msk.f32.mxu0 %vm81_vm1, %v8864_v18 }
  0xa0   :  { %7596 = vmatmul.mubr.msk.f32.gmra.mrb[4].mxu0 %vm81_vm1, %v8874_v20 }
  0xa1   :  { %7598 = vmatprep.mubr.msk.f32.mxu0 %vm81_vm1, %v8892_v22 }
  0xa4   :  { %7599 = vmatmul.mubr.msk.f32.gmra.mrb[6].mxu0 %vm81_vm1, %v8902_v24 }
  0xa5   :  { %7601 = vmatprep.mubr.msk.f32.mxu0 %vm81_vm1, %v8920_v26 }
  0xa8   :  { %7602 = vmatmul.mubr.msk.f32.gmra.mrb[8].mxu0 %vm81_vm1, %v8930_v28 }
  0xa9   :  { %7604 = vmatprep.mubr.msk.f32.mxu0 %vm81_vm1, %v8941_v29 }
  0xac   :  { %7605 = vmatmul.mubr.msk.f32.gmra.mrb[10].mxu0 %vm81_vm1, %v8947_v31 }
  0xad   :  { %7607 = vmatprep.mubr.msk.f32.mxu0 %vm81_vm1, %v8958_v34 }
  0xb0   :  { %7608 = vmatmul.mubr.msk.f32.gmra.mrb[12].mxu0 %vm81_vm1, %v9341_v9 }
  0xb1   :  { %7612 = vmatprep.mubr.msk.f32.mxu0 %vm81_vm1, %v8754_v2  ;;  %v9379_v2 = vld [vmem:[%s10529_s1 + $0x70] sm:$0xff] }
  0xb4   :  { %7613 = vmatmul.mubr.msk.f32.vlgmr.msra.gmra.mrb[0].mxu0 %vm81_vm1, %v8766_v4 }
  0xb5   :  { %7634 = vmatpush3.msk.msra.mxu0 %vm124_vm0, %v73_v35  ;;  %7615 = vmatprep.mubr.msk.f32.mxu0 %vm81_vm1, %v8781_v6  ;;  %v2059_v35 = vrot.slane %v78_v47, 4 }
  0xb6   :  { %7656 = vmatprep.subr.msk.mxu0 %vm124_vm0, %v78_v47 }
  0xb8   :  { %7616 = vmatmul.mubr.msk.f32.gmra.mrb[2].mxu0 %vm81_vm1, %v8796_v8 }
  0xb9   :  { %7618 = vmatprep.mubr.msk.f32.mxu0 %vm81_vm1, %v8808_v10 }
  0xbc   :  { %7619 = vmatmul.mubr.msk.f32.gmra.mrb[4].mxu0 %vm81_vm1, %v8821_v13 }
  0xbd   :  { %7621 = vmatprep.mubr.msk.f32.mxu0 %vm81_vm1, %v8840_v15 }
  0xc0   :  { %7622 = vmatmul.mubr.msk.f32.gmra.mrb[6].mxu0 %vm81_vm1, %v8851_v17 }
  0xc1   :  { %7624 = vmatprep.mubr.msk.f32.mxu0 %vm81_vm1, %v8869_v19 }
  0xc4   :  { %7625 = vmatmul.mubr.msk.f32.gmra.mrb[8].mxu0 %vm81_vm1, %v8879_v21 }
  0xc5   :  { %7627 = vmatprep.mubr.msk.f32.mxu0 %vm81_vm1, %v8897_v23 }
  0xc8   :  { %7628 = vmatmul.mubr.msk.f32.gmra.mrb[10].mxu0 %vm81_vm1, %v8907_v25 }
  0xc9   :  { %7630 = vmatprep.mubr.msk.f32.mxu0 %vm81_vm1, %v8925_v27 }
  0xcc   :  { %7631 = vmatmul.mubr.msk.f32.gmra.mrb[12].mxu0 %vm81_vm1, %v9379_v2 }
  0xcd   :  { %7635 = vmatprep.mubr.msk.f32.mxu0 %vm81_vm1, %v8966_v37  ;;  %v9404_v37 = vrot.slane %v9341_v9, 1 }
  0xcf   :  { %v9413_v7 = vsel %vm443_vm2, %v9029_v57, %v9404_v37  ;;  %v9442_v57 = vrot.slane %v9379_v2, 1 }
  0xd0   :  { %7636 = vmatmul.mubr.msk.f32.vlgmr.msra.gmra.mrb[0].mxu0 %vm81_vm1, %v8970_v39 }
  0xd1   :  { %7657 = vmatpush3.msk.msra.mxu0 %vm124_vm0, %v78_v47  ;;  %7638 = vmatprep.mubr.msk.f32.mxu0 %vm81_vm1, %v8984_v42  ;;  %10605 = vst [vmem:[#allocation27_spill] sm:$0xff] %v9442_v57  ;;  %v10607_v47 = vld [vmem:[#allocation8_spill] sm:$0xff] }
  0xd2   :  { %7679 = vmatprep.subr.msk.mxu0 %vm124_vm0, %v1901_v32 }
  0xd4   :  { %7639 = vmatmul.mubr.msk.f32.gmra.mrb[2].mxu0 %vm81_vm1, %v8988_v44 }
  0xd5   :  { %7641 = vmatprep.mubr.msk.f32.mxu0 %vm81_vm1, %v8998_v46 }
  0xd8   :  { %7642 = vmatmul.mubr.msk.f32.gmra.mrb[4].mxu0 %vm81_vm1, %v9002_v48 }
  0xd9   :  { %7644 = vmatprep.mubr.msk.f32.mxu0 %vm81_vm1, %v9010_v50 }
  0xdc   :  { %7645 = vmatmul.mubr.msk.f32.gmra.mrb[6].mxu0 %vm81_vm1, %v9014_v52 }
  0xdd   :  { %7647 = vmatprep.mubr.msk.f32.mxu0 %vm81_vm1, %v9022_v54 }
  0xe0   :  { %7648 = vmatmul.mubr.msk.f32.gmra.mrb[8].mxu0 %vm81_vm1, %v9026_v56 }
  0xe1   :  { %7650 = vmatprep.mubr.msk.f32.mxu0 %vm81_vm1, %v9036_v58 }
  0xe4   :  { %7651 = vmatmul.mubr.msk.f32.gmra.mrb[10].mxu0 %vm81_vm1, %v9042_v61 }
  0xe5   :  { %7653 = vmatprep.mubr.msk.f32.mxu0 %vm81_vm1, %v9413_v7 }
  0xe8   :  { %7654 = vmatmul.mubr.msk.f32.gmra.mrb[12].mxu0 %vm81_vm1, %v9404_v37 }
  0xe9   :  { %7658 = vmatprep.mubr.msk.f32.mxu0 %vm81_vm1, %v9055_v3  ;;  %v9451_v3 = vsel %vm443_vm2, %v9119_v63, %v9442_v57  ;;  %v10610_v63 = vld [vmem:[#allocation11_spill] sm:$0xff] }
  0xea   :  { %10606 = vst [vmem:[#allocation28_spill] sm:$0xff] %v9451_v3 }
  0xec   :  { %7659 = vmatmul.mubr.msk.f32.vlgmr.msra.gmra.mrb[0].mxu0 %vm81_vm1, %v9059_v12 }
  0xed   :  { %7680 = vmatpush3.msk.msra.mxu0 %vm124_vm0, %v1901_v32  ;;  %7661 = vmatprep.mubr.msk.f32.mxu0 %vm81_vm1, %v9074_v33  ;;  %v10608_v32 = vld [vmem:[#allocation9_spill] sm:$0xff] }
  0xee   :  { %7702 = vmatprep.subr.msk.mxu0 %vm124_vm0, %v2059_v35 }
  0xf0   :  { %7662 = vmatmul.mubr.msk.f32.gmra.mrb[2].mxu0 %vm81_vm1, %v9078_v36 }
  0xf1   :  { %7664 = vmatprep.mubr.msk.f32.mxu0 %vm81_vm1, %v9088_v40 }
  0xf4   :  { %7665 = vmatmul.mubr.msk.f32.gmra.mrb[4].mxu0 %vm81_vm1, %v9092_v45 }
  0xf5   :  { %7667 = vmatprep.mubr.msk.f32.mxu0 %vm81_vm1, %v9100_v49 }
  0xf8   :  { %7668 = vmatmul.mubr.msk.f32.gmra.mrb[6].mxu0 %vm81_vm1, %v9104_v53 }
  0xf9   :  { %7670 = vmatprep.mubr.msk.f32.mxu0 %vm81_vm1, %v9112_v59  ;;  %v10618_v59 = vld [vmem:[#allocation18_spill] sm:$0xff] }
  0xfc   :  { %7671 = vmatmul.mubr.msk.f32.gmra.mrb[8].mxu0 %vm81_vm1, %v9116_v62  ;;  %v10609_v62 = vld [vmem:[#allocation10_spill] sm:$0xff] }
  0xfd   :  { %7673 = vmatprep.mubr.msk.f32.mxu0 %vm81_vm1, %v9126_v0  ;;  %v74_v0 = vld [vmem:[%s10530_s2 + $0x18] sm:$0xff] }
 0x100   :  { %7674 = vmatmul.mubr.msk.f32.gmra.mrb[10].mxu0 %vm81_vm1, %v10607_v47  ;;  %v10614_v47 = vld [vmem:[#allocation15_spill] sm:$0xff] }
 0x101   :  { %7676 = vmatprep.mubr.msk.f32.mxu0 %vm81_vm1, %v9451_v3  ;;  %v10611_v3 = vld [vmem:[#allocation12_spill] sm:$0xff] }
 0x104   :  { %7677 = vmatmul.mubr.msk.f32.gmra.mrb[12].mxu0 %vm81_vm1, %v9442_v57  ;;  %v10612_v57 = vld [vmem:[#allocation13_spill] sm:$0xff] }
 0x105   :  { %7681 = vmatprep.mubr.msk.f32.mxu0 %vm81_vm1, %v10608_v32  ;;  %v10613_v32 = vld [vmem:[#allocation14_spill] sm:$0xff] }
 0x108   :  { %7682 = vmatmul.mubr.msk.f32.vlgmr.msra.gmra.mrb[0].mxu0 %vm81_vm1, %v10609_v62  ;;  %v10615_v62 = vld [vmem:[#allocation16_spill] sm:$0xff] }
 0x109   :  { %7703 = vmatpush3.msk.msra.mxu0 %vm124_vm0, %v2059_v35  ;;  %7684 = vmatprep.mubr.msk.f32.mxu0 %vm81_vm1, %v10610_v63  ;;  %v10616_v35 = vld [vmem:[#allocation17_spill] sm:$0xff]  ;;  %v9483_v63 = vrot.slane %v9341_v9, 2 }
 0x10a   :  { %7725 = vmatprep.subr.msk.mxu0 %vm124_vm0, %v74_v0 }
 0x10b   :  { %10617 = vst [vmem:[#allocation9_spill] sm:$0xff] %v9483_v63 }
 0x10c   :  { %7685 = vmatmul.mubr.msk.f32.gmra.mrb[2].mxu0 %vm81_vm1, %v10611_v3  ;;  %v10619_v3 = vld [vmem:[#allocation19_spill] sm:$0xff] }
 0x10d   :  { %7687 = vmatprep.mubr.msk.f32.mxu0 %vm81_vm1, %v10612_v57 }
 0x110   :  { %7688 = vmatmul.mubr.msk.f32.gmra.mrb[4].mxu0 %vm81_vm1, %v10613_v32  ;;  %v9492_v32 = vsel %vm858_vm3, %v9204_v43, %v9483_v63  ;;  %v10623_v43 = vld [vmem:[#allocation22_spill] sm:$0xff] }
 0x111   :  { %7690 = vmatprep.mubr.msk.f32.mxu0 %vm81_vm1, %v10614_v47  ;;  %10620 = vst [vmem:[#allocation13_spill] sm:$0xff] %v9492_v32  ;;  %v10621_v47 = vld [vmem:[#allocation20_spill] sm:$0xff] }
 0x114   :  { %7691 = vmatmul.mubr.msk.f32.gmra.mrb[6].mxu0 %vm81_vm1, %v10615_v62 }
 0x115   :  { %7693 = vmatprep.mubr.msk.f32.mxu0 %vm81_vm1, %v10616_v35 }
 0x118   :  { %7694 = vmatmul.mubr.msk.f32.gmra.mrb[8].mxu0 %vm81_vm1, %v10618_v59  ;;  %v10622_v59 = vld [vmem:[#allocation21_spill] sm:$0xff] }
 0x119   :  { %7696 = vmatprep.mubr.msk.f32.mxu0 %vm81_vm1, %v10619_v3  ;;  %v79_v3 = vld [vmem:[%s10531_s3 + $0x18] sm:$0xff] }
 0x11c   :  { %7697 = vmatmul.mubr.msk.f32.gmra.mrb[10].mxu0 %vm81_vm1, %v10621_v47 }
 0x11d   :  { %7699 = vmatprep.mubr.msk.f32.mxu0 %vm81_vm1, %v9492_v32  ;;  %v10624_v32 = vld [vmem:[#allocation23_spill] sm:$0xff] }
 0x120   :  { %7700 = vmatmul.mubr.msk.f32.gmra.mrb[12].mxu0 %vm81_vm1, %v9483_v63  ;;  %v10625_v63 = vld [vmem:[#allocation24_spill] sm:$0xff] }
 0x121   :  { %7704 = vmatprep.mubr.msk.f32.mxu0 %vm81_vm1, %v9230_v1  ;;  %v10626_v1 = vld [vmem:[#allocation25_spill] sm:$0xff] }
 0x124   :  { %7705 = vmatmul.mubr.msk.f32.vlgmr.msra.gmra.mrb[0].mxu0 %vm81_vm1, %v10622_v59 }
 0x125   :  { %7726 = vmatpush3.msk.msra.mxu0 %vm124_vm0, %v74_v0  ;;  %7707 = vmatprep.mubr.msk.f32.mxu0 %vm81_vm1, %v10623_v43  ;;  %v9524_v43 = vrot.slane %v9379_v2, 2 }
 0x126   :  { %7748 = vmatprep.subr.msk.mxu0 %vm124_vm0, %v79_v3 }
 0x128   :  { %7708 = vmatmul.mubr.msk.f32.gmra.mrb[2].mxu0 %vm81_vm1, %v10624_v32 }
 0x129   :  { %7710 = vmatprep.mubr.msk.f32.mxu0 %vm81_vm1, %v10625_v63 }
 0x12c   :  { %7711 = vmatmul.mubr.msk.f32.gmra.mrb[4].mxu0 %vm81_vm1, %v10626_v1  ;;  %v9533_v1 = vsel %vm858_vm3, %v9288_v55, %v9524_v43 }
 0x12d   :  { %7713 = vmatprep.mubr.msk.f32.mxu0 %vm81_vm1, %v9269_v30 }
 0x130   :  { %7714 = vmatmul.mubr.msk.f32.gmra.mrb[6].mxu0 %vm81_vm1, %v9273_v41 }
 0x131   :  { %7716 = vmatprep.mubr.msk.f32.mxu0 %vm81_vm1, %v9281_v38 }
 0x134   :  { %7717 = vmatmul.mubr.msk.f32.gmra.mrb[8].mxu0 %vm81_vm1, %v9285_v5  ;;  %v2527_v5 = vrot.slane %v74_v0, 4 }
 0x135   :  { %7719 = vmatprep.mubr.msk.f32.mxu0 %vm81_vm1, %v9295_v51 }
 0x138   :  { %7720 = vmatmul.mubr.msk.f32.gmra.mrb[10].mxu0 %vm81_vm1, %v9299_v60 }
 0x139   :  { %7722 = vmatprep.mubr.msk.f32.mxu0 %vm81_vm1, %v9533_v1 }
 0x13c   :  { %7723 = vmatmul.mubr.msk.f32.gmra.mrb[12].mxu0 %vm81_vm1, %v9524_v43 }
 0x13d   :  { %7727 = vmatprep.mubr.msk.f32.mxu0 %vm81_vm1, %v8815_v11  ;;  %v9572_v11 = vld [vmem:[%s10528_s0 + $0x78] sm:$0xff] }
 0x140   :  { %7728 = vmatmul.mubr.msk.f32.vlgmr.msra.gmra.mrb[0].mxu0 %vm81_vm1, %v8835_v14  ;;  %v2685_v14 = vrot.slane %v79_v3, 4 }
 0x141   :  { %7749 = vmatpush3.msk.msra.mxu0 %vm124_vm0, %v79_v3  ;;  %7730 = vmatprep.mubr.msk.f32.mxu0 %vm81_vm1, %v8845_v16  ;;  %v10627_v16 = vld [vmem:[#allocation5_spill] sm:$0xff] }
 0x142   :  { %7771 = vmatprep.subr.msk.mxu0 %vm124_vm0, %v2527_v5 }
 0x144   :  { %7731 = vmatmul.mubr.msk.f32.gmra.mrb[2].mxu0 %vm81_vm1, %v8864_v18 }
 0x145   :  { %7733 = vmatprep.mubr.msk.f32.mxu0 %vm81_vm1, %v8874_v20  ;;  %v10630_v20 = vld [vmem:[#allocation8_spill] sm:$0xff] }
 0x148   :  { %7734 = vmatmul.mubr.msk.f32.gmra.mrb[4].mxu0 %vm81_vm1, %v8892_v22 }
 0x149   :  { %7736 = vmatprep.mubr.msk.f32.mxu0 %vm81_vm1, %v8902_v24  ;;  %v10633_v24 = vld [vmem:[#allocation10_spill] sm:$0xff] }
 0x14c   :  { %7737 = vmatmul.mubr.msk.f32.gmra.mrb[6].mxu0 %vm81_vm1, %v8920_v26  ;;  %v10635_v26 = vld [vmem:[#allocation12_spill] sm:$0xff] }
 0x14d   :  { %7739 = vmatprep.mubr.msk.f32.mxu0 %vm81_vm1, %v8930_v28  ;;  %v10637_v28 = vld [vmem:[#allocation15_spill] sm:$0xff] }
 0x150   :  { %7740 = vmatmul.mubr.msk.f32.gmra.mrb[8].mxu0 %vm81_vm1, %v8941_v29  ;;  %v10638_v29 = vld [vmem:[#allocation18_spill] sm:$0xff] }
 0x151   :  { %7742 = vmatprep.mubr.msk.f32.mxu0 %vm81_vm1, %v8947_v31  ;;  %v2841_v31 = vrot.slane %v9572_v11, 2 }
 0x154   :  { %7743 = vmatmul.mubr.msk.f32.gmra.mrb[10].mxu0 %vm81_vm1, %v8958_v34  ;;  %v10639_v34 = vld [vmem:[#allocation19_spill] sm:$0xff] }
 0x155   :  { %7745 = vmatprep.mubr.msk.f32.mxu0 %vm81_vm1, %v9341_v9 }
 0x158   :  { %7746 = vmatmul.mubr.msk.f32.gmra.mrb[12].mxu0 %vm81_vm1, %v9572_v11 }
 0x159   :  { %7750 = vmatprep.mubr.msk.f32.mxu0 %vm81_vm1, %v8766_v4  ;;  %v3179_v4 = vld [vmem:[%s10533_s5 + $0x8] sm:$0xff] }
 0x15a   :  { %7863 = vmatprep.subr.mxu1 %v3179_v4 }
 0x15b   :  { %7864 = vmatpush3.msra.mxu1 %v3179_v4 }
 0x15c   :  { %7751 = vmatmul.mubr.msk.f32.vlgmr.msra.gmra.mrb[0].mxu0 %vm81_vm1, %v8781_v6  ;;  %v9610_v6 = vld [vmem:[%s10529_s1 + $0x78] sm:$0xff] }
 0x15d   :  { %7772 = vmatpush3.msk.msra.mxu0 %vm124_vm0, %v2527_v5  ;;  %7753 = vmatprep.mubr.msk.f32.mxu0 %vm81_vm1, %v8796_v8  ;;  %v75_v8 = vld [vmem:[%s10530_s2 + $0x20] sm:$0xf]  ;;  %v2683_v18 = vrot.slane %v9610_v6, 1 }
 0x15e   :  { %7794 = vmatprep.subr.msk.mxu0 %vm124_vm0, %v2685_v14 }
 0x160   :  { %7754 = vmatmul.mubr.msk.f32.gmra.mrb[2].mxu0 %vm81_vm1, %v8808_v10  ;;  %v2525_v10 = vrot.slane %v9572_v11, 1 }
 0x161   :  { %7756 = vmatprep.mubr.msk.f32.mxu0 %vm81_vm1, %v8821_v13 }
 0x162   :  { %v2526_v13 = vsel %vm443_vm2, %v9404_v37, %v2525_v10 }
 0x164   :  { %7757 = vmatmul.mubr.msk.f32.gmra.mrb[4].mxu0 %vm81_vm1, %v8840_v15  ;;  %v80_v15 = vld [vmem:[%s10531_s3 + $0x20] sm:$0xf] }
 0x165   :  { %7759 = vmatprep.mubr.msk.f32.mxu0 %vm81_vm1, %v8851_v17  ;;  %v10628_v17 = vld [vmem:[#allocation6_spill] sm:$0xff] }
 0x168   :  { %7760 = vmatmul.mubr.msk.f32.gmra.mrb[6].mxu0 %vm81_vm1, %v8869_v19  ;;  %v10629_v19 = vld [vmem:[#allocation7_spill] sm:$0xff] }
 0x169   :  { %7762 = vmatprep.mubr.msk.f32.mxu0 %vm81_vm1, %v8879_v21  ;;  %v10631_v21 = vld [vmem:[#allocation27_spill] sm:$0xff] }
 0x16a   :  { %v2684_v22 = vsel %vm443_vm2, %v10631_v21, %v2683_v18 }
 0x16c   :  { %7763 = vmatmul.mubr.msk.f32.gmra.mrb[8].mxu0 %vm81_vm1, %v8897_v23  ;;  %v10632_v23 = vld [vmem:[#allocation28_spill] sm:$0xff] }
 0x16d   :  { %7765 = vmatprep.mubr.msk.f32.mxu0 %vm81_vm1, %v8907_v25  ;;  %v10634_v25 = vld [vmem:[#allocation11_spill] sm:$0xff] }
 0x170   :  { %7766 = vmatmul.mubr.msk.f32.gmra.mrb[10].mxu0 %vm81_vm1, %v8925_v27  ;;  %v10636_v27 = vld [vmem:[#allocation14_spill] sm:$0xff] }
 0x171   :  { %7768 = vmatprep.mubr.msk.f32.mxu0 %vm81_vm1, %v9379_v2 }
 0x174   :  { %7769 = vmatmul.mubr.msk.f32.gmra.mrb[12].mxu0 %vm81_vm1, %v9610_v6 }
 0x175   :  { %7773 = vmatprep.mubr.msk.f32.mxu0 %vm81_vm1, %v8970_v39  ;;  %v10640_v39 = vld [vmem:[#allocation9_spill] sm:$0xff] }
 0x178   :  { %7774 = vmatmul.mubr.msk.f32.vlgmr.msra.gmra.mrb[0].mxu0 %vm81_vm1, %v8984_v42  ;;  %v2842_v42 = vsel %vm858_vm3, %v10640_v39, %v2841_v31 }
 0x179   :  { %7795 = vmatpush3.msk.msra.mxu0 %vm124_vm0, %v2685_v14  ;;  %7776 = vmatprep.mubr.msk.f32.mxu0 %vm81_vm1, %v8988_v44  ;;  %v10641_v44 = vld [vmem:[#allocation13_spill] sm:$0xff] }
 0x17a   :  { %7817 = vmatprep.subr.msk.mxu0 %vm124_vm0, %v75_v8 }
 0x17c   :  { %7777 = vmatmul.mubr.msk.f32.gmra.mrb[2].mxu0 %vm81_vm1, %v8998_v46  ;;  %v10642_v46 = vld [vmem:[#allocation22_spill] sm:$0xff] }
 0x17d   :  { %7779 = vmatprep.mubr.msk.f32.mxu0 %vm81_vm1, %v9002_v48  ;;  %v10643_v48 = vld [vmem:[#allocation25_spill] sm:$0xff] }
 0x180   :  { %7780 = vmatmul.mubr.msk.f32.gmra.mrb[4].mxu0 %vm81_vm1, %v9010_v50  ;;  %v10644_v50 = vld [vmem:[#allocation26_spill] sm:$0xff] }
 0x181   :  { %7782 = vmatprep.mubr.msk.f32.mxu0 %vm81_vm1, %v9014_v52  ;;  %v2999_v52 = vrot.slane %v9610_v6, 2 }
 0x184   :  { %7783 = vmatmul.mubr.msk.f32.gmra.mrb[6].mxu0 %vm81_vm1, %v9022_v54  ;;  %v3000_v54 = vsel %vm858_vm3, %v9524_v43, %v2999_v52 }
 0x185   :  { %7785 = vmatprep.mubr.msk.f32.mxu0 %vm81_vm1, %v9026_v56  ;;  %v7459_v56 = vpop.f32.mrb[0].mxu1 }
 0x188   :  { %7786 = vmatmul.mubr.msk.f32.gmra.mrb[8].mxu0 %vm81_vm1, %v9036_v58  ;;  %v214_v58 = vpop.f32.mrb[1].mxu1 }
 0x189   :  { %7788 = vmatprep.mubr.msk.f32.mxu0 %vm81_vm1, %v9042_v61  ;;  %v7462_v61 = vpop.f32.mrb[2].mxu1 }
 0x18c   :  { %7789 = vmatmul.mubr.msk.f32.gmra.mrb[10].mxu0 %vm81_vm1, %v9413_v7 }
 0x18d   :  { %7791 = vmatprep.mubr.msk.f32.mxu0 %vm81_vm1, %v2526_v13 }
 0x190   :  { %7792 = vmatmul.mubr.msk.f32.gmra.mrb[12].mxu0 %vm81_vm1, %v2525_v10 }
 0x191   :  { %7796 = vmatprep.mubr.msk.f32.mxu0 %vm81_vm1, %v9059_v12  ;;  %v224_v12 = vpop.f32.mrb[3].mxu1 }
 0x194   :  { %7797 = vmatmul.mubr.msk.f32.vlgmr.msra.gmra.mrb[0].mxu0 %vm81_vm1, %v9074_v33  ;;  %v7465_v33 = vpop.f32.mrb[4].mxu1 }
 0x195   :  { %7818 = vmatpush3.msk.msra.mxu0 %vm124_vm0, %v75_v8  ;;  %7799 = vmatprep.mubr.msk.f32.mxu0 %vm81_vm1, %v9078_v36  ;;  %v3178_v36 = vld [vmem:[%s10533_s5] sm:$0xff] }
 0x196   :  { %7840 = vmatprep.subr.msk.mxu0 %vm124_vm0, %v80_v15  ;;  %7883 = vmatprep.subr.mxu1 %v3178_v36 }
 0x198   :  { %7800 = vmatmul.mubr.msk.f32.gmra.mrb[2].mxu0 %vm81_vm1, %v9088_v40  ;;  %v234_v40 = vpop.f32.mrb[5].mxu1 }
 0x199   :  { %7802 = vmatprep.mubr.msk.f32.mxu0 %vm81_vm1, %v9092_v45  ;;  %v7468_v45 = vpop.f32.mrb[6].mxu1 }
 0x19c   :  { %7803 = vmatmul.mubr.msk.f32.gmra.mrb[4].mxu0 %vm81_vm1, %v9100_v49  ;;  %v244_v49 = vpop.f32.mrb[7].mxu1 }
 0x19d   :  { %7805 = vmatprep.mubr.msk.f32.mxu0 %vm81_vm1, %v9104_v53  ;;  %v9744_v53 = vpop.f32.mrb[8].mxu1 }
 0x1a0   :  { %7806 = vmatmul.mubr.msk.f32.gmra.mrb[6].mxu0 %vm81_vm1, %v10627_v16 }
 0x1a1   :  { %7808 = vmatprep.mubr.msk.f32.mxu0 %vm81_vm1, %v10628_v17 }
 0x1a4   :  { %7809 = vmatmul.mubr.msk.f32.gmra.mrb[8].mxu0 %vm81_vm1, %v10629_v19 }
 0x1a5   :  { %7811 = vmatprep.mubr.msk.f32.mxu0 %vm81_vm1, %v10630_v20 }
 0x1a8   :  { %7812 = vmatmul.mubr.msk.f32.gmra.mrb[10].mxu0 %vm81_vm1, %v10632_v23 }
 0x1a9   :  { %7814 = vmatprep.mubr.msk.f32.mxu0 %vm81_vm1, %v2684_v22 }
 0x1ac   :  { %7815 = vmatmul.mubr.msk.f32.gmra.mrb[12].mxu0 %vm81_vm1, %v2683_v18 }
 0x1ad   :  { %7819 = vmatprep.mubr.msk.f32.mxu0 %vm81_vm1, %v10633_v24 }
 0x1b0   :  { %7820 = vmatmul.mubr.msk.f32.vlgmr.msra.gmra.mrb[0].mxu0 %vm81_vm1, %v10634_v25 }
 0x1b1   :  { %7841 = vmatpush3.msk.msra.mxu0 %vm124_vm0, %v80_v15  ;;  %7822 = vmatprep.mubr.msk.f32.mxu0 %vm81_vm1, %v10635_v26 }
 0x1b4   :  { %7823 = vmatmul.mubr.msk.f32.gmra.mrb[2].mxu0 %vm81_vm1, %v10612_v57 }
 0x1b5   :  { %7825 = vmatprep.mubr.msk.f32.mxu0 %vm81_vm1, %v10636_v27 }
 0x1b8   :  { %7826 = vmatmul.mubr.msk.f32.gmra.mrb[4].mxu0 %vm81_vm1, %v10637_v28 }
 0x1b9   :  { %7828 = vmatprep.mubr.msk.f32.mxu0 %vm81_vm1, %v10615_v62  ;;  %v9751_v62 = vld [vmem:[%s10532_s4] ss:$0 sm:$0xff] }
 0x1bc   :  { %7829 = vmatmul.mubr.msk.f32.gmra.mrb[6].mxu0 %vm81_vm1, %v10616_v35 }
 0x1bd   :  { %7831 = vmatprep.mubr.msk.f32.mxu0 %vm81_vm1, %v10638_v29 }
 0x1c0   :  { %7832 = vmatmul.mubr.msk.f32.gmra.mrb[8].mxu0 %vm81_vm1, %v10639_v34 }
 0x1c1   :  { %7834 = vmatprep.mubr.msk.f32.mxu0 %vm81_vm1, %v10621_v47 }
 0x1c4   :  { %7835 = vmatmul.mubr.msk.f32.gmra.mrb[10].mxu0 %vm81_vm1, %v10641_v44 }
 0x1c5   :  { %7837 = vmatprep.mubr.msk.f32.mxu0 %vm81_vm1, %v2842_v42 }
 0x1c8   :  { %7838 = vmatmul.mubr.msk.f32.gmra.mrb[12].mxu0 %vm81_vm1, %v2841_v31 }
 0x1c9   :  { %7842 = vmatprep.mubr.msk.f32.mxu0 %vm81_vm1, %v10622_v59  ;;  %v9746_v59 = vpop.f32.mrb[9].mxu1 }
 0x1cc   :  { %7843 = vmatmul.mubr.msk.f32.vlgmr.msra.gmra.mrb[0].mxu0 %vm81_vm1, %v10642_v46 }
 0x1cd   :  { %7845 = vmatprep.mubr.msk.f32.mxu0 %vm81_vm1, %v10624_v32 }
 0x1d0   :  { %7846 = vmatmul.mubr.msk.f32.gmra.mrb[2].mxu0 %vm81_vm1, %v10625_v63 }
 0x1d1   :  { %7848 = vmatprep.mubr.msk.f32.mxu0 %vm81_vm1, %v10643_v48 }
 0x1d4   :  { %7849 = vmatmul.mubr.msk.f32.gmra.mrb[4].mxu0 %vm81_vm1, %v9269_v30 }
 0x1d5   :  { %7851 = vmatprep.mubr.msk.f32.mxu0 %vm81_vm1, %v9273_v41 }
 0x1d8   :  { %7852 = vmatmul.mubr.msk.f32.gmra.mrb[6].mxu0 %vm81_vm1, %v9281_v38 }
 0x1d9   :  { %7854 = vmatprep.mubr.msk.f32.mxu0 %vm81_vm1, %v10644_v50 }
 0x1dc   :  { %7855 = vmatmul.mubr.msk.f32.gmra.mrb[8].mxu0 %vm81_vm1, %v9295_v51 }
 0x1dd   :  { %7857 = vmatprep.mubr.msk.f32.mxu0 %vm81_vm1, %v9299_v60 }
 0x1e0   :  { %7858 = vmatmul.mubr.msk.f32.gmra.mrb[10].mxu0 %vm81_vm1, %v9533_v1  ;;  %v3180_v1 = vld [vmem:[%s10533_s5 + $0x10] sm:$0xff] }
 0x1e1   :  { %7860 = vmatprep.mubr.msk.f32.mxu0 %vm81_vm1, %v3000_v54 }
 0x1e4   :  { %7861 = vmatmul.mubr.msk.f32.gmra.mrb[12].mxu0 %vm81_vm1, %v2999_v52 }
 0x29f   :  { %v7844_v0 = vpop.f32.mrb[0].mxu0 }
 0x2a0   :  { %v9754_v30 = vadd.f32 %v7844_v0, %v9751_v62  ;;  %v3074_v55 = vpop.f32.mrb[1].mxu0 }
 0x2a1   :  { %v9757_v41 = vadd.f32 %v9751_v62, %v3074_v55 }
 0x2a2   :  { %v3200_v38 = vrot.slane %v9754_v30, 1  ;;  %v3522_v0 = vrot.slane %v9754_v30, 2 }
 0x2a3   :  { %v3199_v5 = vrot.slane %v9757_v41, 1  ;;  %v7847_v51 = vpop.f32.mrb[2].mxu0 }
 0x2a4   :  { %v9762_v60 = vadd.f32 %v7847_v51, %v9751_v62  ;;  %v3084_v9 = vpop.f32.mrb[3].mxu0 }
 0x2a5   :  { %v9765_v2 = vadd.f32 %v9751_v62, %v3084_v9  ;;  %v3201_v37 = vsel %vm443_vm2, %v3199_v5, %v3200_v38  ;;  %v3182_v9 = vld [vmem:[%s10533_s5 + $0x20] sm:$0xff] }
 0x2a6   :  { %7865 = vmatprep.mubr.msk.f32.mxu1 %vm3222_vm4, %v3201_v37  ;;  %v3204_v7 = vrot.slane %v9762_v60, 1  ;;  %v3526_v5 = vrot.slane %v9762_v60, 2 }
 0x2a7   :  { %v7850_v57 = vpop.f32.mrb[4].mxu0  ;;  %v3202_v3 = vrot.slane %v9765_v2, 1  ;;  %v3524_v55 = vrot.slane %v9765_v2, 2 }
 0x2a8   :  { %v8275_v47 = vadd.f32 %v7850_v57, %v7459_v56  ;;  %v3094_v63 = vpop.f32.mrb[5].mxu0 }
 0x2a9   :  { %v8276_v32 = vadd.f32 %v3094_v63, %v214_v58  ;;  %v9772_v35 = vsel %vm443_vm2, %v3200_v38, %v3202_v3  ;;  %v9775_v43 = vsel %vm443_vm2, %v3202_v3, %v3204_v7  ;;  %v9912_v37 = vsel %vm858_vm3, %v3524_v55, %v3526_v5 }
 0x2aa   :  { %v9781_v11 = vadd.f32 %v8275_v47, %v9751_v62  ;;  %7866 = vmatmul.mubr.msk.f32.vlgmr.msra.gmra.mrb[10].mxu1 %vm3222_vm4, %v9772_v35 }
 0x2ab   :  { %v9786_v14 = vadd.f32 %v8276_v32, %v9751_v62  ;;  %v7853_v4 = vpop.f32.mrb[6].mxu0  ;;  %7868 = vmatprep.mubr.msk.f32.mxu1 %vm3222_vm4, %v9775_v43  ;;  %7884 = vmatpush3.msra.mxu1 %v3178_v36 }
 0x2ac   :  { %v8277_v6 = vadd.f32 %v7853_v4, %v7462_v61  ;;  %v3104_v8 = vpop.f32.mrb[7].mxu0  ;;  %v3208_v10 = vrot.slane %v9781_v11, 1  ;;  %7903 = vmatprep.subr.mxu1 %v3180_v1 }
 0x2ad   :  { %v8278_v13 = vadd.f32 %v3104_v8, %v224_v12  ;;  %v3206_v15 = vrot.slane %v9786_v14, 1  ;;  %v3528_v51 = vrot.slane %v9786_v14, 2 }
 0x2ae   :  { %v9793_v16 = vadd.f32 %v8277_v6, %v9751_v62 }
 0x2af   :  { %v9796_v17 = vadd.f32 %v8278_v13, %v9751_v62  ;;  %v7856_v18 = vpop.f32.mrb[8].mxu0  ;;  %v9799_v19 = vsel %vm443_vm2, %v3204_v7, %v3206_v15  ;;  %v9802_v20 = vsel %vm443_vm2, %v3206_v15, %v3208_v10  ;;  %v3530_v7 = vrot.slane %v9781_v11, 2 }
 0x2b0   :  { %v8279_v21 = vadd.f32 %v7856_v18, %v7465_v33  ;;  %v3114_v22 = vpop.f32.mrb[9].mxu0  ;;  %7869 = vmatmul.mubr.msk.f32.gmra.mrb[12].mxu1 %vm3222_vm4, %v9799_v19  ;;  %v3212_v23 = vrot.slane %v9793_v16, 1  ;;  %v9918_v57 = vsel %vm858_vm3, %v3526_v5, %v3528_v51  ;;  %v3534_v63 = vrot.slane %v9793_v16, 2 }
 0x2b1   :  { %v8280_v24 = vadd.f32 %v3114_v22, %v234_v40  ;;  %7871 = vmatprep.mubr.msk.f32.mxu1 %vm3222_vm4, %v9802_v20  ;;  %v3210_v25 = vrot.slane %v9796_v17, 1  ;;  %v3532_v3 = vrot.slane %v9796_v17, 2  ;;  %v9924_v47 = vsel %vm858_vm3, %v3528_v51, %v3530_v7  ;;  %v3183_v22 = vld [vmem:[%s10533_s5 + $0x28] sm:$0xff] }
 0x2b2   :  { %v9811_v26 = vadd.f32 %v8279_v21, %v9751_v62 }
 0x2b3   :  { %v9814_v27 = vadd.f32 %v8280_v24, %v9751_v62  ;;  %v7859_v28 = vpop.f32.mrb[10].mxu0  ;;  %v9817_v29 = vsel %vm443_vm2, %v3208_v10, %v3210_v25  ;;  %v9820_v31 = vsel %vm443_vm2, %v3210_v25, %v3212_v23  ;;  %v9930_v32 = vsel %vm858_vm3, %v3530_v7, %v3532_v3  ;;  %v3185_v24 = vld [vmem:[%s10533_s5 + $0x38] sm:$0xff] }
 0x2b4   :  { %v8281_v34 = vadd.f32 %v7859_v28, %v7468_v45  ;;  %v3124_v39 = vpop.f32.mrb[11].mxu0  ;;  %7872 = vmatmul.mubr.msk.f32.gmra.mrb[14].mxu1 %vm3222_vm4, %v9817_v29  ;;  %v3216_v42 = vrot.slane %v9811_v26, 1  ;;  %v9936_v4 = vsel %vm858_vm3, %v3532_v3, %v3534_v63  ;;  %v3538_v6 = vrot.slane %v9811_v26, 2 }
 0x2b5   :  { %v8282_v44 = vadd.f32 %v3124_v39, %v244_v49  ;;  %7874 = vmatprep.mubr.msk.f32.mxu1 %vm3222_vm4, %v9820_v31  ;;  %v3214_v46 = vrot.slane %v9814_v27, 1 }
 0x2b6   :  { %v9829_v48 = vadd.f32 %v8281_v34, %v9751_v62  ;;  %v3186_v34 = vld [vmem:[%s10533_s5 + $0x40] sm:$0xff] }
 0x2b7   :  { %v9832_v50 = vadd.f32 %v8282_v44, %v9751_v62  ;;  %v7862_v52 = vpop.f32.mrb[12].mxu0  ;;  %v9835_v54 = vsel %vm443_vm2, %v3212_v23, %v3214_v46  ;;  %v9838_v56 = vsel %vm443_vm2, %v3214_v46, %v3216_v42  ;;  %v4576_v44 = vld [vmem:[%s10535_s7] sm:$0xff] }
 0x2b8   :  { %v8283_v58 = vadd.f32 %v7862_v52, %v9744_v53  ;;  %v3134_v61 = vpop.f32.mrb[13].mxu0  ;;  %7875 = vmatmul.mubr.msk.f32.gmra.mrb[16].mxu1 %vm3222_vm4, %v9835_v54  ;;  %v9844_v12 = vrot.slane %v9829_v48, 1  ;;  %v3542_v15 = vrot.slane %v9829_v48, 2 }
 0x2b9   :  { %v8284_v33 = vadd.f32 %v3134_v61, %v9746_v59  ;;  %7877 = vmatprep.mubr.msk.f32.mxu1 %vm3222_vm4, %v9838_v56  ;;  %v3218_v36 = vrot.slane %v9832_v50, 1  ;;  %v3181_v59 = vld [vmem:[%s10533_s5 + $0x18] sm:$0xff]  ;;  %v3540_v10 = vrot.slane %v9832_v50, 2 }
 0x2ba   :  { %v9851_v40 = vadd.f32 %v8283_v58, %v9751_v62 }
 0x2bb   :  { %v9854_v45 = vadd.f32 %v8284_v33, %v9751_v62  ;;  %v9857_v49 = vsel %vm443_vm2, %v3216_v42, %v3218_v36  ;;  %v9861_v53 = vsel %vm443_vm2, %v3218_v36, %v9844_v12  ;;  %v3521_v62 = vrot.slane %v9757_v41, 2 }
 0x2bc   :  { %7878 = vmatmul.mubr.msk.f32.gmra.mrb[18].mxu1 %vm3222_vm4, %v9857_v49  ;;  %v9954_v18 = vsel %vm858_vm3, %v3538_v6, %v3540_v10  ;;  %v9959_v21 = vsel %vm858_vm3, %v3540_v10, %v3542_v15 }
 0x2bd   :  { %7880 = vmatprep.mubr.msk.f32.mxu1 %vm3222_vm4, %v9861_v53  ;;  %v3523_v38 = vsel %vm858_vm3, %v3521_v62, %v3522_v0  ;;  %v3988_v25 = vrot.slane %v9854_v45, 2 }
 0x2bf   :  { %v3989_v28 = vsel %vm858_vm3, %v3542_v15, %v3988_v25 }
 0x2c0   :  { %7881 = vmatmul.mubr.msk.f32.gmra.mrb[20].mxu1 %vm3222_vm4, %v9844_v12 }
 0x2c1   :  { %7885 = vmatprep.mubr.msk.f32.mxu1 %vm3222_vm4, %v9757_v41  ;;  %v9903_v41 = vsel %vm858_vm3, %v3522_v0, %v3524_v55 }
 0x2c4   :  { %7886 = vmatmul.mubr.msk.f32.vlgmr.msra.gmra.mrb[10].mxu1 %vm3222_vm4, %v9754_v30 }
 0x2c5   :  { %7888 = vmatprep.mubr.msk.f32.mxu1 %vm3222_vm4, %v9765_v2  ;;  %7904 = vmatpush3.msra.mxu1 %v3180_v1  ;;  %v3536_v1 = vrot.slane %v9814_v27, 2 }
 0x2c6   :  { %7923 = vmatprep.subr.mxu1 %v3181_v59 }
 0x2c7   :  { %v9942_v8 = vsel %vm858_vm3, %v3534_v63, %v3536_v1  ;;  %v9948_v13 = vsel %vm858_vm3, %v3536_v1, %v3538_v6 }
 0x2c8   :  { %7889 = vmatmul.mubr.msk.f32.gmra.mrb[12].mxu1 %vm3222_vm4, %v9762_v60 }
 0x2c9   :  { %7891 = vmatprep.mubr.msk.f32.mxu1 %vm3222_vm4, %v9786_v14 }
 0x2cc   :  { %7892 = vmatmul.mubr.msk.f32.gmra.mrb[14].mxu1 %vm3222_vm4, %v9781_v11 }
 0x2cd   :  { %7894 = vmatprep.mubr.msk.f32.mxu1 %vm3222_vm4, %v9796_v17 }
 0x2d0   :  { %7895 = vmatmul.mubr.msk.f32.gmra.mrb[16].mxu1 %vm3222_vm4, %v9793_v16 }
 0x2d1   :  { %7897 = vmatprep.mubr.msk.f32.mxu1 %vm3222_vm4, %v9814_v27 }
 0x2d4   :  { %7898 = vmatmul.mubr.msk.f32.gmra.mrb[18].mxu1 %vm3222_vm4, %v9811_v26 }
 0x2d5   :  { %7900 = vmatprep.mubr.msk.f32.mxu1 %vm3222_vm4, %v9832_v50 }
 0x2d8   :  { %7901 = vmatmul.mubr.msk.f32.gmra.mrb[20].mxu1 %vm3222_vm4, %v9829_v48 }
 0x2d9   :  { %7905 = vmatprep.mubr.msk.f32.mxu1 %vm3222_vm4, %v3523_v38 }
 0x2dc   :  { %7906 = vmatmul.mubr.msk.f32.vlgmr.msra.gmra.mrb[10].mxu1 %vm3222_vm4, %v9903_v41 }
 0x2dd   :  { %7908 = vmatprep.mubr.msk.f32.mxu1 %vm3222_vm4, %v9912_v37  ;;  %7924 = vmatpush3.msra.mxu1 %v3181_v59 }
 0x2de   :  { %7943 = vmatprep.subr.mxu1 %v3182_v9 }
 0x2e0   :  { %7909 = vmatmul.mubr.msk.f32.gmra.mrb[12].mxu1 %vm3222_vm4, %v9918_v57 }
 0x2e1   :  { %7911 = vmatprep.mubr.msk.f32.mxu1 %vm3222_vm4, %v9924_v47 }
 0x2e4   :  { %7912 = vmatmul.mubr.msk.f32.gmra.mrb[14].mxu1 %vm3222_vm4, %v9930_v32 }
 0x2e5   :  { %7914 = vmatprep.mubr.msk.f32.mxu1 %vm3222_vm4, %v9936_v4 }
 0x2e8   :  { %7915 = vmatmul.mubr.msk.f32.gmra.mrb[16].mxu1 %vm3222_vm4, %v9942_v8 }
 0x2e9   :  { %7917 = vmatprep.mubr.msk.f32.mxu1 %vm3222_vm4, %v9948_v13 }
 0x2ec   :  { %7918 = vmatmul.mubr.msk.f32.gmra.mrb[18].mxu1 %vm3222_vm4, %v9954_v18 }
 0x2ed   :  { %7920 = vmatprep.mubr.msk.f32.mxu1 %vm3222_vm4, %v9959_v21 }
 0x2f0   :  { %7921 = vmatmul.mubr.msk.f32.gmra.mrb[20].mxu1 %vm3222_vm4, %v3542_v15 }
 0x2f1   :  { %7925 = vmatprep.mubr.msk.f32.mxu1 %vm3222_vm4, %v9754_v30  ;;  %v3184_v30 = vld [vmem:[%s10533_s5 + $0x30] sm:$0xff] }
 0x2f4   :  { %7926 = vmatmul.mubr.msk.f32.vlgmr.msra.gmra.mrb[10].mxu1 %vm3222_vm4, %v9765_v2 }
 0x2f5   :  { %7928 = vmatprep.mubr.msk.f32.mxu1 %vm3222_vm4, %v9762_v60  ;;  %7944 = vmatpush3.msra.mxu1 %v3182_v9 }
 0x2f6   :  { %7963 = vmatprep.subr.mxu1 %v3183_v22 }
 0x2f8   :  { %7929 = vmatmul.mubr.msk.f32.gmra.mrb[12].mxu1 %vm3222_vm4, %v9786_v14 }
 0x2f9   :  { %7931 = vmatprep.mubr.msk.f32.mxu1 %vm3222_vm4, %v9781_v11 }
 0x2fc   :  { %7932 = vmatmul.mubr.msk.f32.gmra.mrb[14].mxu1 %vm3222_vm4, %v9796_v17 }
 0x2fd   :  { %7934 = vmatprep.mubr.msk.f32.mxu1 %vm3222_vm4, %v9793_v16 }
 0x300   :  { %7935 = vmatmul.mubr.msk.f32.gmra.mrb[16].mxu1 %vm3222_vm4, %v9814_v27 }
 0x301   :  { %7937 = vmatprep.mubr.msk.f32.mxu1 %vm3222_vm4, %v9811_v26 }
 0x304   :  { %7938 = vmatmul.mubr.msk.f32.gmra.mrb[18].mxu1 %vm3222_vm4, %v9832_v50 }
 0x305   :  { %7940 = vmatprep.mubr.msk.f32.mxu1 %vm3222_vm4, %v9829_v48 }
 0x308   :  { %7941 = vmatmul.mubr.msk.f32.gmra.mrb[20].mxu1 %vm3222_vm4, %v9854_v45 }
 0x309   :  { %7945 = vmatprep.mubr.msk.f32.mxu1 %vm3222_vm4, %v9772_v35  ;;  %v3845_v35 = vrot.slane %v9854_v45, 1 }
 0x30b   :  { %v3846_v23 = vsel %vm443_vm2, %v9844_v12, %v3845_v35 }
 0x30c   :  { %7946 = vmatmul.mubr.msk.f32.vlgmr.msra.gmra.mrb[10].mxu1 %vm3222_vm4, %v9775_v43 }
 0x30d   :  { %7948 = vmatprep.mubr.msk.f32.mxu1 %vm3222_vm4, %v9799_v19  ;;  %7964 = vmatpush3.msra.mxu1 %v3183_v22  ;;  %v4579_v22 = vld [vmem:[%s10535_s7 + $0x18] sm:$0xff] }
 0x30e   :  { %7983 = vmatprep.subr.mxu1 %v3184_v30 }
 0x310   :  { %7949 = vmatmul.mubr.msk.f32.gmra.mrb[12].mxu1 %vm3222_vm4, %v9802_v20 }
 0x311   :  { %7951 = vmatprep.mubr.msk.f32.mxu1 %vm3222_vm4, %v9817_v29 }
 0x314   :  { %7952 = vmatmul.mubr.msk.f32.gmra.mrb[14].mxu1 %vm3222_vm4, %v9820_v31 }
 0x315   :  { %7954 = vmatprep.mubr.msk.f32.mxu1 %vm3222_vm4, %v9835_v54 }
 0x318   :  { %7955 = vmatmul.mubr.msk.f32.gmra.mrb[16].mxu1 %vm3222_vm4, %v9838_v56 }
 0x319   :  { %7957 = vmatprep.mubr.msk.f32.mxu1 %vm3222_vm4, %v9857_v49 }
 0x31c   :  { %7958 = vmatmul.mubr.msk.f32.gmra.mrb[18].mxu1 %vm3222_vm4, %v9861_v53 }
 0x31d   :  { %7960 = vmatprep.mubr.msk.f32.mxu1 %vm3222_vm4, %v3846_v23 }
 0x320   :  { %7961 = vmatmul.mubr.msk.f32.gmra.mrb[20].mxu1 %vm3222_vm4, %v3845_v35 }
 0x321   :  { %7965 = vmatprep.mubr.msk.f32.mxu1 %vm3222_vm4, %v9903_v41 }
 0x324   :  { %7966 = vmatmul.mubr.msk.f32.vlgmr.msra.gmra.mrb[10].mxu1 %vm3222_vm4, %v9912_v37 }
 0x325   :  { %7968 = vmatprep.mubr.msk.f32.mxu1 %vm3222_vm4, %v9918_v57  ;;  %7984 = vmatpush3.msra.mxu1 %v3184_v30  ;;  %v10383_v30 = vld [vmem:[%s10537_s9] sm:$0xff] }
 0x326   :  { %8003 = vmatprep.subr.mxu1 %v3185_v24 }
 0x328   :  { %7969 = vmatmul.mubr.msk.f32.gmra.mrb[12].mxu1 %vm3222_vm4, %v9924_v47 }
 0x329   :  { %7971 = vmatprep.mubr.msk.f32.mxu1 %vm3222_vm4, %v9930_v32 }
 0x32c   :  { %7972 = vmatmul.mubr.msk.f32.gmra.mrb[14].mxu1 %vm3222_vm4, %v9936_v4 }
 0x32d   :  { %7974 = vmatprep.mubr.msk.f32.mxu1 %vm3222_vm4, %v9942_v8 }
 0x330   :  { %7975 = vmatmul.mubr.msk.f32.gmra.mrb[16].mxu1 %vm3222_vm4, %v9948_v13 }
 0x331   :  { %7977 = vmatprep.mubr.msk.f32.mxu1 %vm3222_vm4, %v9954_v18 }
 0x334   :  { %7978 = vmatmul.mubr.msk.f32.gmra.mrb[18].mxu1 %vm3222_vm4, %v9959_v21 }
 0x335   :  { %7980 = vmatprep.mubr.msk.f32.mxu1 %vm3222_vm4, %v3989_v28 }
 0x338   :  { %7981 = vmatmul.mubr.msk.f32.gmra.mrb[20].mxu1 %vm3222_vm4, %v3988_v25 }
 0x339   :  { %7985 = vmatprep.mubr.msk.f32.mxu1 %vm3222_vm4, %v9765_v2  ;;  %v4271_v2 = vrot.slane %v9851_v40, 1 }
 0x33c   :  { %7986 = vmatmul.mubr.msk.f32.vlgmr.msra.gmra.mrb[10].mxu1 %vm3222_vm4, %v9762_v60  ;;  %v8678_v60 = vmov 0.0  }
 0x33d   :  { %7988 = vmatprep.mubr.msk.f32.mxu1 %vm3222_vm4, %v9786_v14  ;;  %8004 = vmatpush3.msra.mxu1 %v3185_v24  ;;  %v4414_v14 = vrot.slane %v9851_v40, 2 }
 0x33e   :  { %8023 = vmatprep.subr.mxu1 %v3186_v34 }
 0x340   :  { %7989 = vmatmul.mubr.msk.f32.gmra.mrb[12].mxu1 %vm3222_vm4, %v9781_v11  ;;  %v4577_v11 = vld [vmem:[%s10535_s7 + $0x8] sm:$0xff] }
 0x341   :  { %7991 = vmatprep.mubr.msk.f32.mxu1 %vm3222_vm4, %v9796_v17  ;;  %v6914_v17 = vld [vmem:[%s10534_s6] ss:$0 sm:$0xff] }
 0x344   :  { %7992 = vmatmul.mubr.msk.f32.gmra.mrb[14].mxu1 %vm3222_vm4, %v9793_v16  ;;  %v4415_v16 = vsel %vm858_vm3, %v3988_v25, %v4414_v14 }
 0x345   :  { %7994 = vmatprep.mubr.msk.f32.mxu1 %vm3222_vm4, %v9814_v27 }
 0x348   :  { %7995 = vmatmul.mubr.msk.f32.gmra.mrb[16].mxu1 %vm3222_vm4, %v9811_v26 }
 0x349   :  { %7997 = vmatprep.mubr.msk.f32.mxu1 %vm3222_vm4, %v9832_v50 }
 0x34c   :  { %7998 = vmatmul.mubr.msk.f32.gmra.mrb[18].mxu1 %vm3222_vm4, %v9829_v48 }
 0x34d   :  { %8000 = vmatprep.mubr.msk.f32.mxu1 %vm3222_vm4, %v9854_v45 }
 0x350   :  { %8001 = vmatmul.mubr.msk.f32.gmra.mrb[20].mxu1 %vm3222_vm4, %v9851_v40 }
 0x351   :  { %8005 = vmatprep.mubr.msk.f32.mxu1 %vm3222_vm4, %v9775_v43  ;;  %v4272_v43 = vsel %vm443_vm2, %v3845_v35, %v4271_v2 }
 0x354   :  { %8006 = vmatmul.mubr.msk.f32.vlgmr.msra.gmra.mrb[10].mxu1 %vm3222_vm4, %v9799_v19 }
 0x355   :  { %8008 = vmatprep.mubr.msk.f32.mxu1 %vm3222_vm4, %v9802_v20  ;;  %8024 = vmatpush3.msra.mxu1 %v3186_v34 }
 0x356   :  { %8043 = vmatprep.subr.mxu1 %v8678_v60 }
 0x358   :  { %8009 = vmatmul.mubr.msk.f32.gmra.mrb[12].mxu1 %vm3222_vm4, %v9817_v29 }
 0x359   :  { %8011 = vmatprep.mubr.msk.f32.mxu1 %vm3222_vm4, %v9820_v31 }
 0x35c   :  { %8012 = vmatmul.mubr.msk.f32.gmra.mrb[14].mxu1 %vm3222_vm4, %v9835_v54 }
 0x35d   :  { %8014 = vmatprep.mubr.msk.f32.mxu1 %vm3222_vm4, %v9838_v56 }
 0x360   :  { %8015 = vmatmul.mubr.msk.f32.gmra.mrb[16].mxu1 %vm3222_vm4, %v9857_v49 }
 0x361   :  { %8017 = vmatprep.mubr.msk.f32.mxu1 %vm3222_vm4, %v9861_v53 }
 0x364   :  { %8018 = vmatmul.mubr.msk.f32.gmra.mrb[18].mxu1 %vm3222_vm4, %v3846_v23 }
 0x365   :  { %8020 = vmatprep.mubr.msk.f32.mxu1 %vm3222_vm4, %v4272_v43 }
 0x368   :  { %8021 = vmatmul.mubr.msk.f32.gmra.mrb[20].mxu1 %vm3222_vm4, %v4271_v2 }
 0x369   :  { %8025 = vmatprep.mubr.msk.f32.mxu1 %vm3222_vm4, %v9912_v37 }
 0x36c   :  { %8026 = vmatmul.mubr.msk.f32.vlgmr.msra.gmra.mrb[10].mxu1 %vm3222_vm4, %v9918_v57 }
 0x36d   :  { %8028 = vmatprep.mubr.msk.f32.mxu1 %vm3222_vm4, %v9924_v47  ;;  %8044 = vmatpush3.msra.mxu1 %v4577_v11 }
 0x36e   :  { %8078 = vmatprep.subr.mxu1 %v8678_v60 }
 0x370   :  { %8029 = vmatmul.mubr.msk.f32.gmra.mrb[12].mxu1 %vm3222_vm4, %v9930_v32 }
 0x371   :  { %8031 = vmatprep.mubr.msk.f32.mxu1 %vm3222_vm4, %v9936_v4 }
 0x374   :  { %8032 = vmatmul.mubr.msk.f32.gmra.mrb[14].mxu1 %vm3222_vm4, %v9942_v8 }
 0x375   :  { %8034 = vmatprep.mubr.msk.f32.mxu1 %vm3222_vm4, %v9948_v13 }
 0x378   :  { %8035 = vmatmul.mubr.msk.f32.gmra.mrb[16].mxu1 %vm3222_vm4, %v9954_v18 }
 0x379   :  { %8037 = vmatprep.mubr.msk.f32.mxu1 %vm3222_vm4, %v9959_v21  ;;  %v4578_v21 = vld [vmem:[%s10535_s7 + $0x10] sm:$0xff] }
 0x37c   :  { %8038 = vmatmul.mubr.msk.f32.gmra.mrb[18].mxu1 %vm3222_vm4, %v3989_v28 }
 0x37d   :  { %8040 = vmatprep.mubr.msk.f32.mxu1 %vm3222_vm4, %v4415_v16 }
 0x380   :  { %8041 = vmatmul.mubr.msk.f32.gmra.mrb[20].mxu1 %vm3222_vm4, %v4414_v14 }
 0x381   :  { %8045 = vmatprep.mubr.msk.f32.mxu1 %vm8679_vm5, %v8678_v60 }
 0x43f   :  { %v8027_v19 = vpop.f32.mrb[10].mxu1 }
 0x440   :  { %v10129_v20 = vadd.f32 %v8027_v19, %v6914_v17  ;;  %v4486_v26 = vpop.f32.mrb[11].mxu1 }
 0x441   :  { %v10131_v27 = vadd.f32 %v6914_v17, %v4486_v26 }
 0x442   :  { %v4592_v29 = vrot.slane %v10129_v20, 1 }
 0x443   :  { %v4591_v31 = vrot.slane %v10131_v27, 1  ;;  %v8030_v39 = vpop.f32.mrb[12].mxu1 }
 0x444   :  { %v4496_v42 = vpop.f32.mrb[13].mxu1  ;;  %v10139_v48 = vadd.f32 %v8030_v39, %v6914_v17 }
 0x445   :  { %v4593_v46 = vsel %vm443_vm2, %v4591_v31, %v4592_v29  ;;  %v10141_v50 = vadd.f32 %v6914_v17, %v4496_v42 }
 0x446   :  { %8046 = vmatmul.mubr.msk.f32.vlgmr.msra.gmra.mrb[22].mxu1 %vm3222_vm4, %v4593_v46  ;;  %v4596_v58 = vrot.slane %v10139_v48, 1 }
 0x447   :  { %v4594_v52 = vrot.slane %v10141_v50, 1  ;;  %v8033_v54 = vpop.f32.mrb[14].mxu1  ;;  %8079 = vmatpush3.msra.mxu1 %v4576_v44  ;;  %8048 = vmatprep.mubr.msk.f32.mxu1 %vm8679_vm5, %v8678_v60 }
 0x448   :  { %v4506_v56 = vpop.f32.mrb[15].mxu1  ;;  %8113 = vmatprep.subr.mxu1 %v8678_v60  ;;  %v10158_v40 = vadd.f32 %v8033_v54, %v6914_v17 }
 0x449   :  { %v10149_v61 = vadd.f32 %v6914_v17, %v4506_v56  ;;  %v10152_v12 = vsel %vm443_vm2, %v4592_v29, %v4594_v52  ;;  %v10162_v49 = vsel %vm443_vm2, %v4594_v52, %v4596_v58 }
 0x44a   :  { %8049 = vmatmul.mubr.msk.f32.gmra.mrb[24].mxu1 %vm3222_vm4, %v10152_v12  ;;  %v4600_v62 = vrot.slane %v10158_v40, 1 }
 0x44b   :  { %v8036_v33 = vpop.f32.mrb[16].mxu1  ;;  %8051 = vmatprep.mubr.msk.f32.mxu1 %vm8679_vm5, %v8678_v60  ;;  %v4598_v45 = vrot.slane %v10149_v61, 1 }
 0x44c   :  { %v4516_v36 = vpop.f32.mrb[17].mxu1  ;;  %v10180_v51 = vadd.f32 %v8036_v33, %v6914_v17 }
 0x44d   :  { %v10169_v0 = vadd.f32 %v6914_v17, %v4516_v36  ;;  %v10172_v55 = vsel %vm443_vm2, %v4596_v58, %v4598_v45  ;;  %v10186_v7 = vsel %vm443_vm2, %v4598_v45, %v4600_v62 }
 0x44e   :  { %8052 = vmatmul.mubr.msk.f32.gmra.mrb[26].mxu1 %vm3222_vm4, %v10162_v49  ;;  %v4604_v47 = vrot.slane %v10180_v51, 1 }
 0x44f   :  { %v8039_v53 = vpop.f32.mrb[18].mxu1  ;;  %8054 = vmatprep.mubr.msk.f32.mxu1 %vm8679_vm5, %v8678_v60  ;;  %v4602_v9 = vrot.slane %v10169_v0, 1 }
 0x450   :  { %v4526_v59 = vpop.f32.mrb[19].mxu1  ;;  %v4573_v4 = vadd.f32 %v8039_v53, %v6914_v17 }
 0x451   :  { %v10195_v63 = vadd.f32 %v6914_v17, %v4526_v59  ;;  %v10198_v32 = vsel %vm443_vm2, %v4600_v62, %v4602_v9  ;;  %v10211_v8 = vsel %vm443_vm2, %v4602_v9, %v4604_v47 }
 0x452   :  { %8055 = vmatmul.mubr.msk.f32.gmra.mrb[28].mxu1 %vm3222_vm4, %v10172_v55  ;;  %v4608_v10 = vrot.slane %v4573_v4, 1 }
 0x453   :  { %v8042_v38 = vpop.f32.mrb[20].mxu1  ;;  %8057 = vmatprep.mubr.msk.f32.mxu1 %vm8679_vm5, %v8678_v60  ;;  %v4606_v6 = vrot.slane %v10195_v63, 1 }
 0x454   :  { %v10178_v5 = vadd.f32 %v8042_v38, %v6914_v17  ;;  %v4536_v41 = vpop.f32.mrb[21].mxu1 }
 0x455   :  { %v10183_v37 = vadd.f32 %v6914_v17, %v4536_v41  ;;  %v10218_v13 = vsel %vm443_vm2, %v4604_v47, %v4606_v6  ;;  %v10225_v15 = vsel %vm443_vm2, %v4606_v6, %v4608_v10 }
 0x456   :  { %v5010_v57 = vrot.slane %v10178_v5, 1  ;;  %8058 = vmatmul.mubr.msk.f32.gmra.mrb[30].mxu1 %vm3222_vm4, %v10186_v7 }
 0x457   :  { %v4610_v3 = vrot.slane %v10183_v37, 1  ;;  %8060 = vmatprep.mubr.msk.f32.mxu1 %vm8679_vm5, %v8678_v60 }
 0x459   :  { %v10203_v1 = vsel %vm443_vm2, %v4610_v3, %v5010_v57  ;;  %v10232_v18 = vsel %vm443_vm2, %v4608_v10, %v4610_v3 }
 0x45a   :  { %8061 = vmatmul.mubr.msk.f32.gmra.mrb[32].mxu1 %vm3222_vm4, %v10198_v32 }
 0x45b   :  { %8063 = vmatprep.mubr.msk.f32.mxu1 %vm8679_vm5, %v8678_v60 }
 0x45e   :  { %8064 = vmatmul.mubr.msk.f32.gmra.mrb[34].mxu1 %vm3222_vm4, %v10211_v8 }
 0x45f   :  { %8066 = vmatprep.mubr.msk.f32.mxu1 %vm8679_vm5, %v8678_v60 }
 0x462   :  { %8067 = vmatmul.mubr.msk.f32.gmra.mrb[36].mxu1 %vm3222_vm4, %v10218_v13 }
 0x463   :  { %8069 = vmatprep.mubr.msk.f32.mxu1 %vm8679_vm5, %v8678_v60 }
 0x466   :  { %8070 = vmatmul.mubr.msk.f32.gmra.mrb[38].mxu1 %vm3222_vm4, %v10225_v15 }
 0x467   :  { %8072 = vmatprep.mubr.msk.f32.mxu1 %vm8679_vm5, %v8678_v60 }
 0x46a   :  { %8073 = vmatmul.mubr.msk.f32.gmra.mrb[40].mxu1 %vm3222_vm4, %v10232_v18 }
 0x46b   :  { %8075 = vmatprep.mubr.msk.f32.mxu1 %vm8679_vm5, %v8678_v60 }
 0x46e   :  { %8076 = vmatmul.mubr.msk.f32.gmra.mrb[42].mxu1 %vm3222_vm4, %v4610_v3 }
 0x46f   :  { %8080 = vmatprep.mubr.msk.f32.mxu1 %vm8679_vm5, %v8678_v60 }
 0x472   :  { %8081 = vmatmul.mubr.msk.f32.vlgmr.msra.gmra.mrb[44].mxu1 %vm3222_vm4, %v10131_v27 }
 0x473   :  { %8114 = vmatpush3.msra.mxu1 %v4578_v21  ;;  %8083 = vmatprep.mubr.msk.f32.mxu1 %vm8679_vm5, %v8678_v60 }
 0x474   :  { %8148 = vmatprep.subr.mxu1 %v8678_v60 }
 0x476   :  { %8084 = vmatmul.mubr.msk.f32.gmra.mrb[46].mxu1 %vm3222_vm4, %v10129_v20 }
 0x477   :  { %8086 = vmatprep.mubr.msk.f32.mxu1 %vm8679_vm5, %v8678_v60 }
 0x47a   :  { %8087 = vmatmul.mubr.msk.f32.gmra.mrb[48].mxu1 %vm3222_vm4, %v10141_v50 }
 0x47b   :  { %8089 = vmatprep.mubr.msk.f32.mxu1 %vm8679_vm5, %v8678_v60 }
 0x47e   :  { %8090 = vmatmul.mubr.msk.f32.gmra.mrb[50].mxu1 %vm3222_vm4, %v10139_v48 }
 0x47f   :  { %8092 = vmatprep.mubr.msk.f32.mxu1 %vm8679_vm5, %v8678_v60 }
 0x482   :  { %8093 = vmatmul.mubr.msk.f32.gmra.mrb[52].mxu1 %vm3222_vm4, %v10149_v61 }
 0x483   :  { %8095 = vmatprep.mubr.msk.f32.mxu1 %vm8679_vm5, %v8678_v60 }
 0x486   :  { %8096 = vmatmul.mubr.msk.f32.gmra.mrb[54].mxu1 %vm3222_vm4, %v10158_v40 }
 0x487   :  { %8098 = vmatprep.mubr.msk.f32.mxu1 %vm8679_vm5, %v8678_v60 }
 0x48a   :  { %8099 = vmatmul.mubr.msk.f32.gmra.mrb[56].mxu1 %vm3222_vm4, %v10169_v0 }
 0x48b   :  { %8101 = vmatprep.mubr.msk.f32.mxu1 %vm8679_vm5, %v8678_v60 }
 0x48e   :  { %8102 = vmatmul.mubr.msk.f32.gmra.mrb[58].mxu1 %vm3222_vm4, %v10180_v51 }
 0x48f   :  { %8104 = vmatprep.mubr.msk.f32.mxu1 %vm8679_vm5, %v8678_v60 }
 0x492   :  { %8105 = vmatmul.mubr.msk.f32.gmra.mrb[60].mxu1 %vm3222_vm4, %v10195_v63 }
 0x493   :  { %8107 = vmatprep.mubr.msk.f32.mxu1 %vm8679_vm5, %v8678_v60 }
 0x496   :  { %8108 = vmatmul.mubr.msk.f32.gmra.mrb[62].mxu1 %vm3222_vm4, %v4573_v4 }
 0x497   :  { %8110 = vmatprep.mubr.msk.f32.mxu1 %vm8679_vm5, %v8678_v60 }
 0x49a   :  { %8111 = vmatmul.mubr.msk.f32.gmra.mrb[64].mxu1 %vm3222_vm4, %v10183_v37 }
 0x49b   :  { %8115 = vmatprep.mubr.msk.f32.mxu1 %vm8679_vm5, %v8678_v60 }
 0x49e   :  { %8116 = vmatmul.mubr.msk.f32.vlgmr.msra.gmra.mrb[66].mxu1 %vm3222_vm4, %v10129_v20 }
 0x49f   :  { %8149 = vmatpush3.msra.mxu1 %v4579_v22  ;;  %8118 = vmatprep.mubr.msk.f32.mxu1 %vm8679_vm5, %v8678_v60 }
 0x4a0   :  { %8183 = vmatprep.subr.mxu1 %v8678_v60 }
 0x4a2   :  { %8119 = vmatmul.mubr.msk.f32.gmra.mrb[68].mxu1 %vm3222_vm4, %v10141_v50 }
 0x4a3   :  { %8121 = vmatprep.mubr.msk.f32.mxu1 %vm8679_vm5, %v8678_v60 }
 0x4a6   :  { %8122 = vmatmul.mubr.msk.f32.gmra.mrb[70].mxu1 %vm3222_vm4, %v10139_v48 }
 0x4a7   :  { %8124 = vmatprep.mubr.msk.f32.mxu1 %vm8679_vm5, %v8678_v60 }
 0x4aa   :  { %8125 = vmatmul.mubr.msk.f32.gmra.mrb[72].mxu1 %vm3222_vm4, %v10149_v61 }
 0x4ab   :  { %8127 = vmatprep.mubr.msk.f32.mxu1 %vm8679_vm5, %v8678_v60 }
 0x4ae   :  { %8128 = vmatmul.mubr.msk.f32.gmra.mrb[74].mxu1 %vm3222_vm4, %v10158_v40 }
 0x4af   :  { %8130 = vmatprep.mubr.msk.f32.mxu1 %vm8679_vm5, %v8678_v60 }
 0x4b2   :  { %8131 = vmatmul.mubr.msk.f32.gmra.mrb[76].mxu1 %vm3222_vm4, %v10169_v0 }
 0x4b3   :  { %8133 = vmatprep.mubr.msk.f32.mxu1 %vm8679_vm5, %v8678_v60 }
 0x4b6   :  { %8134 = vmatmul.mubr.msk.f32.gmra.mrb[78].mxu1 %vm3222_vm4, %v10180_v51 }
 0x4b7   :  { %8136 = vmatprep.mubr.msk.f32.mxu1 %vm8679_vm5, %v8678_v60 }
 0x4ba   :  { %8137 = vmatmul.mubr.msk.f32.gmra.mrb[80].mxu1 %vm3222_vm4, %v10195_v63 }
 0x4bb   :  { %8139 = vmatprep.mubr.msk.f32.mxu1 %vm8679_vm5, %v8678_v60 }
 0x4be   :  { %8140 = vmatmul.mubr.msk.f32.gmra.mrb[82].mxu1 %vm3222_vm4, %v4573_v4 }
 0x4bf   :  { %8142 = vmatprep.mubr.msk.f32.mxu1 %vm8679_vm5, %v8678_v60 }
 0x4c2   :  { %8143 = vmatmul.mubr.msk.f32.gmra.mrb[84].mxu1 %vm3222_vm4, %v10183_v37 }
 0x4c3   :  { %8145 = vmatprep.mubr.msk.f32.mxu1 %vm8679_vm5, %v8678_v60 }
 0x4c6   :  { %8146 = vmatmul.mubr.msk.f32.gmra.mrb[86].mxu1 %vm3222_vm4, %v10178_v5 }
 0x4c7   :  { %8150 = vmatprep.mubr.msk.f32.mxu1 %vm8679_vm5, %v8678_v60 }
 0x4ca   :  { %8151 = vmatmul.mubr.msk.f32.vlgmr.msra.gmra.mrb[88].mxu1 %vm3222_vm4, %v10152_v12 }
 0x4cb   :  { %8153 = vmatprep.mubr.msk.f32.mxu1 %vm8679_vm5, %v8678_v60  ;;  %8184 = vmatpush3.msra.mxu1 %v10383_v30 }
 0x4cc   :  { %8188 = vmatprep.subr.mxu1 %v8678_v60 }
 0x4ce   :  { %8154 = vmatmul.mubr.msk.f32.gmra.mrb[90].mxu1 %vm3222_vm4, %v10162_v49 }
 0x4cf   :  { %8156 = vmatprep.mubr.msk.f32.mxu1 %vm8679_vm5, %v8678_v60 }
 0x4d2   :  { %8157 = vmatmul.mubr.msk.f32.gmra.mrb[92].mxu1 %vm3222_vm4, %v10172_v55 }
 0x4d3   :  { %8159 = vmatprep.mubr.msk.f32.mxu1 %vm8679_vm5, %v8678_v60 }
 0x4d6   :  { %8160 = vmatmul.mubr.msk.f32.gmra.mrb[94].mxu1 %vm3222_vm4, %v10186_v7 }
 0x4d7   :  { %8162 = vmatprep.mubr.msk.f32.mxu1 %vm8679_vm5, %v8678_v60 }
 0x4da   :  { %8163 = vmatmul.mubr.msk.f32.gmra.mrb[96].mxu1 %vm3222_vm4, %v10198_v32 }
 0x4db   :  { %8165 = vmatprep.mubr.msk.f32.mxu1 %vm8679_vm5, %v8678_v60 }
 0x4de   :  { %8166 = vmatmul.mubr.msk.f32.gmra.mrb[98].mxu1 %vm3222_vm4, %v10211_v8 }
 0x4df   :  { %8168 = vmatprep.mubr.msk.f32.mxu1 %vm8679_vm5, %v8678_v60 }
 0x4e2   :  { %8169 = vmatmul.mubr.msk.f32.gmra.mrb[100].mxu1 %vm3222_vm4, %v10218_v13 }
 0x4e3   :  { %8171 = vmatprep.mubr.msk.f32.mxu1 %vm8679_vm5, %v8678_v60 }
 0x4e6   :  { %8172 = vmatmul.mubr.msk.f32.gmra.mrb[102].mxu1 %vm3222_vm4, %v10225_v15 }
 0x4e7   :  { %8174 = vmatprep.mubr.msk.f32.mxu1 %vm8679_vm5, %v8678_v60 }
 0x4ea   :  { %8175 = vmatmul.mubr.msk.f32.gmra.mrb[104].mxu1 %vm3222_vm4, %v10232_v18 }
 0x4eb   :  { %8177 = vmatprep.mubr.msk.f32.mxu1 %vm8679_vm5, %v8678_v60 }
 0x4ee   :  { %8178 = vmatmul.mubr.msk.f32.gmra.mrb[106].mxu1 %vm3222_vm4, %v10203_v1 }
 0x4ef   :  { %8180 = vmatprep.mubr.msk.f32.mxu1 %vm8679_vm5, %v8678_v60 }
 0x4f2   :  { %8181 = vmatmul.mubr.msk.f32.gmra.mrb[108].mxu1 %vm3222_vm4, %v5010_v57 }
 0x4f3   :  { %8185 = vmatprep.mubr.msk.f32.mxu1 %vm8679_vm5, %v8678_v60 }
 0x519   :  { %v4700_v35 = vpop.f32.mrb[22].mxu1 }
 0x51a   :  { %v8047_v23 = vpop.f32.mrb[23].mxu1 }
 0x51d   :  { %v4705_v24 = vpop.f32.mrb[24].mxu1 }
 0x51e   :  { %v8050_v25 = vpop.f32.mrb[25].mxu1 }
 0x521   :  { %v4710_v28 = vpop.f32.mrb[26].mxu1 }
 0x522   :  { %v8053_v34 = vpop.f32.mrb[27].mxu1 }
 0x525   :  { %v4715_v2 = vpop.f32.mrb[28].mxu1 }
 0x526   :  { %v8056_v43 = vpop.f32.mrb[29].mxu1 }
 0x529   :  { %v4719_v11 = vpop.f32.mrb[30].mxu1 }
 0x52a   :  { %v8059_v14 = vpop.f32.mrb[31].mxu1 }
 0x52d   :  { %v4723_v16 = vpop.f32.mrb[32].mxu1 }
 0x52e   :  { %v8062_v17 = vpop.f32.mrb[33].mxu1 }
 0x531   :  { %v4727_v19 = vpop.f32.mrb[34].mxu1 }
 0x532   :  { %v8065_v20 = vpop.f32.mrb[35].mxu1 }
 0x535   :  { %v4731_v26 = vpop.f32.mrb[36].mxu1 }
 0x536   :  { %v8068_v27 = vpop.f32.mrb[37].mxu1 }
 0x539   :  { %v4735_v29 = vpop.f32.mrb[38].mxu1 }
 0x53a   :  { %v8071_v31 = vpop.f32.mrb[39].mxu1 }
 0x53b   :  { %v10390_v31 = vld [vmem:[%s10536_s8] ss:$0 sm:$0xff] }
 0x53d   :  { %v4740_v39 = vpop.f32.mrb[40].mxu1 }
 0x53e   :  { %v8074_v42 = vpop.f32.mrb[41].mxu1 }
 0x541   :  { %v4745_v44 = vpop.f32.mrb[42].mxu1 }
 0x542   :  { %v8077_v46 = vpop.f32.mrb[43].mxu1 }
 0x543   :  { %v10396_v46 = vld [vmem:[%s10537_s9 + $0x8] sm:$0xff] }
 0x545   :  { %v4837_v48 = vpop.f32.mrb[44].mxu1 }
 0x546   :  { %v4838_v50 = vadd.f32 %v4837_v48, %v4700_v35  ;;  %v8082_v52 = vpop.f32.mrb[45].mxu1 }
 0x549   :  { %v4842_v54 = vpop.f32.mrb[46].mxu1 }
 0x54a   :  { %v4843_v56 = vadd.f32 %v4842_v54, %v4705_v24  ;;  %v8085_v58 = vpop.f32.mrb[47].mxu1 }
 0x54d   :  { %v4847_v61 = vpop.f32.mrb[48].mxu1 }
 0x54e   :  { %v4848_v12 = vadd.f32 %v4847_v61, %v4710_v28  ;;  %v8088_v33 = vpop.f32.mrb[49].mxu1 }
 0x551   :  { %v4852_v36 = vpop.f32.mrb[50].mxu1 }
 0x552   :  { %v8091_v40 = vpop.f32.mrb[51].mxu1 }
 0x555   :  { %v4856_v45 = vpop.f32.mrb[52].mxu1 }
 0x556   :  { %v8094_v49 = vpop.f32.mrb[53].mxu1 }
 0x559   :  { %v4860_v53 = vpop.f32.mrb[54].mxu1 }
 0x55a   :  { %v8097_v59 = vpop.f32.mrb[55].mxu1  ;;  %v10416_v53 = vld [vmem:[%s10537_s9 + $0x18] sm:$0xff] }
 0x55d   :  { %v4864_v62 = vpop.f32.mrb[56].mxu1 }
 0x55e   :  { %v8100_v0 = vpop.f32.mrb[57].mxu1 }
 0x561   :  { %v4868_v55 = vpop.f32.mrb[58].mxu1 }
 0x562   :  { %v8103_v38 = vpop.f32.mrb[59].mxu1 }
 0x565   :  { %v4872_v5 = vpop.f32.mrb[60].mxu1 }
 0x566   :  { %v4873_v41 = vadd.f32 %v4872_v5, %v4735_v29  ;;  %v8106_v51 = vpop.f32.mrb[61].mxu1  ;;  %v10427_v5 = vld [vmem:[%s10537_s9 + $0x20] sm:$0xff] }
 0x569   :  { %v4877_v9 = vpop.f32.mrb[62].mxu1 }
 0x56a   :  { %v4878_v37 = vadd.f32 %v4877_v9, %v4740_v39  ;;  %v8109_v7 = vpop.f32.mrb[63].mxu1 }
 0x56d   :  { %v4882_v57 = vpop.f32.mrb[64].mxu1 }
 0x56e   :  { %v4883_v3 = vadd.f32 %v4882_v57, %v4745_v44  ;;  %v8112_v47 = vpop.f32.mrb[65].mxu1 }
 0x56f   :  { %v5155_v47 = vld [vmem:[%s10537_s9 + $0x28] sm:$0xff] }
 0x571   :  { %v4955_v63 = vpop.f32.mrb[66].mxu1 }
 0x572   :  { %v5004_v32 = vadd.f32 %v4955_v63, %v4838_v50  ;;  %v8117_v1 = vpop.f32.mrb[67].mxu1 }
 0x575   :  { %v4960_v4 = vpop.f32.mrb[68].mxu1 }
 0x576   :  { %v5005_v6 = vadd.f32 %v4960_v4, %v4843_v56  ;;  %v8120_v8 = vpop.f32.mrb[69].mxu1 }
 0x579   :  { %v4965_v10 = vpop.f32.mrb[70].mxu1 }
 0x57a   :  { %v5006_v13 = vadd.f32 %v4965_v10, %v4848_v12  ;;  %v8123_v15 = vpop.f32.mrb[71].mxu1  ;;  %v10406_v12 = vld [vmem:[%s10537_s9 + $0x10] sm:$0xff] }
 0x57d   :  { %v4970_v18 = vpop.f32.mrb[72].mxu1 }
 0x57e   :  { %v8126_v21 = vpop.f32.mrb[73].mxu1  ;;  %v5156_v18 = vld [vmem:[%s10537_s9 + $0x30] sm:$0xff] }
 0x581   :  { %v4974_v22 = vpop.f32.mrb[74].mxu1 }
 0x582   :  { %v8129_v35 = vpop.f32.mrb[75].mxu1  ;;  %v5157_v22 = vld [vmem:[%s10537_s9 + $0x38] sm:$0xff] }
 0x585   :  { %v4978_v23 = vpop.f32.mrb[76].mxu1 }
 0x586   :  { %v8132_v24 = vpop.f32.mrb[77].mxu1  ;;  %v5158_v23 = vld [vmem:[%s10537_s9 + $0x40] sm:$0xff] }
 0x589   :  { %v4982_v25 = vpop.f32.mrb[78].mxu1 }
 0x58a   :  { %v8135_v28 = vpop.f32.mrb[79].mxu1 }
 0x58d   :  { %v4986_v34 = vpop.f32.mrb[80].mxu1 }
 0x58e   :  { %v8138_v2 = vpop.f32.mrb[81].mxu1 }
 0x591   :  { %v4990_v43 = vpop.f32.mrb[82].mxu1 }
 0x592   :  { %v5007_v11 = vadd.f32 %v4990_v43, %v4873_v41  ;;  %v8141_v14 = vpop.f32.mrb[83].mxu1 }
 0x595   :  { %v4995_v16 = vpop.f32.mrb[84].mxu1 }
 0x596   :  { %v5008_v17 = vadd.f32 %v4995_v16, %v4878_v37  ;;  %v8144_v19 = vpop.f32.mrb[85].mxu1 }
 0x599   :  { %v5000_v20 = vpop.f32.mrb[86].mxu1 }
 0x59a   :  { %v5009_v26 = vadd.f32 %v5000_v20, %v4883_v3  ;;  %v8147_v27 = vpop.f32.mrb[87].mxu1 }
 0x59d   :  { %v5082_v29 = vpop.f32.mrb[88].mxu1 }
 0x59e   :  { %v5131_v39 = vadd.f32 %v5082_v29, %v5004_v32  ;;  %v8152_v42 = vpop.f32.mrb[89].mxu1 }
 0x5a0   :  { %v5144_v44 = vadd.f32 %v10390_v31, %v5131_v39 }
 0x5a1   :  { %v5087_v48 = vpop.f32.mrb[90].mxu1 }
 0x5a2   :  { %v5132_v50 = vadd.f32 %v5087_v48, %v5005_v6  ;;  %v8155_v52 = vpop.f32.mrb[91].mxu1  ;;  %8186 = vmatmul.mubr.msk.f32.vlgmr.msra.gmra.mrb[110].mxu1 %vm3222_vm4, %v5144_v44  ;;  %v5234_v61 = vrot.slane %v5144_v44, 1  ;;  %v5308_v49 = vrot.slane %v5144_v44, 2 }
 0x5a3   :  { %8189 = vmatpush3.msra.mxu1 %v10396_v46  ;;  %8190 = vmatprep.mubr.msk.f32.mxu1 %vm8679_vm5, %v8678_v60 }
 0x5a4   :  { %8193 = vmatprep.subr.mxu1 %v8678_v60  ;;  %v5145_v38 = vadd.f32 %v10390_v31, %v5132_v50 }
 0x5a5   :  { %v5092_v54 = vpop.f32.mrb[92].mxu1 }
 0x5a6   :  { %v5133_v56 = vadd.f32 %v5092_v54, %v5006_v13  ;;  %v8158_v58 = vpop.f32.mrb[93].mxu1  ;;  %v5456_v57 = vrot.slane %v5145_v38, 1  ;;  %v5530_v13 = vrot.slane %v5145_v38, 2 }
 0x5a8   :  { %v5146_v21 = vadd.f32 %v10390_v31, %v5133_v56 }
 0x5a9   :  { %v5097_v33 = vpop.f32.mrb[94].mxu1 }
 0x5aa   :  { %v8161_v36 = vpop.f32.mrb[95].mxu1  ;;  %8191 = vmatmul.mubr.msk.f32.vlgmr.msra.gmra.mrb[110].mxu1 %vm3222_vm4, %v5234_v61  ;;  %v5678_v35 = vrot.slane %v5146_v21, 1  ;;  %v5752_v24 = vrot.slane %v5146_v21, 2 }
 0x5ab   :  { %8194 = vmatpush3.msra.mxu1 %v10406_v12  ;;  %8195 = vmatprep.mubr.msk.f32.mxu1 %vm8679_vm5, %v8678_v60 }
 0x5ac   :  { %8198 = vmatprep.subr.mxu1 %v8678_v60 }
 0x5ad   :  { %v5101_v40 = vpop.f32.mrb[96].mxu1 }
 0x5ae   :  { %v8164_v45 = vpop.f32.mrb[97].mxu1 }
 0x5b1   :  { %v5105_v59 = vpop.f32.mrb[98].mxu1 }
 0x5b2   :  { %v8167_v62 = vpop.f32.mrb[99].mxu1  ;;  %8196 = vmatmul.mubr.msk.f32.vlgmr.msra.gmra.mrb[110].mxu1 %vm3222_vm4, %v5308_v49 }
 0x5b3   :  { %8199 = vmatpush3.msra.mxu1 %v10416_v53  ;;  %8200 = vmatprep.mubr.msk.f32.mxu1 %vm8679_vm5, %v8678_v60 }
 0x5b4   :  { %8203 = vmatprep.subr.mxu1 %v8678_v60 }
 0x5b5   :  { %v5109_v0 = vpop.f32.mrb[100].mxu1 }
 0x5b6   :  { %v8170_v55 = vpop.f32.mrb[101].mxu1 }
 0x5b9   :  { %v5113_v41 = vpop.f32.mrb[102].mxu1 }
 0x5ba   :  { %v8173_v51 = vpop.f32.mrb[103].mxu1  ;;  %8201 = vmatmul.mubr.msk.f32.vlgmr.msra.gmra.mrb[110].mxu1 %vm3222_vm4, %v5145_v38 }
 0x5bb   :  { %8204 = vmatpush3.msra.mxu1 %v10427_v5  ;;  %8205 = vmatprep.mubr.msk.f32.mxu1 %vm8679_vm5, %v8678_v60 }
 0x5bc   :  { %8208 = vmatprep.subr.mxu1 %v8678_v60 }
 0x5bd   :  { %v5117_v9 = vpop.f32.mrb[104].mxu1 }
 0x5be   :  { %v5134_v37 = vadd.f32 %v5117_v9, %v5007_v11  ;;  %v8176_v7 = vpop.f32.mrb[105].mxu1  ;;  %v5159_v11 = vld [vmem:[%s10538_s10] sm:$0x1]  ;;  %s8680_s10 = smov [#allocation2]  }
 0x5bf   :  { %s6527_s22 = sshll.u32 %s8680_s10, 4  ;;  %s6528_s22 = int_to_ptr.vmem [resolvable:$true] %s6527_s22 }
 0x5c0   :  { %v5147_v3 = vadd.f32 %v10390_v31, %v5134_v37  ;;  %s8654_s23 = scalar_lea.vmem %s6528_s22, 32  ;;  %p8659_p1 = scmp.lt.s32.totalorder %s6528_s22, %s6528_s22 }
 0x5c1   :  { %v5122_v63 = vpop.f32.mrb[106].mxu1  ;;  %p8655_p0 = scmp.ne.s32.totalorder %s6528_s22, %s8654_s23  ;;  %p8660_p2 = scmp.lt.s32.totalorder %s8654_s23, %s8654_s23 }
 0x5c2   :  { %v5135_v32 = vadd.f32 %v5122_v63, %v5008_v17  ;;  %v8179_v1 = vpop.f32.mrb[107].mxu1  ;;  %8206 = vmatmul.mubr.msk.f32.vlgmr.msra.gmra.mrb[110].mxu1 %vm3222_vm4, %v5456_v57  ;;  %v5915_v25 = vrot.slane %v5147_v3, 1 }
 0x5c3   :  { %8209 = vmatpush3.msra.mxu1 %v5155_v47  ;;  %8210 = vmatprep.mubr.msk.f32.mxu1 %vm8679_vm5, %v8678_v60  ;;  %p8661_p3 = por %p8660_p2, %p8659_p1 }
 0x5c4   :  { %v5148_v4 = vadd.f32 %v10390_v31, %v5135_v32  ;;  %8213 = vmatprep.subr.mxu1 %v8678_v60 }
 0x5c5   :  { %v5127_v6 = vpop.f32.mrb[108].mxu1  ;;  %p8662_p4 = pnand %p8661_p3, %p8655_p0 }
 0x5c6   :  { %v5136_v8 = vadd.f32 %v5127_v6, %v5009_v26  ;;  %v8182_v10 = vpop.f32.mrb[109].mxu1  ;;  %v6137_v28 = vrot.slane %v5148_v4, 1  ;;  %v6211_v34 = vrot.slane %v5148_v4, 2 }
 0x5c8   :  { %v5149_v15 = vadd.f32 %v10390_v31, %v5136_v8 }
 0x5ca   :  { %8211 = vmatmul.mubr.msk.f32.vlgmr.msra.gmra.mrb[110].mxu1 %vm3222_vm4, %v5530_v13  ;;  %v6359_v2 = vrot.slane %v5149_v15, 1  ;;  %v6433_v43 = vrot.slane %v5149_v15, 2 }
 0x5cb   :  { %8214 = vmatpush3.msra.mxu1 %v5156_v18  ;;  %8215 = vmatprep.mubr.msk.f32.mxu1 %vm8679_vm5, %v8678_v60 }
 0x5cc   :  { %8218 = vmatprep.subr.mxu1 %v8678_v60 }
 0x5d2   :  { %8216 = vmatmul.mubr.msk.f32.vlgmr.msra.gmra.mrb[110].mxu1 %vm3222_vm4, %v5146_v21 }
 0x5d3   :  { %8219 = vmatpush3.msra.mxu1 %v5157_v22  ;;  %8220 = vmatprep.mubr.msk.f32.mxu1 %vm8679_vm5, %v8678_v60 }
 0x5d4   :  { %8223 = vmatprep.subr.mxu1 %v8678_v60 }
 0x5da   :  { %8221 = vmatmul.mubr.msk.f32.vlgmr.msra.gmra.mrb[110].mxu1 %vm3222_vm4, %v5678_v35 }
 0x5db   :  { %8224 = vmatpush3.msra.mxu1 %v5158_v23  ;;  %8225 = vmatprep.mubr.msk.f32.mxu1 %vm8679_vm5, %v8678_v60 }
 0x5dc   :  { %8228 = vmatprep.subr.mxu1 %v8678_v60 }
 0x5e2   :  { %8226 = vmatmul.mubr.msk.f32.vlgmr.msra.gmra.mrb[110].mxu1 %vm3222_vm4, %v5752_v24 }
 0x5e3   :  { %8229 = vmatpush3.msra.mxu1 %v10383_v30  ;;  %8230 = vmatprep.mubr.msk.f32.mxu1 %vm8679_vm5, %v8678_v60  ;;  %v5989_v30 = vrot.slane %v5147_v3, 2 }
 0x5e4   :  { %8233 = vmatprep.subr.mxu1 %v8678_v60 }
 0x5e6   :  { %8231 = vmatmul.mubr.msk.f32.vlgmr.msra.gmra.mrb[112].mxu1 %vm3222_vm4, %v5147_v3 }
 0x5e7   :  { %8234 = vmatpush3.msra.mxu1 %v10396_v46  ;;  %8235 = vmatprep.mubr.msk.f32.mxu1 %vm8679_vm5, %v8678_v60 }
 0x5e8   :  { %8238 = vmatprep.subr.mxu1 %v8678_v60 }
 0x5ee   :  { %8236 = vmatmul.mubr.msk.f32.vlgmr.msra.gmra.mrb[112].mxu1 %vm3222_vm4, %v5915_v25 }
 0x5ef   :  { %8239 = vmatpush3.msra.mxu1 %v10406_v12  ;;  %8240 = vmatprep.mubr.msk.f32.mxu1 %vm8679_vm5, %v8678_v60 }
 0x5f0   :  { %8243 = vmatprep.subr.mxu1 %v8678_v60 }
 0x5f6   :  { %8241 = vmatmul.mubr.msk.f32.vlgmr.msra.gmra.mrb[112].mxu1 %vm3222_vm4, %v5989_v30 }
 0x5f7   :  { %8244 = vmatpush3.msra.mxu1 %v10416_v53  ;;  %8245 = vmatprep.mubr.msk.f32.mxu1 %vm8679_vm5, %v8678_v60 }
 0x5f8   :  { %8248 = vmatprep.subr.mxu1 %v8678_v60 }
 0x5fe   :  { %8246 = vmatmul.mubr.msk.f32.vlgmr.msra.gmra.mrb[112].mxu1 %vm3222_vm4, %v5148_v4 }
 0x5ff   :  { %8249 = vmatpush3.msra.mxu1 %v10427_v5  ;;  %8250 = vmatprep.mubr.msk.f32.mxu1 %vm8679_vm5, %v8678_v60 }
 0x600   :  { %8253 = vmatprep.subr.mxu1 %v8678_v60 }
 0x606   :  { %8251 = vmatmul.mubr.msk.f32.vlgmr.msra.gmra.mrb[112].mxu1 %vm3222_vm4, %v6137_v28 }
 0x607   :  { %8254 = vmatpush3.msra.mxu1 %v5155_v47  ;;  %8255 = vmatprep.mubr.msk.f32.mxu1 %vm8679_vm5, %v8678_v60 }
 0x608   :  { %8258 = vmatprep.subr.mxu1 %v8678_v60 }
 0x60e   :  { %8256 = vmatmul.mubr.msk.f32.vlgmr.msra.gmra.mrb[112].mxu1 %vm3222_vm4, %v6211_v34 }
 0x60f   :  { %8259 = vmatpush3.msra.mxu1 %v5156_v18  ;;  %8260 = vmatprep.mubr.msk.f32.mxu1 %vm8679_vm5, %v8678_v60 }
 0x610   :  { %8263 = vmatprep.subr.mxu1 %v8678_v60 }
 0x616   :  { %8261 = vmatmul.mubr.msk.f32.vlgmr.msra.gmra.mrb[112].mxu1 %vm3222_vm4, %v5149_v15 }
 0x617   :  { %8264 = vmatpush3.msra.mxu1 %v5157_v22  ;;  %8265 = vmatprep.mubr.msk.f32.mxu1 %vm8679_vm5, %v8678_v60 }
 0x618   :  { %8268 = vmatprep.subr.mxu1 %v8678_v60 }
 0x61e   :  { %8266 = vmatmul.mubr.msk.f32.vlgmr.msra.gmra.mrb[112].mxu1 %vm3222_vm4, %v6359_v2 }
 0x61f   :  { %8269 = vmatpush3.msra.mxu1 %v5158_v23  ;;  %8270 = vmatprep.mubr.msk.f32.mxu1 %vm8679_vm5, %v8678_v60 }
 0x626   :  { %8271 = vmatmul.mubr.msk.f32.vlgmr.msra.gmra.mrb[112].mxu1 %vm3222_vm4, %v6433_v43 }
 0x6b5   :  { %v5821_v14 = vpop.f32.mrb[110].mxu1 }
 0x6b6   :  { %v8285_v16 = vadd.f32 %v5821_v14, %v5159_v11  ;;  %v8227_v17 = vpop.f32.mrb[111].mxu1 }
 0x6b8   :  { %v5827_v19 = vsel %vm5826_vm6, %v8285_v16, -inf }
 0x6b9   :  { %5828 = vmax.xlane.f32.xlu0 %v5827_v19 }
 0x6f9   :  { %v6502_v20 = vpop.f32.mrb[112].mxu1 }
 0x6fa   :  { %v8286_v26 = vadd.f32 %v6502_v20, %v5159_v11  ;;  %v8272_v27 = vpop.f32.mrb[113].mxu1 }
 0x6fc   :  { %v6507_v29 = vsel %vm5826_vm6, %v8286_v26, -inf }
 0x6fd   :  { %6508 = vmax.xlane.f32.xlu0 %v6507_v29 }
 0x746   :  { %v5829_v60 = vpop.xlane.xlu0 %5828 }
 0x747   :  { %v5830_v31 = vsub.f32 %v8285_v16, %v5829_v60 }
 0x749   :  { %v5831_v39 = vmul.f32 1.442695, %v5830_v31 }
 0x74b   :  { %8646 = vpow2.f32 %v5831_v39 }
 0x755   :  { %v8647_v42 = vpop.eup %8646 }
 0x756   :  { %v5833_v44 = vsel %vm5826_vm6, %v8647_v42, 0.0 }
 0x757   :  { %5834 = vadd.xlane.f32.xlu1 %v5833_v44 }
 0x78a   :  { %v6509_v46 = vpop.xlane.xlu0 %6508 }
 0x78b   :  { %v6510_v48 = vsub.f32 %v8286_v26, %v6509_v46 }
 0x78d   :  { %v6511_v50 = vmul.f32 1.442695, %v6510_v48 }
 0x78f   :  { %8648 = vpow2.f32 %v6511_v50 }
 0x799   :  { %v8649_v52 = vpop.eup %8648 }
 0x79a   :  { %v6513_v54 = vsel %vm5826_vm6, %v8649_v52, 0.0 }
 0x79b   :  { %6514 = vadd.xlane.f32.xlu1 %v6513_v54 }
 0x7e4   :  { %v5835_v56 = vpop.xlane.xlu1 %5834 }
 0x7e5   :  { %8650 = vlog2.f32 %v5835_v56 }
 0x7ef   :  { %v8651_v58 = vpop.eup %8650 }
 0x7f0   :  { %v5837_v61 = vmul.f32 0.6931472, %v8651_v58 }
 0x7f2   :  { %v5838_v12 = vadd.f32 %v5837_v61, %v5829_v60 }
 0x7f4   :  { %v5839_v33 = vsub.f32 %v8285_v16, %v5838_v12 }
 0x7f6   :  { %5840 = vst.msk [vmem:[#allocation2] sm:$0x1] %vm5826_vm6, %v5839_v33 }
 0x828   :  { %v6515_v36 = vpop.xlane.xlu1 %6514 }
 0x829   :  { %8652 = vlog2.f32 %v6515_v36 }
 0x833   :  { %v8653_v40 = vpop.eup %8652 }
 0x834   :  { %v6517_v45 = vmul.f32 0.6931472, %v8653_v40 }
 0x836   :  { %v6518_v49 = vadd.f32 %v6517_v45, %v6509_v46 }
 0x838   :  { %v6519_v53 = vsub.f32 %v8286_v26, %v6518_v49 }
 0x83a   :  { %6520 = vst.msk [vmem:[#allocation2 + $0x1] sm:$0x1] %vm5826_vm6, %v6519_v53 }
 0x83b   :  { %8665 = shalt.err (!%p8662_p4)
}
 0x83c   :  { %s8666_s2 = scalar_lea.hbm %s10539_s11, 32 }
 0x83d   :  { %p8667_p5 = scmp.ne.s32.totalorder %s10539_s11, %s8666_s2  ;;  %p8670_p6 = scmp.lt.u32.totalorder %s8666_s2, %s10539_s11 }
 0x83f   :  { %p8672_p7 = pnand %p8670_p6, %p8667_p5 }
 0x841   :  { %8675 = shalt.err (!%p8672_p7)
}
 0x842   :  { %6530 = dma.vmem_to_hbm [thread:$0]  %s6528_s22, 32, %s10539_s11, [#allocation3]  }
 0x843   :  { %8676 = dma.done.wait [#allocation3], 32  }
 0x844   :  { %8677 = vsyncadd [#allocation3], 4294967264 }
 0x845   :  { %6534 = vsyncpa [#allocation3], 1 }

</bundles_post_ra>
